<compile_context>
chip_gen: v7x
topology: tpu7x:2x2x1
jax: 0.10.0
libtpu: 0.0.40
codegen_flags: <defaults>
</compile_context>

<pallas_src>
import functools
import math

import jax
import jax.numpy as jnp
from jax.experimental import pallas as pl
from jax.experimental.pallas import tpu as pltpu


# MXU-native operand dtype; every accumulation stays in float32.
COMPUTE_DTYPE = jnp.bfloat16
# Explicit scoped-VMEM ceiling: generous for our <=10 MiB tile footprint, yet safe on
# v7x (64 MiB physical) and above the 16 MiB v5e scoped default.
VMEM_LIMIT_BYTES = 32 * 1024 * 1024
LN_EPS = 1e-5


# ---------------------------------------------------------------------------
# helpers
# ---------------------------------------------------------------------------

def _round_up(x, m):
    return ((x + m - 1) // m) * m


def _cdiv(a, b):
    return (a + b - 1) // b


def _sublane(dtype):
    # f32 packs 8 rows per vreg, bf16 packs 16, int8/fp8 pack 32.
    return {4: 8, 2: 16, 1: 32}.get(jnp.dtype(dtype).itemsize, 8)


def _pick_contraction_tile(K, target):
    """Contraction (K) tiles must evenly divide K (no garbage in the reduction).
    Prefer 256-aligned tiles (v6e/v7x 2x256^2 MXU), then 128-aligned."""
    if K <= target:
        return K
    for step in (256, 128):
        t = (target // step) * step
        while t >= step:
            if K % t == 0:
                return t
            t -= step
    return K  # fall back: no K tiling


def _gelu_tanh(y):
    # TODO(synk): PyTorch's default nn.GELU is erf-based; tanh approximation is used
    # for guaranteed Mosaic lowering (small systematic deviation).
    c = 0.7978845608028654  # sqrt(2/pi)
    return 0.5 * y * (1.0 + jnp.tanh(c * (y + 0.044715 * y * y * y)))


def _layernorm_f32(x, gamma, beta):
    mean = jnp.mean(x, axis=-1, keepdims=True)
    xc = x - mean
    var = jnp.mean(xc * xc, axis=-1, keepdims=True)
    return xc * jax.lax.rsqrt(var + LN_EPS) * gamma + beta


# ---------------------------------------------------------------------------
# Kernel 1: fused linear ( [LayerNorm] -> matmul + bias [+ GELU] [+ residual] )
# ---------------------------------------------------------------------------

def _make_linear_kernel(*, activation, fuse_ln, has_residual, use_scratch):
    def kernel(*refs):
        it = iter(refs)
        x_ref, w_ref, b_ref = next(it), next(it), next(it)
        g_ref = next(it) if fuse_ln else None
        bb_ref = next(it) if fuse_ln else None
        r_ref = next(it) if has_residual else None
        o_ref = next(it)
        # f32 outputs accumulate directly into the resident output block
        # (its index_map ignores the K axis); scratch only for non-f32 outputs.
        acc_ref = next(it) if use_scratch else o_ref

        k = pl.program_id(2)

        @pl.when(k == 0)
        def _():
            acc_ref[...] = jnp.zeros_like(acc_ref)

        if fuse_ln:
            xf = x_ref[...].astype(jnp.float32)
            xf = _layernorm_f32(xf, g_ref[...].astype(jnp.float32),
                                bb_ref[...].astype(jnp.float32))
            xc = xf.astype(COMPUTE_DTYPE)
        else:
            xc = x_ref[...].astype(COMPUTE_DTYPE)

        acc_ref[...] += jnp.dot(xc, w_ref[...].astype(COMPUTE_DTYPE),
                                preferred_element_type=jnp.float32)

        @pl.when(k == pl.num_programs(2) - 1)
        def _():
            y = acc_ref[...] + b_ref[...].astype(jnp.float32)
            if activation == "gelu":
                y = _gelu_tanh(y)
            if has_residual:
                y = y + r_ref[...].astype(jnp.float32)
            o_ref[...] = y.astype(o_ref.dtype)

    return kernel


def pallas_linear(x2d, w_kn, bias, activation=None, ln=None, residual=None,
                  *, tm=None, tn=512, tk=512):
    """y = LN?(x2d) @ w_kn + bias (+GELU?) (+residual?).

    x2d : (M, K)   w_kn : (K, N) (= W^T)   bias : (N,)   ->   (M, N)
    ln       : optional (gamma, beta), each (K,), fused LayerNorm on x before the dot.
    residual : optional (M, N), added in the epilogue (fused "+ x").
    """
    M, K = x2d.shape
    K2, N = w_kn.shape
    assert K == K2 and bias.shape == (N,)
    if residual is not None:
        assert residual.shape == (M, N)

    sub = _sublane(x2d.dtype)
    if M < sub:
        # Tiny cls-token GEMMs (ProjectInOut, cross-attn q/out): pallas_call overhead
        # dwarfs the FLOPs — let XLA handle them (same math, incl. bf16 MXU operands).
        return _ref_linear(x2d, w_kn, bias, activation=activation, ln=ln,
                           residual=residual)

    itemsize = jnp.dtype(x2d.dtype).itemsize
    if tm is None:
        tm = 512 if itemsize >= 4 else 1024          # bigger row tiles for bf16
    tm = min(tm, _round_up(M, sub))                  # ragged last block is masked
    if _cdiv(M, tm) == 1 and M > sub:
        # >=2 blocks on the parallel M axis so both v7x TensorCores get work.
        tm = _round_up(_cdiv(M, 2), sub)
    tn = N if N <= tn else max(256, (tn // 256) * 256)
    tk = _pick_contraction_tile(K, tk)

    if ln is not None and _cdiv(K, tk) > 1:
        # LayerNorm needs the full feature row; fall back to a separate LN pass.
        x2d = pallas_layernorm(x2d, ln[0], ln[1])
        ln = None

    grid = (_cdiv(M, tm), _cdiv(N, tn), _cdiv(K, tk))
    out_dtype = x2d.dtype
    use_scratch = (out_dtype != jnp.float32)

    in_specs = [
        pl.BlockSpec((tm, tk), lambda i, j, k: (i, k)),
        pl.BlockSpec((tk, tn), lambda i, j, k: (k, j)),
        pl.BlockSpec((1, tn), lambda i, j, k: (0, j)),
    ]
    operands = [x2d, w_kn, bias.reshape(1, N)]
    if ln is not None:
        in_specs.append(pl.BlockSpec((1, tk), lambda i, j, k: (0, k)))
        in_specs.append(pl.BlockSpec((1, tk), lambda i, j, k: (0, k)))
        operands += [ln[0].reshape(1, K), ln[1].reshape(1, K)]
    if residual is not None:
        in_specs.append(pl.BlockSpec((tm, tn), lambda i, j, k: (i, j)))
        operands.append(residual)

    bytes_accessed = (x2d.size + w_kn.size + bias.size + M * N) * itemsize
    if residual is not None:
        bytes_accessed += residual.size * itemsize
    cost = pl.CostEstimate(
        flops=2 * M * K * N,
        transcendentals=(M * N if activation == "gelu" else 0),
        bytes_accessed=bytes_accessed,
    )

    kernel = _make_linear_kernel(activation=activation, fuse_ln=ln is not None,
                                 has_residual=residual is not None,
                                 use_scratch=use_scratch)

    return pl.pallas_call(
        kernel,
        out_shape=jax.ShapeDtypeStruct((M, N), out_dtype),
        grid_spec=pltpu.PrefetchScalarGridSpec(
            num_scalar_prefetch=0,
            grid=grid,
            in_specs=in_specs,
            out_specs=pl.BlockSpec((tm, tn), lambda i, j, k: (i, j)),
            scratch_shapes=([pltpu.VMEM((tm, tn), jnp.float32)] if use_scratch else []),
        ),
        compiler_params=pltpu.CompilerParams(
            dimension_semantics=("parallel", "parallel", "arbitrary"),
            vmem_limit_bytes=VMEM_LIMIT_BYTES),
        cost_estimate=cost,
    )(*operands)


# ---------------------------------------------------------------------------
# Kernel 2: LayerNorm (used only when it cannot be fused into a linear)
# ---------------------------------------------------------------------------

def _layernorm_kernel(x_ref, g_ref, b_ref, o_ref):
    x = x_ref[...].astype(jnp.float32)
    y = _layernorm_f32(x, g_ref[...].astype(jnp.float32),
                       b_ref[...].astype(jnp.float32))
    o_ref[...] = y.astype(o_ref.dtype)


def pallas_layernorm(x2d, gamma, beta, *, tm=512):
    M, D = x2d.shape
    sub = _sublane(x2d.dtype)
    if M < sub:
        return _ref_layernorm(x2d, gamma, beta)
    tm = min(tm, _round_up(M, sub))
    if _cdiv(M, tm) == 1 and M > sub:
        tm = _round_up(_cdiv(M, 2), sub)
    return pl.pallas_call(
        _layernorm_kernel,
        out_shape=jax.ShapeDtypeStruct((M, D), x2d.dtype),
        grid_spec=pltpu.PrefetchScalarGridSpec(
            num_scalar_prefetch=0,
            grid=(_cdiv(M, tm),),
            in_specs=[
                pl.BlockSpec((tm, D), lambda i: (i, 0)),
                pl.BlockSpec((1, D), lambda i: (0, 0)),
                pl.BlockSpec((1, D), lambda i: (0, 0)),
            ],
            out_specs=pl.BlockSpec((tm, D), lambda i: (i, 0)),
        ),
        compiler_params=pltpu.CompilerParams(
            dimension_semantics=("parallel",),
            vmem_limit_bytes=VMEM_LIMIT_BYTES),
    )(x2d, gamma.reshape(1, D), beta.reshape(1, D))


# ---------------------------------------------------------------------------
# Kernel 3: multi-head softmax attention core
#   grid=(B,), one step = all heads of one batch item, lane-dense (N, H*Dh) blocks.
# ---------------------------------------------------------------------------

def _mha_heads(q, k, v, *, heads, dim_head, scale):
    """q:(N, H*Dh)  k,v:(M, H*Dh)  ->  (N, H*Dh); per-head static column windows."""
    outs = []
    for h in range(heads):
        sl = slice(h * dim_head, (h + 1) * dim_head)
        qh = q[:, sl].astype(COMPUTE_DTYPE)
        kh = k[:, sl].astype(COMPUTE_DTYPE)
        vh = v[:, sl].astype(COMPUTE_DTYPE)
        s = jax.lax.dot_general(qh, kh, (((1,), (1,)), ((), ())),
                                preferred_element_type=jnp.float32) * scale
        s = s - jnp.max(s, axis=-1, keepdims=True)
        p = jnp.exp(s)
        p = p * pl.reciprocal(jnp.sum(p, axis=-1, keepdims=True), approx=True)
        outs.append(jnp.dot(p.astype(COMPUTE_DTYPE), vh,
                            preferred_element_type=jnp.float32))
    return jnp.concatenate(outs, axis=-1)


def _attn_self_kernel(qkv_ref, o_ref, *, heads, dim_head, scale):
    inner = heads * dim_head
    qkv = qkv_ref[...]                                  # (N, 3*inner), lane-dense
    o = _mha_heads(qkv[:, :inner], qkv[:, inner:2 * inner], qkv[:, 2 * inner:],
                   heads=heads, dim_head=dim_head, scale=scale)
    o_ref[...] = o.astype(o_ref.dtype)                  # lane-dense (N, inner) store


def _attn_cross_kernel(q_ref, kv_ref, o_ref, *, heads, dim_head, scale):
    inner = heads * dim_head
    kv = kv_ref[...]                                    # (M, 2*inner)
    o = _mha_heads(q_ref[...], kv[:, :inner], kv[:, inner:],
                   heads=heads, dim_head=dim_head, scale=scale)
    o_ref[...] = o.astype(o_ref.dtype)


def pallas_attention_self(qkv, heads, dim_head, scale):
    """qkv: (B, N, 3*H*Dh) fused projections -> (B, N, H*Dh)."""
    B, N, C = qkv.shape
    inner = heads * dim_head
    assert C == 3 * inner
    return pl.pallas_call(
        functools.partial(_attn_self_kernel, heads=heads, dim_head=dim_head, scale=scale),
        out_shape=jax.ShapeDtypeStruct((B, N, inner), qkv.dtype),
        grid_spec=pltpu.PrefetchScalarGridSpec(
            num_scalar_prefetch=0,
            grid=(B,),
            in_specs=[pl.BlockSpec((pl.Squeezed(), N, C), lambda b: (b, 0, 0))],
            out_specs=pl.BlockSpec((pl.Squeezed(), N, inner), lambda b: (b, 0, 0)),
        ),
        compiler_params=pltpu.CompilerParams(
            dimension_semantics=("parallel",),
            vmem_limit_bytes=VMEM_LIMIT_BYTES),
    )(qkv)


def pallas_attention_cross(q, kv, heads, dim_head, scale):
    """q: (B, Nq, H*Dh), kv: (B, M, 2*H*Dh) -> (B, Nq, H*Dh)."""
    B, Nq, inner = q.shape
    M = kv.shape[1]
    assert inner == heads * dim_head and kv.shape == (B, M, 2 * inner)
    return pl.pallas_call(
        functools.partial(_attn_cross_kernel, heads=heads, dim_head=dim_head, scale=scale),
        out_shape=jax.ShapeDtypeStruct((B, Nq, inner), q.dtype),
        grid_spec=pltpu.PrefetchScalarGridSpec(
            num_scalar_prefetch=0,
            grid=(B,),
            in_specs=[
                pl.BlockSpec((pl.Squeezed(), Nq, inner), lambda b: (b, 0, 0)),
                pl.BlockSpec((pl.Squeezed(), M, 2 * inner), lambda b: (b, 0, 0)),
            ],
            out_specs=pl.BlockSpec((pl.Squeezed(), Nq, inner), lambda b: (b, 0, 0)),
        ),
        compiler_params=pltpu.CompilerParams(
            dimension_semantics=("parallel",),
            vmem_limit_bytes=VMEM_LIMIT_BYTES),
    )(q, kv)


# ---------------------------------------------------------------------------
# Pure-JAX reference ops (identical math: bf16 MXU operands, f32 accumulation)
# ---------------------------------------------------------------------------

def _ref_linear(x2d, w, b, activation=None, ln=None, residual=None):
    x = x2d.astype(jnp.float32)
    if ln is not None:
        x = _layernorm_f32(x, ln[0].astype(jnp.float32), ln[1].astype(jnp.float32))
    y = jnp.dot(x.astype(COMPUTE_DTYPE), w.astype(COMPUTE_DTYPE),
                preferred_element_type=jnp.float32) + b.astype(jnp.float32)
    if activation == "gelu":
        y = _gelu_tanh(y)
    if residual is not None:
        y = y + residual.astype(jnp.float32)
    return y.astype(x2d.dtype)


def _ref_layernorm(x2d, gamma, beta):
    return _layernorm_f32(x2d.astype(jnp.float32), gamma.astype(jnp.float32),
                          beta.astype(jnp.float32)).astype(x2d.dtype)


def _ref_mha(q, k, v, heads, dim_head, scale):
    B, N, inner = q.shape

    def split(t):
        return t.reshape(B, t.shape[1], heads, dim_head).transpose(0, 2, 1, 3)

    qh = split(q).astype(COMPUTE_DTYPE)
    kh = split(k).astype(COMPUTE_DTYPE)
    vh = split(v).astype(COMPUTE_DTYPE)
    s = jnp.einsum("bhnd,bhmd->bhnm", qh, kh,
                   preferred_element_type=jnp.float32) * scale
    p = jax.nn.softmax(s, axis=-1)
    o = jnp.einsum("bhnm,bhmd->bhnd", p.astype(COMPUTE_DTYPE), vh,
                   preferred_element_type=jnp.float32)
    return o.transpose(0, 2, 1, 3).reshape(B, N, inner).astype(q.dtype)


def _ref_attention_self(qkv, heads, dim_head, scale):
    inner = heads * dim_head
    return _ref_mha(qkv[..., :inner], qkv[..., inner:2 * inner], qkv[..., 2 * inner:],
                    heads, dim_head, scale)


def _ref_attention_cross(q, kv, heads, dim_head, scale):
    inner = heads * dim_head
    return _ref_mha(q, kv[..., :inner], kv[..., inner:], heads, dim_head, scale)


PALLAS_OPS = dict(linear=pallas_linear, layernorm=pallas_layernorm,
                  attention_self=pallas_attention_self,
                  attention_cross=pallas_attention_cross)
REF_OPS = dict(linear=_ref_linear, layernorm=_ref_layernorm,
               attention_self=_ref_attention_self,
               attention_cross=_ref_attention_cross)


# ---------------------------------------------------------------------------
# Parameter construction (mirrors the PyTorch module tree; q/k/v stored fused)
# ---------------------------------------------------------------------------

def init_linear(key, d_in, d_out, dtype=jnp.float32):
    k1, k2 = jax.random.split(key)
    bound = 1.0 / math.sqrt(d_in)
    return {"w": jax.random.uniform(k1, (d_in, d_out), dtype, -bound, bound),  # (K,N)=W^T
            "b": jax.random.uniform(k2, (d_out,), dtype, -bound, bound)}


def init_layernorm(dim, dtype=jnp.float32):
    return {"g": jnp.ones((dim,), dtype), "b": jnp.zeros((dim,), dtype)}


def init_attention(key, dim, heads, dim_head, dtype=jnp.float32):
    kqkv, ko = jax.random.split(key)
    inner = heads * dim_head
    # q/k/v stored as one fused (dim, 3*inner) weight — same per-column init
    # distribution as three separate nn.Linear(dim, inner) layers.
    return {"qkv": init_linear(kqkv, dim, 3 * inner, dtype),
            "out": init_linear(ko, inner, dim, dtype)}


def init_feedforward(key, dim, hidden, dtype=jnp.float32):
    k1, k2 = jax.random.split(key)
    return {"fc1": init_linear(k1, dim, hidden, dtype),
            "fc2": init_linear(k2, hidden, dim, dtype)}


def init_transformer(key, dim, depth, heads, dim_head, mlp_dim, dtype=jnp.float32):
    layers = []
    for i in range(depth):
        ka, kf = jax.random.split(jax.random.fold_in(key, i))
        layers.append({"attn_norm": init_layernorm(dim, dtype),
                       "attn": init_attention(ka, dim, heads, dim_head, dtype),
                       "ff_norm": init_layernorm(dim, dtype),
                       "ff": init_feedforward(kf, dim, mlp_dim, dtype)})
    return {"layers": layers}


def init_project_in_out(key, dim_in, dim_out, dtype=jnp.float32):
    if dim_in == dim_out:
        return None                       # nn.Identity
    k1, k2 = jax.random.split(key)
    return {"project_in": init_linear(k1, dim_in, dim_out, dtype),
            "project_out": init_linear(k2, dim_out, dim_in, dtype)}


def init_cross_transformer(key, sm_dim, lg_dim, depth, heads, dim_head, dtype=jnp.float32):
    layers = []
    for i in range(depth):
        k1, k2, k3, k4, k5, k6 = jax.random.split(jax.random.fold_in(key, i), 6)
        layers.append({
            "proj_in_sm": init_project_in_out(k1, sm_dim, lg_dim, dtype),   # fn='f'
            "attn_sm": {"norm": init_layernorm(lg_dim, dtype),
                        "attn": init_attention(k2, lg_dim, heads, dim_head, dtype)},
            "proj_out_sm": init_project_in_out(k3, sm_dim, lg_dim, dtype),  # fn='g'
            "proj_in_lg": init_project_in_out(k4, lg_dim, sm_dim, dtype),   # fn='f'
            "attn_lg": {"norm": init_layernorm(sm_dim, dtype),
                        "attn": init_attention(k5, sm_dim, heads, dim_head, dtype)},
            "proj_out_lg": init_project_in_out(k6, lg_dim, sm_dim, dtype),  # fn='g'
        })
    return {"layers": layers}


def init_multi_scale_encoder(key, *, depth, sm_dim, lg_dim, sm_enc_params, lg_enc_params,
                             cross_attn_heads, cross_attn_depth, cross_attn_dim_head,
                             dtype=jnp.float32):
    layers = []
    for i in range(depth):
        k1, k2, k3 = jax.random.split(jax.random.fold_in(key, i), 3)
        layers.append({
            "sm_enc": init_transformer(k1, sm_dim, dtype=dtype, **sm_enc_params),
            "lg_enc": init_transformer(k2, lg_dim, dtype=dtype, **lg_enc_params),
            "cross": init_cross_transformer(k3, sm_dim, lg_dim, cross_attn_depth,
                                            cross_attn_heads, cross_attn_dim_head, dtype),
        })
    return {"layers": layers}


# ---------------------------------------------------------------------------
# Forward pass (same structure / semantics as the PyTorch module)
# ---------------------------------------------------------------------------

def transformer_forward(ops, p, x, heads, dim_head, scale):
    B, N, D = x.shape
    inner = heads * dim_head
    x2 = x.reshape(B * N, D)
    for layer in p["layers"]:
        attn = layer["attn"]
        # PreNorm LN fused into the fused QKV projection (one GEMM for q/k/v).
        qkv = ops["linear"](x2, attn["qkv"]["w"], attn["qkv"]["b"],
                            ln=(layer["attn_norm"]["g"], layer["attn_norm"]["b"]))
        o = ops["attention_self"](qkv.reshape(B, N, 3 * inner), heads, dim_head, scale)
        # residual "+ x" fused into the out-projection epilogue.
        x2 = ops["linear"](o.reshape(B * N, inner), attn["out"]["w"], attn["out"]["b"],
                           residual=x2)
        ff = layer["ff"]
        # PreNorm LN fused into fc1 (+ fused GELU); residual fused into fc2.
        h = ops["linear"](x2, ff["fc1"]["w"], ff["fc1"]["b"], activation="gelu",
                          ln=(layer["ff_norm"]["g"], layer["ff_norm"]["b"]))
        x2 = ops["linear"](h, ff["fc2"]["w"], ff["fc2"]["b"], residual=x2)
        # TODO(synk): nn.Dropout skipped — dropout=0.0 (eval) makes it an identity.
    return x2.reshape(B, N, D)


def project_forward(ops, p, x, fn):
    if p is None:
        return x                                   # Identity
    lin = p["project_in"] if fn == "f" else p["project_out"]
    B, N, D = x.shape
    y = ops["linear"](x.reshape(B * N, D), lin["w"], lin["b"])
    return y.reshape(B, N, -1)


def cross_prenorm_attention(ops, p_norm, p_attn, cls_tok, context, heads, dim_head, scale):
    """PreNorm(Attention)(cls, context=patch, kv_include_self=True) + cls (residual fused)."""
    B, _, D = cls_tok.shape
    inner = heads * dim_head
    cls2 = cls_tok.reshape(B, D)
    xn = ops["layernorm"](cls2, p_norm["g"], p_norm["b"])
    # kv_include_self: context = cat([LN(cls), patch_tokens], dim=1)
    ctx = jnp.concatenate([xn.reshape(B, 1, D), context], axis=1)
    Mc = ctx.shape[1]
    qkv_w, qkv_b = p_attn["qkv"]["w"], p_attn["qkv"]["b"]
    q = ops["linear"](xn, qkv_w[:, :inner], qkv_b[:inner])                     # (B, inner)
    kv = ops["linear"](ctx.reshape(B * Mc, D), qkv_w[:, inner:], qkv_b[inner:])  # fused k&v
    o = ops["attention_cross"](q.reshape(B, 1, inner), kv.reshape(B, Mc, 2 * inner),
                               heads, dim_head, scale)
    out = ops["linear"](o.reshape(B, inner), p_attn["out"]["w"], p_attn["out"]["b"],
                        residual=cls2)
    return out.reshape(B, 1, D)


def cross_transformer_forward(ops, p, sm_tokens, lg_tokens, heads, dim_head, scale):
    sm_cls, sm_patch = sm_tokens[:, :1], sm_tokens[:, 1:]
    lg_cls, lg_patch = lg_tokens[:, :1], lg_tokens[:, 1:]
    for layer in p["layers"]:
        sm_cls = project_forward(ops, layer["proj_in_sm"], sm_cls, "f")
        sm_cls = cross_prenorm_attention(ops, layer["attn_sm"]["norm"],
                                         layer["attn_sm"]["attn"], sm_cls, lg_patch,
                                         heads, dim_head, scale)
        sm_cls = project_forward(ops, layer["proj_out_sm"], sm_cls, "g")

        lg_cls = project_forward(ops, layer["proj_in_lg"], lg_cls, "f")
        lg_cls = cross_prenorm_attention(ops, layer["attn_lg"]["norm"],
                                         layer["attn_lg"]["attn"], lg_cls, sm_patch,
                                         heads, dim_head, scale)
        lg_cls = project_forward(ops, layer["proj_out_lg"], lg_cls, "g")
    return (jnp.concatenate([sm_cls, sm_patch], axis=1),
            jnp.concatenate([lg_cls, lg_patch], axis=1))


def multi_scale_encoder_forward(params, sm_tokens, lg_tokens, *, cfg, ops):
    for layer in params["layers"]:
        sm_tokens = transformer_forward(ops, layer["sm_enc"], sm_tokens,
                                        cfg["sm_heads"], cfg["sm_dim_head"], cfg["sm_scale"])
        lg_tokens = transformer_forward(ops, layer["lg_enc"], lg_tokens,
                                        cfg["lg_heads"], cfg["lg_dim_head"], cfg["lg_scale"])
        sm_tokens, lg_tokens = cross_transformer_forward(
            ops, layer["cross"], sm_tokens, lg_tokens,
            cfg["cross_heads"], cfg["cross_dim_head"], cfg["cross_scale"])
    return sm_tokens, lg_tokens


# ---------------------------------------------------------------------------
# demo / self-test
# ---------------------------------------------------------------------------

if __name__ == "__main__":
    key = jax.random.PRNGKey(0)
    kp, ks, kl = jax.random.split(key, 3)

    batch = 2
    sm_dim, lg_dim = 32, 64
    sm_patches, lg_patches = 16, 8            # +1 CLS token each
    depth = 1
    sm_enc_params = dict(depth=1, heads=2, dim_head=16, mlp_dim=64)
    lg_enc_params = dict(depth=1, heads=2, dim_head=16, mlp_dim=64)
    cross_attn_heads, cross_attn_depth, cross_attn_dim_head = 2, 1, 16

    params = init_multi_scale_encoder(
        kp, depth=depth, sm_dim=sm_dim, lg_dim=lg_dim,
        sm_enc_params=sm_enc_params, lg_enc_params=lg_enc_params,
        cross_attn_heads=cross_attn_heads, cross_attn_depth=cross_attn_depth,
        cross_attn_dim_head=cross_attn_dim_head)

    cfg = dict(sm_heads=sm_enc_params["heads"], sm_dim_head=sm_enc_params["dim_head"],
               sm_scale=sm_enc_params["dim_head"] ** -0.5,
               lg_heads=lg_enc_params["heads"], lg_dim_head=lg_enc_params["dim_head"],
               lg_scale=lg_enc_params["dim_head"] ** -0.5,
               cross_heads=cross_attn_heads, cross_dim_head=cross_attn_dim_head,
               cross_scale=cross_attn_dim_head ** -0.5)

    sm_tokens = jax.random.normal(ks, (batch, sm_patches + 1, sm_dim), jnp.float32)
    lg_tokens = jax.random.normal(kl, (batch, lg_patches + 1, lg_dim), jnp.float32)

    fwd = jax.jit(functools.partial(multi_scale_encoder_forward, cfg=cfg, ops=PALLAS_OPS))
    sm_out, lg_out = fwd(params, sm_tokens, lg_tokens)
    sm_out = jax.block_until_ready(sm_out)
    lg_out = jax.block_until_ready(lg_out)

    assert sm_out.shape == sm_tokens.shape and lg_out.shape == lg_tokens.shape
    assert bool(jnp.all(jnp.isfinite(sm_out))) and bool(jnp.all(jnp.isfinite(lg_out)))

    # Pure-JAX reference of the identical forward math (same bf16 MXU operands,
    # f32 accumulation) — validates the Pallas kernels and the fusion plumbing.
    sm_ref, lg_ref = multi_scale_encoder_forward(params, sm_tokens, lg_tokens,
                                                 cfg=cfg, ops=REF_OPS)
    assert jnp.allclose(sm_out, sm_ref, atol=1e-2, rtol=1e-2), \
        float(jnp.max(jnp.abs(sm_out - sm_ref)))
    assert jnp.allclose(lg_out, lg_ref, atol=1e-2, rtol=1e-2), \
        float(jnp.max(jnp.abs(lg_out - lg_ref)))

    print("KERNEL_OK")
</pallas_src>

<mosaic_0001>
module attributes {stable_mosaic.version = 11 : i64} {
  func.func @kernel(%arg0: i32, %arg1: i32, %arg2: i32, %arg3: memref<24x32xf32, #tpu.memory_space<vmem>>, %arg4: memref<32x96xf32, #tpu.memory_space<vmem>>, %arg5: memref<1x96xf32, #tpu.memory_space<vmem>>, %arg6: memref<1x32xf32, #tpu.memory_space<vmem>>, %arg7: memref<1x32xf32, #tpu.memory_space<vmem>>, %arg8: memref<24x96xf32, #tpu.memory_space<vmem>>) attributes {dimension_semantics = [#tpu.dimension_semantics<parallel>, #tpu.dimension_semantics<parallel>, #tpu.dimension_semantics<arbitrary>], iteration_bounds = array<i64: 2, 1, 1>, scalar_prefetch = 0 : i64, scratch_operands = 0 : i64, tpu.core_type = #tpu.core_type<tc>, window_params = [{transform_indices = @transform_0, window_bounds = array<i64: 24, 32>}, {transform_indices = @transform_1, window_bounds = array<i64: 32, 96>}, {transform_indices = @transform_2, window_bounds = array<i64: 1, 96>}, {transform_indices = @transform_3, window_bounds = array<i64: 1, 32>}, {transform_indices = @transform_4, window_bounds = array<i64: 1, 32>}, {transform_indices = @transform_5, window_bounds = array<i64: 24, 96>}]} {
    %c0_i32 = arith.constant 0 : i32
    %0 = arith.cmpi eq, %arg2, %c0_i32 : i32
    %1 = arith.extui %0 : i1 to i32
    %c0_i32_0 = arith.constant 0 : i32
    %2 = arith.cmpi ne, %1, %c0_i32_0 : i32
    scf.if %2 {
      %cst_19 = arith.constant 0.000000e+00 : f32
      %36 = vector.broadcast %cst_19 : f32 to vector<24x96xf32>
      %c0_20 = arith.constant 0 : index
      %c0_21 = arith.constant 0 : index
      %37 = vector.load %arg8[%c0_20, %c0_21] : memref<24x96xf32, #tpu.memory_space<vmem>>, vector<24x96xf32>
      tpu.vector_store %arg8[%c0_20, %c0_21], %36 {strides = array<i32>} : memref<24x96xf32, #tpu.memory_space<vmem>>, vector<24x96xf32>,
    } else {
    }
    %c0 = arith.constant 0 : index
    %c0_1 = arith.constant 0 : index
    %3 = vector.load %arg3[%c0, %c0_1] : memref<24x32xf32, #tpu.memory_space<vmem>>, vector<24x32xf32>
    %c0_2 = arith.constant 0 : index
    %c0_3 = arith.constant 0 : index
    %4 = vector.load %arg6[%c0_2, %c0_3] : memref<1x32xf32, #tpu.memory_space<vmem>>, vector<1x32xf32>
    %c0_4 = arith.constant 0 : index
    %c0_5 = arith.constant 0 : index
    %5 = vector.load %arg7[%c0_4, %c0_5] : memref<1x32xf32, #tpu.memory_space<vmem>>, vector<1x32xf32>
    %cst = arith.constant dense<0.000000e+00> : vector<24xf32>
    %6 = vector.multi_reduction <add>, %3, %cst [1] : vector<24x32xf32> to vector<24xf32>
    %7 = vector.shape_cast %6 : vector<24xf32> to vector<24x1xf32>
    %cst_6 = arith.constant 3.200000e+01 : f32
    %8 = vector.broadcast %cst_6 : f32 to vector<24x1xf32>
    %9 = arith.divf %7, %8 : vector<24x1xf32>
    %10 = vector.broadcast %9 : vector<24x1xf32> to vector<24x32xf32>
    %11 = arith.subf %3, %10 : vector<24x32xf32>
    %12 = arith.mulf %11, %11 : vector<24x32xf32>
    %cst_7 = arith.constant dense<0.000000e+00> : vector<24xf32>
    %13 = vector.multi_reduction <add>, %12, %cst_7 [1] : vector<24x32xf32> to vector<24xf32>
    %14 = vector.shape_cast %13 : vector<24xf32> to vector<24x1xf32>
    %cst_8 = arith.constant 3.200000e+01 : f32
    %15 = vector.broadcast %cst_8 : f32 to vector<24x1xf32>
    %16 = arith.divf %14, %15 : vector<24x1xf32>
    %cst_9 = arith.constant 9.99999974E-6 : f32
    %17 = vector.broadcast %cst_9 : f32 to vector<24x1xf32>
    %18 = arith.addf %16, %17 : vector<24x1xf32>
    %19 = math.rsqrt %18 : vector<24x1xf32>
    %20 = vector.broadcast %19 : vector<24x1xf32> to vector<24x32xf32>
    %21 = arith.mulf %11, %20 : vector<24x32xf32>
    %22 = vector.broadcast %4 : vector<1x32xf32> to vector<24x32xf32>
    %23 = arith.mulf %21, %22 : vector<24x32xf32>
    %24 = vector.broadcast %5 : vector<1x32xf32> to vector<24x32xf32>
    %25 = arith.addf %23, %24 : vector<24x32xf32>
    %26 = arith.truncf %25 : vector<24x32xf32> to vector<24x32xbf16>
    %c0_10 = arith.constant 0 : index
    %c0_11 = arith.constant 0 : index
    %27 = vector.load %arg8[%c0_10, %c0_11] : memref<24x96xf32, #tpu.memory_space<vmem>>, vector<24x96xf32>
    %c0_12 = arith.constant 0 : index
    %c0_13 = arith.constant 0 : index
    %28 = vector.load %arg4[%c0_12, %c0_13] : memref<32x96xf32, #tpu.memory_space<vmem>>, vector<32x96xf32>
    %29 = arith.truncf %28 : vector<32x96xf32> to vector<32x96xbf16>
    %cst_14 = arith.constant dense<0.000000e+00> : vector<24x96xf32>
    %30 = tpu.matmul %26, %29, %cst_14 {dimension_numbers = #tpu.dot_dimension_numbers<[1], [0], [0], [1], [0, 0, 1, 1], [], []>} : vector<24x32xbf16>, vector<32x96xbf16>, vector<24x96xf32> -> vector<24x96xf32>
    %31 = arith.addf %27, %30 : vector<24x96xf32>
    %c0_15 = arith.constant 0 : index
    %c0_16 = arith.constant 0 : index
    %32 = vector.load %arg8[%c0_15, %c0_16] : memref<24x96xf32, #tpu.memory_space<vmem>>, vector<24x96xf32>
    tpu.vector_store %arg8[%c0_15, %c0_16], %31 {strides = array<i32>} : memref<24x96xf32, #tpu.memory_space<vmem>>, vector<24x96xf32>,
    %c0_i32_17 = arith.constant 0 : i32
    %33 = arith.cmpi eq, %arg2, %c0_i32_17 : i32
    %34 = arith.extui %33 : i1 to i32
    %c0_i32_18 = arith.constant 0 : i32
    %35 = arith.cmpi ne, %34, %c0_i32_18 : i32
    scf.if %35 {
      %c0_19 = arith.constant 0 : index
      %c0_20 = arith.constant 0 : index
      %36 = vector.load %arg8[%c0_19, %c0_20] : memref<24x96xf32, #tpu.memory_space<vmem>>, vector<24x96xf32>
      %c0_21 = arith.constant 0 : index
      %c0_22 = arith.constant 0 : index
      %37 = vector.load %arg5[%c0_21, %c0_22] : memref<1x96xf32, #tpu.memory_space<vmem>>, vector<1x96xf32>
      %38 = vector.broadcast %37 : vector<1x96xf32> to vector<24x96xf32>
      %39 = arith.addf %36, %38 : vector<24x96xf32>
      %c0_23 = arith.constant 0 : index
      %c0_24 = arith.constant 0 : index
      %40 = vector.load %arg8[%c0_23, %c0_24] : memref<24x96xf32, #tpu.memory_space<vmem>>, vector<24x96xf32>
      tpu.vector_store %arg8[%c0_23, %c0_24], %39 {strides = array<i32>} : memref<24x96xf32, #tpu.memory_space<vmem>>, vector<24x96xf32>,
    } else {
    }
    return
  }
  func.func @transform_0(%arg0: i32, %arg1: i32, %arg2: i32) -> (i32, i32) {
    %c0_i32 = arith.constant 0 : i32
    return %arg0, %arg2 : i32, i32
  }
  func.func @transform_1(%arg0: i32, %arg1: i32, %arg2: i32) -> (i32, i32) {
    %c0_i32 = arith.constant 0 : i32
    return %arg2, %arg1 : i32, i32
  }
  func.func @transform_2(%arg0: i32, %arg1: i32, %arg2: i32) -> (i32, i32) {
    %c0_i32 = arith.constant 0 : i32
    %c0_i32_0 = arith.constant 0 : i32
    return %c0_i32, %arg1 : i32, i32
  }
  func.func @transform_3(%arg0: i32, %arg1: i32, %arg2: i32) -> (i32, i32) {
    %c0_i32 = arith.constant 0 : i32
    %c0_i32_0 = arith.constant 0 : i32
    return %c0_i32, %arg2 : i32, i32
  }
  func.func @transform_4(%arg0: i32, %arg1: i32, %arg2: i32) -> (i32, i32) {
    %c0_i32 = arith.constant 0 : i32
    %c0_i32_0 = arith.constant 0 : i32
    return %c0_i32, %arg2 : i32, i32
  }
  func.func @transform_5(%arg0: i32, %arg1: i32, %arg2: i32) -> (i32, i32) {
    %c0_i32 = arith.constant 0 : i32
    return %arg0, %arg1 : i32, i32
  }
}

module attributes {stable_mosaic.version = 11 : i64} {
  func.func @kernel(%arg0: i32, %arg1: i32, %arg2: i32, %arg3: memref<24x32xf32, #tpu.memory_space<vmem>>, %arg4: memref<32x32xf32, #tpu.memory_space<vmem>>, %arg5: memref<1x32xf32, #tpu.memory_space<vmem>>, %arg6: memref<24x32xf32, #tpu.memory_space<vmem>>, %arg7: memref<24x32xf32, #tpu.memory_space<vmem>>) attributes {dimension_semantics = [#tpu.dimension_semantics<parallel>, #tpu.dimension_semantics<parallel>, #tpu.dimension_semantics<arbitrary>], iteration_bounds = array<i64: 2, 1, 1>, scalar_prefetch = 0 : i64, scratch_operands = 0 : i64, tpu.core_type = #tpu.core_type<tc>, window_params = [{transform_indices = @transform_0, window_bounds = array<i64: 24, 32>}, {transform_indices = @transform_1, window_bounds = array<i64: 32, 32>}, {transform_indices = @transform_2, window_bounds = array<i64: 1, 32>}, {transform_indices = @transform_3, window_bounds = array<i64: 24, 32>}, {transform_indices = @transform_4, window_bounds = array<i64: 24, 32>}]} {
    %c0_i32 = arith.constant 0 : i32
    %0 = arith.cmpi eq, %arg2, %c0_i32 : i32
    %1 = arith.extui %0 : i1 to i32
    %c0_i32_0 = arith.constant 0 : i32
    %2 = arith.cmpi ne, %1, %c0_i32_0 : i32
    scf.if %2 {
      %cst_10 = arith.constant 0.000000e+00 : f32
      %14 = vector.broadcast %cst_10 : f32 to vector<24x32xf32>
      %c0_11 = arith.constant 0 : index
      %c0_12 = arith.constant 0 : index
      %15 = vector.load %arg7[%c0_11, %c0_12] : memref<24x32xf32, #tpu.memory_space<vmem>>, vector<24x32xf32>
      tpu.vector_store %arg7[%c0_11, %c0_12], %14 {strides = array<i32>} : memref<24x32xf32, #tpu.memory_space<vmem>>, vector<24x32xf32>,
    } else {
    }
    %c0 = arith.constant 0 : index
    %c0_1 = arith.constant 0 : index
    %3 = vector.load %arg3[%c0, %c0_1] : memref<24x32xf32, #tpu.memory_space<vmem>>, vector<24x32xf32>
    %4 = arith.truncf %3 : vector<24x32xf32> to vector<24x32xbf16>
    %c0_2 = arith.constant 0 : index
    %c0_3 = arith.constant 0 : index
    %5 = vector.load %arg7[%c0_2, %c0_3] : memref<24x32xf32, #tpu.memory_space<vmem>>, vector<24x32xf32>
    %c0_4 = arith.constant 0 : index
    %c0_5 = arith.constant 0 : index
    %6 = vector.load %arg4[%c0_4, %c0_5] : memref<32x32xf32, #tpu.memory_space<vmem>>, vector<32x32xf32>
    %7 = arith.truncf %6 : vector<32x32xf32> to vector<32x32xbf16>
    %cst = arith.constant dense<0.000000e+00> : vector<24x32xf32>
    %8 = tpu.matmul %4, %7, %cst {dimension_numbers = #tpu.dot_dimension_numbers<[1], [0], [0], [1], [0, 0, 1, 1], [], []>} : vector<24x32xbf16>, vector<32x32xbf16>, vector<24x32xf32> -> vector<24x32xf32>
    %9 = arith.addf %5, %8 : vector<24x32xf32>
    %c0_6 = arith.constant 0 : index
    %c0_7 = arith.constant 0 : index
    %10 = vector.load %arg7[%c0_6, %c0_7] : memref<24x32xf32, #tpu.memory_space<vmem>>, vector<24x32xf32>
    tpu.vector_store %arg7[%c0_6, %c0_7], %9 {strides = array<i32>} : memref<24x32xf32, #tpu.memory_space<vmem>>, vector<24x32xf32>,
    %c0_i32_8 = arith.constant 0 : i32
    %11 = arith.cmpi eq, %arg2, %c0_i32_8 : i32
    %12 = arith.extui %11 : i1 to i32
    %c0_i32_9 = arith.constant 0 : i32
    %13 = arith.cmpi ne, %12, %c0_i32_9 : i32
    scf.if %13 {
      %c0_10 = arith.constant 0 : index
      %c0_11 = arith.constant 0 : index
      %14 = vector.load %arg7[%c0_10, %c0_11] : memref<24x32xf32, #tpu.memory_space<vmem>>, vector<24x32xf32>
      %c0_12 = arith.constant 0 : index
      %c0_13 = arith.constant 0 : index
      %15 = vector.load %arg5[%c0_12, %c0_13] : memref<1x32xf32, #tpu.memory_space<vmem>>, vector<1x32xf32>
      %16 = vector.broadcast %15 : vector<1x32xf32> to vector<24x32xf32>
      %17 = arith.addf %14, %16 : vector<24x32xf32>
      %c0_14 = arith.constant 0 : index
      %c0_15 = arith.constant 0 : index
      %18 = vector.load %arg6[%c0_14, %c0_15] : memref<24x32xf32, #tpu.memory_space<vmem>>, vector<24x32xf32>
      %19 = arith.addf %17, %18 : vector<24x32xf32>
      %c0_16 = arith.constant 0 : index
      %c0_17 = arith.constant 0 : index
      %20 = vector.load %arg7[%c0_16, %c0_17] : memref<24x32xf32, #tpu.memory_space<vmem>>, vector<24x32xf32>
      tpu.vector_store %arg7[%c0_16, %c0_17], %19 {strides = array<i32>} : memref<24x32xf32, #tpu.memory_space<vmem>>, vector<24x32xf32>,
    } else {
    }
    return
  }
  func.func @transform_0(%arg0: i32, %arg1: i32, %arg2: i32) -> (i32, i32) {
    %c0_i32 = arith.constant 0 : i32
    return %arg0, %arg2 : i32, i32
  }
  func.func @transform_1(%arg0: i32, %arg1: i32, %arg2: i32) -> (i32, i32) {
    %c0_i32 = arith.constant 0 : i32
    return %arg2, %arg1 : i32, i32
  }
  func.func @transform_2(%arg0: i32, %arg1: i32, %arg2: i32) -> (i32, i32) {
    %c0_i32 = arith.constant 0 : i32
    %c0_i32_0 = arith.constant 0 : i32
    return %c0_i32, %arg1 : i32, i32
  }
  func.func @transform_3(%arg0: i32, %arg1: i32, %arg2: i32) -> (i32, i32) {
    %c0_i32 = arith.constant 0 : i32
    return %arg0, %arg1 : i32, i32
  }
  func.func @transform_4(%arg0: i32, %arg1: i32, %arg2: i32) -> (i32, i32) {
    %c0_i32 = arith.constant 0 : i32
    return %arg0, %arg1 : i32, i32
  }
}

module attributes {stable_mosaic.version = 11 : i64} {
  func.func @kernel(%arg0: i32, %arg1: i32, %arg2: i32, %arg3: memref<24x32xf32, #tpu.memory_space<vmem>>, %arg4: memref<32x64xf32, #tpu.memory_space<vmem>>, %arg5: memref<1x64xf32, #tpu.memory_space<vmem>>, %arg6: memref<1x32xf32, #tpu.memory_space<vmem>>, %arg7: memref<1x32xf32, #tpu.memory_space<vmem>>, %arg8: memref<24x64xf32, #tpu.memory_space<vmem>>) attributes {dimension_semantics = [#tpu.dimension_semantics<parallel>, #tpu.dimension_semantics<parallel>, #tpu.dimension_semantics<arbitrary>], iteration_bounds = array<i64: 2, 1, 1>, scalar_prefetch = 0 : i64, scratch_operands = 0 : i64, tpu.core_type = #tpu.core_type<tc>, window_params = [{transform_indices = @transform_0, window_bounds = array<i64: 24, 32>}, {transform_indices = @transform_1, window_bounds = array<i64: 32, 64>}, {transform_indices = @transform_2, window_bounds = array<i64: 1, 64>}, {transform_indices = @transform_3, window_bounds = array<i64: 1, 32>}, {transform_indices = @transform_4, window_bounds = array<i64: 1, 32>}, {transform_indices = @transform_5, window_bounds = array<i64: 24, 64>}]} {
    %c0_i32 = arith.constant 0 : i32
    %0 = arith.cmpi eq, %arg2, %c0_i32 : i32
    %1 = arith.extui %0 : i1 to i32
    %c0_i32_0 = arith.constant 0 : i32
    %2 = arith.cmpi ne, %1, %c0_i32_0 : i32
    scf.if %2 {
      %cst_19 = arith.constant 0.000000e+00 : f32
      %36 = vector.broadcast %cst_19 : f32 to vector<24x64xf32>
      %c0_20 = arith.constant 0 : index
      %c0_21 = arith.constant 0 : index
      %37 = vector.load %arg8[%c0_20, %c0_21] : memref<24x64xf32, #tpu.memory_space<vmem>>, vector<24x64xf32>
      tpu.vector_store %arg8[%c0_20, %c0_21], %36 {strides = array<i32>} : memref<24x64xf32, #tpu.memory_space<vmem>>, vector<24x64xf32>,
    } else {
    }
    %c0 = arith.constant 0 : index
    %c0_1 = arith.constant 0 : index
    %3 = vector.load %arg3[%c0, %c0_1] : memref<24x32xf32, #tpu.memory_space<vmem>>, vector<24x32xf32>
    %c0_2 = arith.constant 0 : index
    %c0_3 = arith.constant 0 : index
    %4 = vector.load %arg6[%c0_2, %c0_3] : memref<1x32xf32, #tpu.memory_space<vmem>>, vector<1x32xf32>
    %c0_4 = arith.constant 0 : index
    %c0_5 = arith.constant 0 : index
    %5 = vector.load %arg7[%c0_4, %c0_5] : memref<1x32xf32, #tpu.memory_space<vmem>>, vector<1x32xf32>
    %cst = arith.constant dense<0.000000e+00> : vector<24xf32>
    %6 = vector.multi_reduction <add>, %3, %cst [1] : vector<24x32xf32> to vector<24xf32>
    %7 = vector.shape_cast %6 : vector<24xf32> to vector<24x1xf32>
    %cst_6 = arith.constant 3.200000e+01 : f32
    %8 = vector.broadcast %cst_6 : f32 to vector<24x1xf32>
    %9 = arith.divf %7, %8 : vector<24x1xf32>
    %10 = vector.broadcast %9 : vector<24x1xf32> to vector<24x32xf32>
    %11 = arith.subf %3, %10 : vector<24x32xf32>
    %12 = arith.mulf %11, %11 : vector<24x32xf32>
    %cst_7 = arith.constant dense<0.000000e+00> : vector<24xf32>
    %13 = vector.multi_reduction <add>, %12, %cst_7 [1] : vector<24x32xf32> to vector<24xf32>
    %14 = vector.shape_cast %13 : vector<24xf32> to vector<24x1xf32>
    %cst_8 = arith.constant 3.200000e+01 : f32
    %15 = vector.broadcast %cst_8 : f32 to vector<24x1xf32>
    %16 = arith.divf %14, %15 : vector<24x1xf32>
    %cst_9 = arith.constant 9.99999974E-6 : f32
    %17 = vector.broadcast %cst_9 : f32 to vector<24x1xf32>
    %18 = arith.addf %16, %17 : vector<24x1xf32>
    %19 = math.rsqrt %18 : vector<24x1xf32>
    %20 = vector.broadcast %19 : vector<24x1xf32> to vector<24x32xf32>
    %21 = arith.mulf %11, %20 : vector<24x32xf32>
    %22 = vector.broadcast %4 : vector<1x32xf32> to vector<24x32xf32>
    %23 = arith.mulf %21, %22 : vector<24x32xf32>
    %24 = vector.broadcast %5 : vector<1x32xf32> to vector<24x32xf32>
    %25 = arith.addf %23, %24 : vector<24x32xf32>
    %26 = arith.truncf %25 : vector<24x32xf32> to vector<24x32xbf16>
    %c0_10 = arith.constant 0 : index
    %c0_11 = arith.constant 0 : index
    %27 = vector.load %arg8[%c0_10, %c0_11] : memref<24x64xf32, #tpu.memory_space<vmem>>, vector<24x64xf32>
    %c0_12 = arith.constant 0 : index
    %c0_13 = arith.constant 0 : index
    %28 = vector.load %arg4[%c0_12, %c0_13] : memref<32x64xf32, #tpu.memory_space<vmem>>, vector<32x64xf32>
    %29 = arith.truncf %28 : vector<32x64xf32> to vector<32x64xbf16>
    %cst_14 = arith.constant dense<0.000000e+00> : vector<24x64xf32>
    %30 = tpu.matmul %26, %29, %cst_14 {dimension_numbers = #tpu.dot_dimension_numbers<[1], [0], [0], [1], [0, 0, 1, 1], [], []>} : vector<24x32xbf16>, vector<32x64xbf16>, vector<24x64xf32> -> vector<24x64xf32>
    %31 = arith.addf %27, %30 : vector<24x64xf32>
    %c0_15 = arith.constant 0 : index
    %c0_16 = arith.constant 0 : index
    %32 = vector.load %arg8[%c0_15, %c0_16] : memref<24x64xf32, #tpu.memory_space<vmem>>, vector<24x64xf32>
    tpu.vector_store %arg8[%c0_15, %c0_16], %31 {strides = array<i32>} : memref<24x64xf32, #tpu.memory_space<vmem>>, vector<24x64xf32>,
    %c0_i32_17 = arith.constant 0 : i32
    %33 = arith.cmpi eq, %arg2, %c0_i32_17 : i32
    %34 = arith.extui %33 : i1 to i32
    %c0_i32_18 = arith.constant 0 : i32
    %35 = arith.cmpi ne, %34, %c0_i32_18 : i32
    scf.if %35 {
      %c0_19 = arith.constant 0 : index
      %c0_20 = arith.constant 0 : index
      %36 = vector.load %arg8[%c0_19, %c0_20] : memref<24x64xf32, #tpu.memory_space<vmem>>, vector<24x64xf32>
      %c0_21 = arith.constant 0 : index
      %c0_22 = arith.constant 0 : index
      %37 = vector.load %arg5[%c0_21, %c0_22] : memref<1x64xf32, #tpu.memory_space<vmem>>, vector<1x64xf32>
      %38 = vector.broadcast %37 : vector<1x64xf32> to vector<24x64xf32>
      %39 = arith.addf %36, %38 : vector<24x64xf32>
      %cst_23 = arith.constant 5.000000e-01 : f32
      %40 = vector.broadcast %cst_23 : f32 to vector<24x64xf32>
      %41 = arith.mulf %40, %39 : vector<24x64xf32>
      %cst_24 = arith.constant 4.471500e-02 : f32
      %42 = vector.broadcast %cst_24 : f32 to vector<24x64xf32>
      %43 = arith.mulf %42, %39 : vector<24x64xf32>
      %44 = arith.mulf %43, %39 : vector<24x64xf32>
      %45 = arith.mulf %44, %39 : vector<24x64xf32>
      %46 = arith.addf %39, %45 : vector<24x64xf32>
      %cst_25 = arith.constant 0.797884583 : f32
      %47 = vector.broadcast %cst_25 : f32 to vector<24x64xf32>
      %48 = arith.mulf %47, %46 : vector<24x64xf32>
      %49 = math.tanh %48 : vector<24x64xf32>
      %cst_26 = arith.constant 1.000000e+00 : f32
      %50 = vector.broadcast %cst_26 : f32 to vector<24x64xf32>
      %51 = arith.addf %50, %49 : vector<24x64xf32>
      %52 = arith.mulf %41, %51 : vector<24x64xf32>
      %c0_27 = arith.constant 0 : index
      %c0_28 = arith.constant 0 : index
      %53 = vector.load %arg8[%c0_27, %c0_28] : memref<24x64xf32, #tpu.memory_space<vmem>>, vector<24x64xf32>
      tpu.vector_store %arg8[%c0_27, %c0_28], %52 {strides = array<i32>} : memref<24x64xf32, #tpu.memory_space<vmem>>, vector<24x64xf32>,
    } else {
    }
    return
  }
  func.func @transform_0(%arg0: i32, %arg1: i32, %arg2: i32) -> (i32, i32) {
    %c0_i32 = arith.constant 0 : i32
    return %arg0, %arg2 : i32, i32
  }
  func.func @transform_1(%arg0: i32, %arg1: i32, %arg2: i32) -> (i32, i32) {
    %c0_i32 = arith.constant 0 : i32
    return %arg2, %arg1 : i32, i32
  }
  func.func @transform_2(%arg0: i32, %arg1: i32, %arg2: i32) -> (i32, i32) {
    %c0_i32 = arith.constant 0 : i32
    %c0_i32_0 = arith.constant 0 : i32
    return %c0_i32, %arg1 : i32, i32
  }
  func.func @transform_3(%arg0: i32, %arg1: i32, %arg2: i32) -> (i32, i32) {
    %c0_i32 = arith.constant 0 : i32
    %c0_i32_0 = arith.constant 0 : i32
    return %c0_i32, %arg2 : i32, i32
  }
  func.func @transform_4(%arg0: i32, %arg1: i32, %arg2: i32) -> (i32, i32) {
    %c0_i32 = arith.constant 0 : i32
    %c0_i32_0 = arith.constant 0 : i32
    return %c0_i32, %arg2 : i32, i32
  }
  func.func @transform_5(%arg0: i32, %arg1: i32, %arg2: i32) -> (i32, i32) {
    %c0_i32 = arith.constant 0 : i32
    return %arg0, %arg1 : i32, i32
  }
}

module attributes {stable_mosaic.version = 11 : i64} {
  func.func @_attn_self_kernel(%arg0: i32, %arg1: memref<1x17x96xf32, #tpu.memory_space<vmem>>, %arg2: memref<1x17x32xf32, #tpu.memory_space<vmem>>) attributes {dimension_semantics = [#tpu.dimension_semantics<parallel>], iteration_bounds = array<i64: 2>, scalar_prefetch = 0 : i64, scratch_operands = 0 : i64, tpu.core_type = #tpu.core_type<tc>, window_params = [{transform_indices = @transform_0, window_bounds = array<i64: 1, 17, 96>}, {transform_indices = @transform_1, window_bounds = array<i64: 1, 17, 32>}]} {
    %c0 = arith.constant 0 : index
    %c0_0 = arith.constant 0 : index
    %c0_1 = arith.constant 0 : index
    %0 = vector.load %arg1[%c0, %c0_0, %c0_1] : memref<1x17x96xf32, #tpu.memory_space<vmem>>, vector<1x17x96xf32>
    %1 = vector.shape_cast %0 : vector<1x17x96xf32> to vector<17x96xf32>
    %2 = vector.extract_strided_slice %1 {offsets = [0, 0], sizes = [17, 32], strides = [1, 1]} : vector<17x96xf32> to vector<17x32xf32>
    %3 = vector.extract_strided_slice %1 {offsets = [0, 32], sizes = [17, 32], strides = [1, 1]} : vector<17x96xf32> to vector<17x32xf32>
    %4 = vector.extract_strided_slice %1 {offsets = [0, 64], sizes = [17, 32], strides = [1, 1]} : vector<17x96xf32> to vector<17x32xf32>
    %5 = vector.extract_strided_slice %2 {offsets = [0, 0], sizes = [17, 16], strides = [1, 1]} : vector<17x32xf32> to vector<17x16xf32>
    %6 = arith.truncf %5 : vector<17x16xf32> to vector<17x16xbf16>
    %7 = vector.extract_strided_slice %3 {offsets = [0, 0], sizes = [17, 16], strides = [1, 1]} : vector<17x32xf32> to vector<17x16xf32>
    %8 = arith.truncf %7 : vector<17x16xf32> to vector<17x16xbf16>
    %9 = vector.extract_strided_slice %4 {offsets = [0, 0], sizes = [17, 16], strides = [1, 1]} : vector<17x32xf32> to vector<17x16xf32>
    %10 = arith.truncf %9 : vector<17x16xf32> to vector<17x16xbf16>
    %cst = arith.constant dense<0.000000e+00> : vector<17x17xf32>
    %11 = tpu.matmul %6, %8, %cst {dimension_numbers = #tpu.dot_dimension_numbers<[1], [1], [0], [0], [0, 0, 1, 0], [], []>} : vector<17x16xbf16>, vector<17x16xbf16>, vector<17x17xf32> -> vector<17x17xf32>
    %cst_2 = arith.constant 2.500000e-01 : f32
    %12 = vector.broadcast %cst_2 : f32 to vector<17x17xf32>
    %13 = arith.mulf %11, %12 : vector<17x17xf32>
    %cst_3 = arith.constant dense<0xFF800000> : vector<17xf32>
    %14 = vector.multi_reduction <maximumf>, %13, %cst_3 [1] : vector<17x17xf32> to vector<17xf32>
    %15 = vector.shape_cast %14 : vector<17xf32> to vector<17x1xf32>
    %16 = vector.broadcast %15 : vector<17x1xf32> to vector<17x17xf32>
    %17 = arith.subf %13, %16 : vector<17x17xf32>
    %18 = math.exp %17 : vector<17x17xf32>
    %cst_4 = arith.constant dense<0.000000e+00> : vector<17xf32>
    %19 = vector.multi_reduction <add>, %18, %cst_4 [1] : vector<17x17xf32> to vector<17xf32>
    %20 = vector.shape_cast %19 : vector<17xf32> to vector<17x1xf32>
    %21 = tpu.reciprocal %20 {approx = true} : vector<17x1xf32> -> vector<17x1xf32>
    %22 = vector.broadcast %21 : vector<17x1xf32> to vector<17x17xf32>
    %23 = arith.mulf %18, %22 : vector<17x17xf32>
    %24 = arith.truncf %23 : vector<17x17xf32> to vector<17x17xbf16>
    %cst_5 = arith.constant dense<0.000000e+00> : vector<17x16xf32>
    %25 = tpu.matmul %24, %10, %cst_5 {dimension_numbers = #tpu.dot_dimension_numbers<[1], [0], [0], [1], [0, 0, 1, 1], [], []>} : vector<17x17xbf16>, vector<17x16xbf16>, vector<17x16xf32> -> vector<17x16xf32>
    %26 = vector.extract_strided_slice %2 {offsets = [0, 16], sizes = [17, 16], strides = [1, 1]} : vector<17x32xf32> to vector<17x16xf32>
    %27 = arith.truncf %26 : vector<17x16xf32> to vector<17x16xbf16>
    %28 = vector.extract_strided_slice %3 {offsets = [0, 16], sizes = [17, 16], strides = [1, 1]} : vector<17x32xf32> to vector<17x16xf32>
    %29 = arith.truncf %28 : vector<17x16xf32> to vector<17x16xbf16>
    %30 = vector.extract_strided_slice %4 {offsets = [0, 16], sizes = [17, 16], strides = [1, 1]} : vector<17x32xf32> to vector<17x16xf32>
    %31 = arith.truncf %30 : vector<17x16xf32> to vector<17x16xbf16>
    %cst_6 = arith.constant dense<0.000000e+00> : vector<17x17xf32>
    %32 = tpu.matmul %27, %29, %cst_6 {dimension_numbers = #tpu.dot_dimension_numbers<[1], [1], [0], [0], [0, 0, 1, 0], [], []>} : vector<17x16xbf16>, vector<17x16xbf16>, vector<17x17xf32> -> vector<17x17xf32>
    %cst_7 = arith.constant 2.500000e-01 : f32
    %33 = vector.broadcast %cst_7 : f32 to vector<17x17xf32>
    %34 = arith.mulf %32, %33 : vector<17x17xf32>
    %cst_8 = arith.constant dense<0xFF800000> : vector<17xf32>
    %35 = vector.multi_reduction <maximumf>, %34, %cst_8 [1] : vector<17x17xf32> to vector<17xf32>
    %36 = vector.shape_cast %35 : vector<17xf32> to vector<17x1xf32>
    %37 = vector.broadcast %36 : vector<17x1xf32> to vector<17x17xf32>
    %38 = arith.subf %34, %37 : vector<17x17xf32>
    %39 = math.exp %38 : vector<17x17xf32>
    %cst_9 = arith.constant dense<0.000000e+00> : vector<17xf32>
    %40 = vector.multi_reduction <add>, %39, %cst_9 [1] : vector<17x17xf32> to vector<17xf32>
    %41 = vector.shape_cast %40 : vector<17xf32> to vector<17x1xf32>
    %42 = tpu.reciprocal %41 {approx = true} : vector<17x1xf32> -> vector<17x1xf32>
    %43 = vector.broadcast %42 : vector<17x1xf32> to vector<17x17xf32>
    %44 = arith.mulf %39, %43 : vector<17x17xf32>
    %45 = arith.truncf %44 : vector<17x17xf32> to vector<17x17xbf16>
    %cst_10 = arith.constant dense<0.000000e+00> : vector<17x16xf32>
    %46 = tpu.matmul %45, %31, %cst_10 {dimension_numbers = #tpu.dot_dimension_numbers<[1], [0], [0], [1], [0, 0, 1, 1], [], []>} : vector<17x17xbf16>, vector<17x16xbf16>, vector<17x16xf32> -> vector<17x16xf32>
    %47 = tpu.concatenate %25, %46 in 1 : vector<17x16xf32>, vector<17x16xf32> -> vector<17x32xf32>
    %c0_11 = arith.constant 0 : index
    %c0_12 = arith.constant 0 : index
    %c0_13 = arith.constant 0 : index
    %48 = vector.load %arg2[%c0_11, %c0_12, %c0_13] : memref<1x17x32xf32, #tpu.memory_space<vmem>>, vector<1x17x32xf32>
    %49 = vector.shape_cast %48 : vector<1x17x32xf32> to vector<17x32xf32>
    %50 = vector.shape_cast %47 : vector<17x32xf32> to vector<1x17x32xf32>
    tpu.vector_store %arg2[%c0_11, %c0_12, %c0_13], %50 {strides = array<i32>} : memref<1x17x32xf32, #tpu.memory_space<vmem>>, vector<1x17x32xf32>,
    return
  }
  func.func @transform_0(%arg0: i32) -> (i32, i32, i32) {
    %c0_i32 = arith.constant 0 : i32
    %c0_i32_0 = arith.constant 0 : i32
    %c0_i32_1 = arith.constant 0 : i32
    return %arg0, %c0_i32, %c0_i32_0 : i32, i32, i32
  }
  func.func @transform_1(%arg0: i32) -> (i32, i32, i32) {
    %c0_i32 = arith.constant 0 : i32
    %c0_i32_0 = arith.constant 0 : i32
    %c0_i32_1 = arith.constant 0 : i32
    return %arg0, %c0_i32, %c0_i32_0 : i32, i32, i32
  }
}

module attributes {stable_mosaic.version = 11 : i64} {
  func.func @kernel(%arg0: i32, %arg1: i32, %arg2: i32, %arg3: memref<24x64xf32, #tpu.memory_space<vmem>>, %arg4: memref<64x32xf32, #tpu.memory_space<vmem>>, %arg5: memref<1x32xf32, #tpu.memory_space<vmem>>, %arg6: memref<24x32xf32, #tpu.memory_space<vmem>>, %arg7: memref<24x32xf32, #tpu.memory_space<vmem>>) attributes {dimension_semantics = [#tpu.dimension_semantics<parallel>, #tpu.dimension_semantics<parallel>, #tpu.dimension_semantics<arbitrary>], iteration_bounds = array<i64: 2, 1, 1>, scalar_prefetch = 0 : i64, scratch_operands = 0 : i64, tpu.core_type = #tpu.core_type<tc>, window_params = [{transform_indices = @transform_0, window_bounds = array<i64: 24, 64>}, {transform_indices = @transform_1, window_bounds = array<i64: 64, 32>}, {transform_indices = @transform_2, window_bounds = array<i64: 1, 32>}, {transform_indices = @transform_3, window_bounds = array<i64: 24, 32>}, {transform_indices = @transform_4, window_bounds = array<i64: 24, 32>}]} {
    %c0_i32 = arith.constant 0 : i32
    %0 = arith.cmpi eq, %arg2, %c0_i32 : i32
    %1 = arith.extui %0 : i1 to i32
    %c0_i32_0 = arith.constant 0 : i32
    %2 = arith.cmpi ne, %1, %c0_i32_0 : i32
    scf.if %2 {
      %cst_10 = arith.constant 0.000000e+00 : f32
      %14 = vector.broadcast %cst_10 : f32 to vector<24x32xf32>
      %c0_11 = arith.constant 0 : index
      %c0_12 = arith.constant 0 : index
      %15 = vector.load %arg7[%c0_11, %c0_12] : memref<24x32xf32, #tpu.memory_space<vmem>>, vector<24x32xf32>
      tpu.vector_store %arg7[%c0_11, %c0_12], %14 {strides = array<i32>} : memref<24x32xf32, #tpu.memory_space<vmem>>, vector<24x32xf32>,
    } else {
    }
    %c0 = arith.constant 0 : index
    %c0_1 = arith.constant 0 : index
    %3 = vector.load %arg3[%c0, %c0_1] : memref<24x64xf32, #tpu.memory_space<vmem>>, vector<24x64xf32>
    %4 = arith.truncf %3 : vector<24x64xf32> to vector<24x64xbf16>
    %c0_2 = arith.constant 0 : index
    %c0_3 = arith.constant 0 : index
    %5 = vector.load %arg7[%c0_2, %c0_3] : memref<24x32xf32, #tpu.memory_space<vmem>>, vector<24x32xf32>
    %c0_4 = arith.constant 0 : index
    %c0_5 = arith.constant 0 : index
    %6 = vector.load %arg4[%c0_4, %c0_5] : memref<64x32xf32, #tpu.memory_space<vmem>>, vector<64x32xf32>
    %7 = arith.truncf %6 : vector<64x32xf32> to vector<64x32xbf16>
    %cst = arith.constant dense<0.000000e+00> : vector<24x32xf32>
    %8 = tpu.matmul %4, %7, %cst {dimension_numbers = #tpu.dot_dimension_numbers<[1], [0], [0], [1], [0, 0, 1, 1], [], []>} : vector<24x64xbf16>, vector<64x32xbf16>, vector<24x32xf32> -> vector<24x32xf32>
    %9 = arith.addf %5, %8 : vector<24x32xf32>
    %c0_6 = arith.constant 0 : index
    %c0_7 = arith.constant 0 : index
    %10 = vector.load %arg7[%c0_6, %c0_7] : memref<24x32xf32, #tpu.memory_space<vmem>>, vector<24x32xf32>
    tpu.vector_store %arg7[%c0_6, %c0_7], %9 {strides = array<i32>} : memref<24x32xf32, #tpu.memory_space<vmem>>, vector<24x32xf32>,
    %c0_i32_8 = arith.constant 0 : i32
    %11 = arith.cmpi eq, %arg2, %c0_i32_8 : i32
    %12 = arith.extui %11 : i1 to i32
    %c0_i32_9 = arith.constant 0 : i32
    %13 = arith.cmpi ne, %12, %c0_i32_9 : i32
    scf.if %13 {
      %c0_10 = arith.constant 0 : index
      %c0_11 = arith.constant 0 : index
      %14 = vector.load %arg7[%c0_10, %c0_11] : memref<24x32xf32, #tpu.memory_space<vmem>>, vector<24x32xf32>
      %c0_12 = arith.constant 0 : index
      %c0_13 = arith.constant 0 : index
      %15 = vector.load %arg5[%c0_12, %c0_13] : memref<1x32xf32, #tpu.memory_space<vmem>>, vector<1x32xf32>
      %16 = vector.broadcast %15 : vector<1x32xf32> to vector<24x32xf32>
      %17 = arith.addf %14, %16 : vector<24x32xf32>
      %c0_14 = arith.constant 0 : index
      %c0_15 = arith.constant 0 : index
      %18 = vector.load %arg6[%c0_14, %c0_15] : memref<24x32xf32, #tpu.memory_space<vmem>>, vector<24x32xf32>
      %19 = arith.addf %17, %18 : vector<24x32xf32>
      %c0_16 = arith.constant 0 : index
      %c0_17 = arith.constant 0 : index
      %20 = vector.load %arg7[%c0_16, %c0_17] : memref<24x32xf32, #tpu.memory_space<vmem>>, vector<24x32xf32>
      tpu.vector_store %arg7[%c0_16, %c0_17], %19 {strides = array<i32>} : memref<24x32xf32, #tpu.memory_space<vmem>>, vector<24x32xf32>,
    } else {
    }
    return
  }
  func.func @transform_0(%arg0: i32, %arg1: i32, %arg2: i32) -> (i32, i32) {
    %c0_i32 = arith.constant 0 : i32
    return %arg0, %arg2 : i32, i32
  }
  func.func @transform_1(%arg0: i32, %arg1: i32, %arg2: i32) -> (i32, i32) {
    %c0_i32 = arith.constant 0 : i32
    return %arg2, %arg1 : i32, i32
  }
  func.func @transform_2(%arg0: i32, %arg1: i32, %arg2: i32) -> (i32, i32) {
    %c0_i32 = arith.constant 0 : i32
    %c0_i32_0 = arith.constant 0 : i32
    return %c0_i32, %arg1 : i32, i32
  }
  func.func @transform_3(%arg0: i32, %arg1: i32, %arg2: i32) -> (i32, i32) {
    %c0_i32 = arith.constant 0 : i32
    return %arg0, %arg1 : i32, i32
  }
  func.func @transform_4(%arg0: i32, %arg1: i32, %arg2: i32) -> (i32, i32) {
    %c0_i32 = arith.constant 0 : i32
    return %arg0, %arg1 : i32, i32
  }
}

module attributes {stable_mosaic.version = 11 : i64} {
  func.func @kernel(%arg0: i32, %arg1: i32, %arg2: i32, %arg3: memref<16x64xf32, #tpu.memory_space<vmem>>, %arg4: memref<64x96xf32, #tpu.memory_space<vmem>>, %arg5: memref<1x96xf32, #tpu.memory_space<vmem>>, %arg6: memref<1x64xf32, #tpu.memory_space<vmem>>, %arg7: memref<1x64xf32, #tpu.memory_space<vmem>>, %arg8: memref<16x96xf32, #tpu.memory_space<vmem>>) attributes {dimension_semantics = [#tpu.dimension_semantics<parallel>, #tpu.dimension_semantics<parallel>, #tpu.dimension_semantics<arbitrary>], iteration_bounds = array<i64: 2, 1, 1>, scalar_prefetch = 0 : i64, scratch_operands = 0 : i64, tpu.core_type = #tpu.core_type<tc>, window_params = [{transform_indices = @transform_0, window_bounds = array<i64: 16, 64>}, {transform_indices = @transform_1, window_bounds = array<i64: 64, 96>}, {transform_indices = @transform_2, window_bounds = array<i64: 1, 96>}, {transform_indices = @transform_3, window_bounds = array<i64: 1, 64>}, {transform_indices = @transform_4, window_bounds = array<i64: 1, 64>}, {transform_indices = @transform_5, window_bounds = array<i64: 16, 96>}]} {
    %c0_i32 = arith.constant 0 : i32
    %0 = arith.cmpi eq, %arg2, %c0_i32 : i32
    %1 = arith.extui %0 : i1 to i32
    %c0_i32_0 = arith.constant 0 : i32
    %2 = arith.cmpi ne, %1, %c0_i32_0 : i32
    scf.if %2 {
      %cst_19 = arith.constant 0.000000e+00 : f32
      %36 = vector.broadcast %cst_19 : f32 to vector<16x96xf32>
      %c0_20 = arith.constant 0 : index
      %c0_21 = arith.constant 0 : index
      %37 = vector.load %arg8[%c0_20, %c0_21] : memref<16x96xf32, #tpu.memory_space<vmem>>, vector<16x96xf32>
      tpu.vector_store %arg8[%c0_20, %c0_21], %36 {strides = array<i32>} : memref<16x96xf32, #tpu.memory_space<vmem>>, vector<16x96xf32>,
    } else {
    }
    %c0 = arith.constant 0 : index
    %c0_1 = arith.constant 0 : index
    %3 = vector.load %arg3[%c0, %c0_1] : memref<16x64xf32, #tpu.memory_space<vmem>>, vector<16x64xf32>
    %c0_2 = arith.constant 0 : index
    %c0_3 = arith.constant 0 : index
    %4 = vector.load %arg6[%c0_2, %c0_3] : memref<1x64xf32, #tpu.memory_space<vmem>>, vector<1x64xf32>
    %c0_4 = arith.constant 0 : index
    %c0_5 = arith.constant 0 : index
    %5 = vector.load %arg7[%c0_4, %c0_5] : memref<1x64xf32, #tpu.memory_space<vmem>>, vector<1x64xf32>
    %cst = arith.constant dense<0.000000e+00> : vector<16xf32>
    %6 = vector.multi_reduction <add>, %3, %cst [1] : vector<16x64xf32> to vector<16xf32>
    %7 = vector.shape_cast %6 : vector<16xf32> to vector<16x1xf32>
    %cst_6 = arith.constant 6.400000e+01 : f32
    %8 = vector.broadcast %cst_6 : f32 to vector<16x1xf32>
    %9 = arith.divf %7, %8 : vector<16x1xf32>
    %10 = vector.broadcast %9 : vector<16x1xf32> to vector<16x64xf32>
    %11 = arith.subf %3, %10 : vector<16x64xf32>
    %12 = arith.mulf %11, %11 : vector<16x64xf32>
    %cst_7 = arith.constant dense<0.000000e+00> : vector<16xf32>
    %13 = vector.multi_reduction <add>, %12, %cst_7 [1] : vector<16x64xf32> to vector<16xf32>
    %14 = vector.shape_cast %13 : vector<16xf32> to vector<16x1xf32>
    %cst_8 = arith.constant 6.400000e+01 : f32
    %15 = vector.broadcast %cst_8 : f32 to vector<16x1xf32>
    %16 = arith.divf %14, %15 : vector<16x1xf32>
    %cst_9 = arith.constant 9.99999974E-6 : f32
    %17 = vector.broadcast %cst_9 : f32 to vector<16x1xf32>
    %18 = arith.addf %16, %17 : vector<16x1xf32>
    %19 = math.rsqrt %18 : vector<16x1xf32>
    %20 = vector.broadcast %19 : vector<16x1xf32> to vector<16x64xf32>
    %21 = arith.mulf %11, %20 : vector<16x64xf32>
    %22 = vector.broadcast %4 : vector<1x64xf32> to vector<16x64xf32>
    %23 = arith.mulf %21, %22 : vector<16x64xf32>
    %24 = vector.broadcast %5 : vector<1x64xf32> to vector<16x64xf32>
    %25 = arith.addf %23, %24 : vector<16x64xf32>
    %26 = arith.truncf %25 : vector<16x64xf32> to vector<16x64xbf16>
    %c0_10 = arith.constant 0 : index
    %c0_11 = arith.constant 0 : index
    %27 = vector.load %arg8[%c0_10, %c0_11] : memref<16x96xf32, #tpu.memory_space<vmem>>, vector<16x96xf32>
    %c0_12 = arith.constant 0 : index
    %c0_13 = arith.constant 0 : index
    %28 = vector.load %arg4[%c0_12, %c0_13] : memref<64x96xf32, #tpu.memory_space<vmem>>, vector<64x96xf32>
    %29 = arith.truncf %28 : vector<64x96xf32> to vector<64x96xbf16>
    %cst_14 = arith.constant dense<0.000000e+00> : vector<16x96xf32>
    %30 = tpu.matmul %26, %29, %cst_14 {dimension_numbers = #tpu.dot_dimension_numbers<[1], [0], [0], [1], [0, 0, 1, 1], [], []>} : vector<16x64xbf16>, vector<64x96xbf16>, vector<16x96xf32> -> vector<16x96xf32>
    %31 = arith.addf %27, %30 : vector<16x96xf32>
    %c0_15 = arith.constant 0 : index
    %c0_16 = arith.constant 0 : index
    %32 = vector.load %arg8[%c0_15, %c0_16] : memref<16x96xf32, #tpu.memory_space<vmem>>, vector<16x96xf32>
    tpu.vector_store %arg8[%c0_15, %c0_16], %31 {strides = array<i32>} : memref<16x96xf32, #tpu.memory_space<vmem>>, vector<16x96xf32>,
    %c0_i32_17 = arith.constant 0 : i32
    %33 = arith.cmpi eq, %arg2, %c0_i32_17 : i32
    %34 = arith.extui %33 : i1 to i32
    %c0_i32_18 = arith.constant 0 : i32
    %35 = arith.cmpi ne, %34, %c0_i32_18 : i32
    scf.if %35 {
      %c0_19 = arith.constant 0 : index
      %c0_20 = arith.constant 0 : index
      %36 = vector.load %arg8[%c0_19, %c0_20] : memref<16x96xf32, #tpu.memory_space<vmem>>, vector<16x96xf32>
      %c0_21 = arith.constant 0 : index
      %c0_22 = arith.constant 0 : index
      %37 = vector.load %arg5[%c0_21, %c0_22] : memref<1x96xf32, #tpu.memory_space<vmem>>, vector<1x96xf32>
      %38 = vector.broadcast %37 : vector<1x96xf32> to vector<16x96xf32>
      %39 = arith.addf %36, %38 : vector<16x96xf32>
      %c0_23 = arith.constant 0 : index
      %c0_24 = arith.constant 0 : index
      %40 = vector.load %arg8[%c0_23, %c0_24] : memref<16x96xf32, #tpu.memory_space<vmem>>, vector<16x96xf32>
      tpu.vector_store %arg8[%c0_23, %c0_24], %39 {strides = array<i32>} : memref<16x96xf32, #tpu.memory_space<vmem>>, vector<16x96xf32>,
    } else {
    }
    return
  }
  func.func @transform_0(%arg0: i32, %arg1: i32, %arg2: i32) -> (i32, i32) {
    %c0_i32 = arith.constant 0 : i32
    return %arg0, %arg2 : i32, i32
  }
  func.func @transform_1(%arg0: i32, %arg1: i32, %arg2: i32) -> (i32, i32) {
    %c0_i32 = arith.constant 0 : i32
    return %arg2, %arg1 : i32, i32
  }
  func.func @transform_2(%arg0: i32, %arg1: i32, %arg2: i32) -> (i32, i32) {
    %c0_i32 = arith.constant 0 : i32
    %c0_i32_0 = arith.constant 0 : i32
    return %c0_i32, %arg1 : i32, i32
  }
  func.func @transform_3(%arg0: i32, %arg1: i32, %arg2: i32) -> (i32, i32) {
    %c0_i32 = arith.constant 0 : i32
    %c0_i32_0 = arith.constant 0 : i32
    return %c0_i32, %arg2 : i32, i32
  }
  func.func @transform_4(%arg0: i32, %arg1: i32, %arg2: i32) -> (i32, i32) {
    %c0_i32 = arith.constant 0 : i32
    %c0_i32_0 = arith.constant 0 : i32
    return %c0_i32, %arg2 : i32, i32
  }
  func.func @transform_5(%arg0: i32, %arg1: i32, %arg2: i32) -> (i32, i32) {
    %c0_i32 = arith.constant 0 : i32
    return %arg0, %arg1 : i32, i32
  }
}

module attributes {stable_mosaic.version = 11 : i64} {
  func.func @_attn_self_kernel(%arg0: i32, %arg1: memref<1x9x96xf32, #tpu.memory_space<vmem>>, %arg2: memref<1x9x32xf32, #tpu.memory_space<vmem>>) attributes {dimension_semantics = [#tpu.dimension_semantics<parallel>], iteration_bounds = array<i64: 2>, scalar_prefetch = 0 : i64, scratch_operands = 0 : i64, tpu.core_type = #tpu.core_type<tc>, window_params = [{transform_indices = @transform_0, window_bounds = array<i64: 1, 9, 96>}, {transform_indices = @transform_1, window_bounds = array<i64: 1, 9, 32>}]} {
    %c0 = arith.constant 0 : index
    %c0_0 = arith.constant 0 : index
    %c0_1 = arith.constant 0 : index
    %0 = vector.load %arg1[%c0, %c0_0, %c0_1] : memref<1x9x96xf32, #tpu.memory_space<vmem>>, vector<1x9x96xf32>
    %1 = vector.shape_cast %0 : vector<1x9x96xf32> to vector<9x96xf32>
    %2 = vector.extract_strided_slice %1 {offsets = [0, 0], sizes = [9, 32], strides = [1, 1]} : vector<9x96xf32> to vector<9x32xf32>
    %3 = vector.extract_strided_slice %1 {offsets = [0, 32], sizes = [9, 32], strides = [1, 1]} : vector<9x96xf32> to vector<9x32xf32>
    %4 = vector.extract_strided_slice %1 {offsets = [0, 64], sizes = [9, 32], strides = [1, 1]} : vector<9x96xf32> to vector<9x32xf32>
    %5 = vector.extract_strided_slice %2 {offsets = [0, 0], sizes = [9, 16], strides = [1, 1]} : vector<9x32xf32> to vector<9x16xf32>
    %6 = arith.truncf %5 : vector<9x16xf32> to vector<9x16xbf16>
    %7 = vector.extract_strided_slice %3 {offsets = [0, 0], sizes = [9, 16], strides = [1, 1]} : vector<9x32xf32> to vector<9x16xf32>
    %8 = arith.truncf %7 : vector<9x16xf32> to vector<9x16xbf16>
    %9 = vector.extract_strided_slice %4 {offsets = [0, 0], sizes = [9, 16], strides = [1, 1]} : vector<9x32xf32> to vector<9x16xf32>
    %10 = arith.truncf %9 : vector<9x16xf32> to vector<9x16xbf16>
    %cst = arith.constant dense<0.000000e+00> : vector<9x9xf32>
    %11 = tpu.matmul %6, %8, %cst {dimension_numbers = #tpu.dot_dimension_numbers<[1], [1], [0], [0], [0, 0, 1, 0], [], []>} : vector<9x16xbf16>, vector<9x16xbf16>, vector<9x9xf32> -> vector<9x9xf32>
    %cst_2 = arith.constant 2.500000e-01 : f32
    %12 = vector.broadcast %cst_2 : f32 to vector<9x9xf32>
    %13 = arith.mulf %11, %12 : vector<9x9xf32>
    %cst_3 = arith.constant dense<0xFF800000> : vector<9xf32>
    %14 = vector.multi_reduction <maximumf>, %13, %cst_3 [1] : vector<9x9xf32> to vector<9xf32>
    %15 = vector.shape_cast %14 : vector<9xf32> to vector<9x1xf32>
    %16 = vector.broadcast %15 : vector<9x1xf32> to vector<9x9xf32>
    %17 = arith.subf %13, %16 : vector<9x9xf32>
    %18 = math.exp %17 : vector<9x9xf32>
    %cst_4 = arith.constant dense<0.000000e+00> : vector<9xf32>
    %19 = vector.multi_reduction <add>, %18, %cst_4 [1] : vector<9x9xf32> to vector<9xf32>
    %20 = vector.shape_cast %19 : vector<9xf32> to vector<9x1xf32>
    %21 = tpu.reciprocal %20 {approx = true} : vector<9x1xf32> -> vector<9x1xf32>
    %22 = vector.broadcast %21 : vector<9x1xf32> to vector<9x9xf32>
    %23 = arith.mulf %18, %22 : vector<9x9xf32>
    %24 = arith.truncf %23 : vector<9x9xf32> to vector<9x9xbf16>
    %cst_5 = arith.constant dense<0.000000e+00> : vector<9x16xf32>
    %25 = tpu.matmul %24, %10, %cst_5 {dimension_numbers = #tpu.dot_dimension_numbers<[1], [0], [0], [1], [0, 0, 1, 1], [], []>} : vector<9x9xbf16>, vector<9x16xbf16>, vector<9x16xf32> -> vector<9x16xf32>
    %26 = vector.extract_strided_slice %2 {offsets = [0, 16], sizes = [9, 16], strides = [1, 1]} : vector<9x32xf32> to vector<9x16xf32>
    %27 = arith.truncf %26 : vector<9x16xf32> to vector<9x16xbf16>
    %28 = vector.extract_strided_slice %3 {offsets = [0, 16], sizes = [9, 16], strides = [1, 1]} : vector<9x32xf32> to vector<9x16xf32>
    %29 = arith.truncf %28 : vector<9x16xf32> to vector<9x16xbf16>
    %30 = vector.extract_strided_slice %4 {offsets = [0, 16], sizes = [9, 16], strides = [1, 1]} : vector<9x32xf32> to vector<9x16xf32>
    %31 = arith.truncf %30 : vector<9x16xf32> to vector<9x16xbf16>
    %cst_6 = arith.constant dense<0.000000e+00> : vector<9x9xf32>
    %32 = tpu.matmul %27, %29, %cst_6 {dimension_numbers = #tpu.dot_dimension_numbers<[1], [1], [0], [0], [0, 0, 1, 0], [], []>} : vector<9x16xbf16>, vector<9x16xbf16>, vector<9x9xf32> -> vector<9x9xf32>
    %cst_7 = arith.constant 2.500000e-01 : f32
    %33 = vector.broadcast %cst_7 : f32 to vector<9x9xf32>
    %34 = arith.mulf %32, %33 : vector<9x9xf32>
    %cst_8 = arith.constant dense<0xFF800000> : vector<9xf32>
    %35 = vector.multi_reduction <maximumf>, %34, %cst_8 [1] : vector<9x9xf32> to vector<9xf32>
    %36 = vector.shape_cast %35 : vector<9xf32> to vector<9x1xf32>
    %37 = vector.broadcast %36 : vector<9x1xf32> to vector<9x9xf32>
    %38 = arith.subf %34, %37 : vector<9x9xf32>
    %39 = math.exp %38 : vector<9x9xf32>
    %cst_9 = arith.constant dense<0.000000e+00> : vector<9xf32>
    %40 = vector.multi_reduction <add>, %39, %cst_9 [1] : vector<9x9xf32> to vector<9xf32>
    %41 = vector.shape_cast %40 : vector<9xf32> to vector<9x1xf32>
    %42 = tpu.reciprocal %41 {approx = true} : vector<9x1xf32> -> vector<9x1xf32>
    %43 = vector.broadcast %42 : vector<9x1xf32> to vector<9x9xf32>
    %44 = arith.mulf %39, %43 : vector<9x9xf32>
    %45 = arith.truncf %44 : vector<9x9xf32> to vector<9x9xbf16>
    %cst_10 = arith.constant dense<0.000000e+00> : vector<9x16xf32>
    %46 = tpu.matmul %45, %31, %cst_10 {dimension_numbers = #tpu.dot_dimension_numbers<[1], [0], [0], [1], [0, 0, 1, 1], [], []>} : vector<9x9xbf16>, vector<9x16xbf16>, vector<9x16xf32> -> vector<9x16xf32>
    %47 = tpu.concatenate %25, %46 in 1 : vector<9x16xf32>, vector<9x16xf32> -> vector<9x32xf32>
    %c0_11 = arith.constant 0 : index
    %c0_12 = arith.constant 0 : index
    %c0_13 = arith.constant 0 : index
    %48 = vector.load %arg2[%c0_11, %c0_12, %c0_13] : memref<1x9x32xf32, #tpu.memory_space<vmem>>, vector<1x9x32xf32>
    %49 = vector.shape_cast %48 : vector<1x9x32xf32> to vector<9x32xf32>
    %50 = vector.shape_cast %47 : vector<9x32xf32> to vector<1x9x32xf32>
    tpu.vector_store %arg2[%c0_11, %c0_12, %c0_13], %50 {strides = array<i32>} : memref<1x9x32xf32, #tpu.memory_space<vmem>>, vector<1x9x32xf32>,
    return
  }
  func.func @transform_0(%arg0: i32) -> (i32, i32, i32) {
    %c0_i32 = arith.constant 0 : i32
    %c0_i32_0 = arith.constant 0 : i32
    %c0_i32_1 = arith.constant 0 : i32
    return %arg0, %c0_i32, %c0_i32_0 : i32, i32, i32
  }
  func.func @transform_1(%arg0: i32) -> (i32, i32, i32) {
    %c0_i32 = arith.constant 0 : i32
    %c0_i32_0 = arith.constant 0 : i32
    %c0_i32_1 = arith.constant 0 : i32
    return %arg0, %c0_i32, %c0_i32_0 : i32, i32, i32
  }
}

module attributes {stable_mosaic.version = 11 : i64} {
  func.func @kernel(%arg0: i32, %arg1: i32, %arg2: i32, %arg3: memref<16x32xf32, #tpu.memory_space<vmem>>, %arg4: memref<32x64xf32, #tpu.memory_space<vmem>>, %arg5: memref<1x64xf32, #tpu.memory_space<vmem>>, %arg6: memref<16x64xf32, #tpu.memory_space<vmem>>, %arg7: memref<16x64xf32, #tpu.memory_space<vmem>>) attributes {dimension_semantics = [#tpu.dimension_semantics<parallel>, #tpu.dimension_semantics<parallel>, #tpu.dimension_semantics<arbitrary>], iteration_bounds = array<i64: 2, 1, 1>, scalar_prefetch = 0 : i64, scratch_operands = 0 : i64, tpu.core_type = #tpu.core_type<tc>, window_params = [{transform_indices = @transform_0, window_bounds = array<i64: 16, 32>}, {transform_indices = @transform_1, window_bounds = array<i64: 32, 64>}, {transform_indices = @transform_2, window_bounds = array<i64: 1, 64>}, {transform_indices = @transform_3, window_bounds = array<i64: 16, 64>}, {transform_indices = @transform_4, window_bounds = array<i64: 16, 64>}]} {
    %c0_i32 = arith.constant 0 : i32
    %0 = arith.cmpi eq, %arg2, %c0_i32 : i32
    %1 = arith.extui %0 : i1 to i32
    %c0_i32_0 = arith.constant 0 : i32
    %2 = arith.cmpi ne, %1, %c0_i32_0 : i32
    scf.if %2 {
      %cst_10 = arith.constant 0.000000e+00 : f32
      %14 = vector.broadcast %cst_10 : f32 to vector<16x64xf32>
      %c0_11 = arith.constant 0 : index
      %c0_12 = arith.constant 0 : index
      %15 = vector.load %arg7[%c0_11, %c0_12] : memref<16x64xf32, #tpu.memory_space<vmem>>, vector<16x64xf32>
      tpu.vector_store %arg7[%c0_11, %c0_12], %14 {strides = array<i32>} : memref<16x64xf32, #tpu.memory_space<vmem>>, vector<16x64xf32>,
    } else {
    }
    %c0 = arith.constant 0 : index
    %c0_1 = arith.constant 0 : index
    %3 = vector.load %arg3[%c0, %c0_1] : memref<16x32xf32, #tpu.memory_space<vmem>>, vector<16x32xf32>
    %4 = arith.truncf %3 : vector<16x32xf32> to vector<16x32xbf16>
    %c0_2 = arith.constant 0 : index
    %c0_3 = arith.constant 0 : index
    %5 = vector.load %arg7[%c0_2, %c0_3] : memref<16x64xf32, #tpu.memory_space<vmem>>, vector<16x64xf32>
    %c0_4 = arith.constant 0 : index
    %c0_5 = arith.constant 0 : index
    %6 = vector.load %arg4[%c0_4, %c0_5] : memref<32x64xf32, #tpu.memory_space<vmem>>, vector<32x64xf32>
    %7 = arith.truncf %6 : vector<32x64xf32> to vector<32x64xbf16>
    %cst = arith.constant dense<0.000000e+00> : vector<16x64xf32>
    %8 = tpu.matmul %4, %7, %cst {dimension_numbers = #tpu.dot_dimension_numbers<[1], [0], [0], [1], [0, 0, 1, 1], [], []>} : vector<16x32xbf16>, vector<32x64xbf16>, vector<16x64xf32> -> vector<16x64xf32>
    %9 = arith.addf %5, %8 : vector<16x64xf32>
    %c0_6 = arith.constant 0 : index
    %c0_7 = arith.constant 0 : index
    %10 = vector.load %arg7[%c0_6, %c0_7] : memref<16x64xf32, #tpu.memory_space<vmem>>, vector<16x64xf32>
    tpu.vector_store %arg7[%c0_6, %c0_7], %9 {strides = array<i32>} : memref<16x64xf32, #tpu.memory_space<vmem>>, vector<16x64xf32>,
    %c0_i32_8 = arith.constant 0 : i32
    %11 = arith.cmpi eq, %arg2, %c0_i32_8 : i32
    %12 = arith.extui %11 : i1 to i32
    %c0_i32_9 = arith.constant 0 : i32
    %13 = arith.cmpi ne, %12, %c0_i32_9 : i32
    scf.if %13 {
      %c0_10 = arith.constant 0 : index
      %c0_11 = arith.constant 0 : index
      %14 = vector.load %arg7[%c0_10, %c0_11] : memref<16x64xf32, #tpu.memory_space<vmem>>, vector<16x64xf32>
      %c0_12 = arith.constant 0 : index
      %c0_13 = arith.constant 0 : index
      %15 = vector.load %arg5[%c0_12, %c0_13] : memref<1x64xf32, #tpu.memory_space<vmem>>, vector<1x64xf32>
      %16 = vector.broadcast %15 : vector<1x64xf32> to vector<16x64xf32>
      %17 = arith.addf %14, %16 : vector<16x64xf32>
      %c0_14 = arith.constant 0 : index
      %c0_15 = arith.constant 0 : index
      %18 = vector.load %arg6[%c0_14, %c0_15] : memref<16x64xf32, #tpu.memory_space<vmem>>, vector<16x64xf32>
      %19 = arith.addf %17, %18 : vector<16x64xf32>
      %c0_16 = arith.constant 0 : index
      %c0_17 = arith.constant 0 : index
      %20 = vector.load %arg7[%c0_16, %c0_17] : memref<16x64xf32, #tpu.memory_space<vmem>>, vector<16x64xf32>
      tpu.vector_store %arg7[%c0_16, %c0_17], %19 {strides = array<i32>} : memref<16x64xf32, #tpu.memory_space<vmem>>, vector<16x64xf32>,
    } else {
    }
    return
  }
  func.func @transform_0(%arg0: i32, %arg1: i32, %arg2: i32) -> (i32, i32) {
    %c0_i32 = arith.constant 0 : i32
    return %arg0, %arg2 : i32, i32
  }
  func.func @transform_1(%arg0: i32, %arg1: i32, %arg2: i32) -> (i32, i32) {
    %c0_i32 = arith.constant 0 : i32
    return %arg2, %arg1 : i32, i32
  }
  func.func @transform_2(%arg0: i32, %arg1: i32, %arg2: i32) -> (i32, i32) {
    %c0_i32 = arith.constant 0 : i32
    %c0_i32_0 = arith.constant 0 : i32
    return %c0_i32, %arg1 : i32, i32
  }
  func.func @transform_3(%arg0: i32, %arg1: i32, %arg2: i32) -> (i32, i32) {
    %c0_i32 = arith.constant 0 : i32
    return %arg0, %arg1 : i32, i32
  }
  func.func @transform_4(%arg0: i32, %arg1: i32, %arg2: i32) -> (i32, i32) {
    %c0_i32 = arith.constant 0 : i32
    return %arg0, %arg1 : i32, i32
  }
}

module attributes {stable_mosaic.version = 11 : i64} {
  func.func @kernel(%arg0: i32, %arg1: i32, %arg2: i32, %arg3: memref<16x64xf32, #tpu.memory_space<vmem>>, %arg4: memref<64x64xf32, #tpu.memory_space<vmem>>, %arg5: memref<1x64xf32, #tpu.memory_space<vmem>>, %arg6: memref<16x64xf32, #tpu.memory_space<vmem>>, %arg7: memref<16x64xf32, #tpu.memory_space<vmem>>) attributes {dimension_semantics = [#tpu.dimension_semantics<parallel>, #tpu.dimension_semantics<parallel>, #tpu.dimension_semantics<arbitrary>], iteration_bounds = array<i64: 2, 1, 1>, scalar_prefetch = 0 : i64, scratch_operands = 0 : i64, tpu.core_type = #tpu.core_type<tc>, window_params = [{transform_indices = @transform_0, window_bounds = array<i64: 16, 64>}, {transform_indices = @transform_1, window_bounds = array<i64: 64, 64>}, {transform_indices = @transform_2, window_bounds = array<i64: 1, 64>}, {transform_indices = @transform_3, window_bounds = array<i64: 16, 64>}, {transform_indices = @transform_4, window_bounds = array<i64: 16, 64>}]} {
    %c0_i32 = arith.constant 0 : i32
    %0 = arith.cmpi eq, %arg2, %c0_i32 : i32
    %1 = arith.extui %0 : i1 to i32
    %c0_i32_0 = arith.constant 0 : i32
    %2 = arith.cmpi ne, %1, %c0_i32_0 : i32
    scf.if %2 {
      %cst_10 = arith.constant 0.000000e+00 : f32
      %14 = vector.broadcast %cst_10 : f32 to vector<16x64xf32>
      %c0_11 = arith.constant 0 : index
      %c0_12 = arith.constant 0 : index
      %15 = vector.load %arg7[%c0_11, %c0_12] : memref<16x64xf32, #tpu.memory_space<vmem>>, vector<16x64xf32>
      tpu.vector_store %arg7[%c0_11, %c0_12], %14 {strides = array<i32>} : memref<16x64xf32, #tpu.memory_space<vmem>>, vector<16x64xf32>,
    } else {
    }
    %c0 = arith.constant 0 : index
    %c0_1 = arith.constant 0 : index
    %3 = vector.load %arg3[%c0, %c0_1] : memref<16x64xf32, #tpu.memory_space<vmem>>, vector<16x64xf32>
    %4 = arith.truncf %3 : vector<16x64xf32> to vector<16x64xbf16>
    %c0_2 = arith.constant 0 : index
    %c0_3 = arith.constant 0 : index
    %5 = vector.load %arg7[%c0_2, %c0_3] : memref<16x64xf32, #tpu.memory_space<vmem>>, vector<16x64xf32>
    %c0_4 = arith.constant 0 : index
    %c0_5 = arith.constant 0 : index
    %6 = vector.load %arg4[%c0_4, %c0_5] : memref<64x64xf32, #tpu.memory_space<vmem>>, vector<64x64xf32>
    %7 = arith.truncf %6 : vector<64x64xf32> to vector<64x64xbf16>
    %cst = arith.constant dense<0.000000e+00> : vector<16x64xf32>
    %8 = tpu.matmul %4, %7, %cst {dimension_numbers = #tpu.dot_dimension_numbers<[1], [0], [0], [1], [0, 0, 1, 1], [], []>} : vector<16x64xbf16>, vector<64x64xbf16>, vector<16x64xf32> -> vector<16x64xf32>
    %9 = arith.addf %5, %8 : vector<16x64xf32>
    %c0_6 = arith.constant 0 : index
    %c0_7 = arith.constant 0 : index
    %10 = vector.load %arg7[%c0_6, %c0_7] : memref<16x64xf32, #tpu.memory_space<vmem>>, vector<16x64xf32>
    tpu.vector_store %arg7[%c0_6, %c0_7], %9 {strides = array<i32>} : memref<16x64xf32, #tpu.memory_space<vmem>>, vector<16x64xf32>,
    %c0_i32_8 = arith.constant 0 : i32
    %11 = arith.cmpi eq, %arg2, %c0_i32_8 : i32
    %12 = arith.extui %11 : i1 to i32
    %c0_i32_9 = arith.constant 0 : i32
    %13 = arith.cmpi ne, %12, %c0_i32_9 : i32
    scf.if %13 {
      %c0_10 = arith.constant 0 : index
      %c0_11 = arith.constant 0 : index
      %14 = vector.load %arg7[%c0_10, %c0_11] : memref<16x64xf32, #tpu.memory_space<vmem>>, vector<16x64xf32>
      %c0_12 = arith.constant 0 : index
      %c0_13 = arith.constant 0 : index
      %15 = vector.load %arg5[%c0_12, %c0_13] : memref<1x64xf32, #tpu.memory_space<vmem>>, vector<1x64xf32>
      %16 = vector.broadcast %15 : vector<1x64xf32> to vector<16x64xf32>
      %17 = arith.addf %14, %16 : vector<16x64xf32>
      %c0_14 = arith.constant 0 : index
      %c0_15 = arith.constant 0 : index
      %18 = vector.load %arg6[%c0_14, %c0_15] : memref<16x64xf32, #tpu.memory_space<vmem>>, vector<16x64xf32>
      %19 = arith.addf %17, %18 : vector<16x64xf32>
      %c0_16 = arith.constant 0 : index
      %c0_17 = arith.constant 0 : index
      %20 = vector.load %arg7[%c0_16, %c0_17] : memref<16x64xf32, #tpu.memory_space<vmem>>, vector<16x64xf32>
      tpu.vector_store %arg7[%c0_16, %c0_17], %19 {strides = array<i32>} : memref<16x64xf32, #tpu.memory_space<vmem>>, vector<16x64xf32>,
    } else {
    }
    return
  }
  func.func @transform_0(%arg0: i32, %arg1: i32, %arg2: i32) -> (i32, i32) {
    %c0_i32 = arith.constant 0 : i32
    return %arg0, %arg2 : i32, i32
  }
  func.func @transform_1(%arg0: i32, %arg1: i32, %arg2: i32) -> (i32, i32) {
    %c0_i32 = arith.constant 0 : i32
    return %arg2, %arg1 : i32, i32
  }
  func.func @transform_2(%arg0: i32, %arg1: i32, %arg2: i32) -> (i32, i32) {
    %c0_i32 = arith.constant 0 : i32
    %c0_i32_0 = arith.constant 0 : i32
    return %c0_i32, %arg1 : i32, i32
  }
  func.func @transform_3(%arg0: i32, %arg1: i32, %arg2: i32) -> (i32, i32) {
    %c0_i32 = arith.constant 0 : i32
    return %arg0, %arg1 : i32, i32
  }
  func.func @transform_4(%arg0: i32, %arg1: i32, %arg2: i32) -> (i32, i32) {
    %c0_i32 = arith.constant 0 : i32
    return %arg0, %arg1 : i32, i32
  }
}

module attributes {stable_mosaic.version = 11 : i64} {
  func.func @kernel(%arg0: i32, %arg1: i32, %arg2: i32, %arg3: memref<16x64xf32, #tpu.memory_space<vmem>>, %arg4: memref<64x64xf32, #tpu.memory_space<vmem>>, %arg5: memref<1x64xf32, #tpu.memory_space<vmem>>, %arg6: memref<1x64xf32, #tpu.memory_space<vmem>>, %arg7: memref<1x64xf32, #tpu.memory_space<vmem>>, %arg8: memref<16x64xf32, #tpu.memory_space<vmem>>) attributes {dimension_semantics = [#tpu.dimension_semantics<parallel>, #tpu.dimension_semantics<parallel>, #tpu.dimension_semantics<arbitrary>], iteration_bounds = array<i64: 2, 1, 1>, scalar_prefetch = 0 : i64, scratch_operands = 0 : i64, tpu.core_type = #tpu.core_type<tc>, window_params = [{transform_indices = @transform_0, window_bounds = array<i64: 16, 64>}, {transform_indices = @transform_1, window_bounds = array<i64: 64, 64>}, {transform_indices = @transform_2, window_bounds = array<i64: 1, 64>}, {transform_indices = @transform_3, window_bounds = array<i64: 1, 64>}, {transform_indices = @transform_4, window_bounds = array<i64: 1, 64>}, {transform_indices = @transform_5, window_bounds = array<i64: 16, 64>}]} {
    %c0_i32 = arith.constant 0 : i32
    %0 = arith.cmpi eq, %arg2, %c0_i32 : i32
    %1 = arith.extui %0 : i1 to i32
    %c0_i32_0 = arith.constant 0 : i32
    %2 = arith.cmpi ne, %1, %c0_i32_0 : i32
    scf.if %2 {
      %cst_19 = arith.constant 0.000000e+00 : f32
      %36 = vector.broadcast %cst_19 : f32 to vector<16x64xf32>
      %c0_20 = arith.constant 0 : index
      %c0_21 = arith.constant 0 : index
      %37 = vector.load %arg8[%c0_20, %c0_21] : memref<16x64xf32, #tpu.memory_space<vmem>>, vector<16x64xf32>
      tpu.vector_store %arg8[%c0_20, %c0_21], %36 {strides = array<i32>} : memref<16x64xf32, #tpu.memory_space<vmem>>, vector<16x64xf32>,
    } else {
    }
    %c0 = arith.constant 0 : index
    %c0_1 = arith.constant 0 : index
    %3 = vector.load %arg3[%c0, %c0_1] : memref<16x64xf32, #tpu.memory_space<vmem>>, vector<16x64xf32>
    %c0_2 = arith.constant 0 : index
    %c0_3 = arith.constant 0 : index
    %4 = vector.load %arg6[%c0_2, %c0_3] : memref<1x64xf32, #tpu.memory_space<vmem>>, vector<1x64xf32>
    %c0_4 = arith.constant 0 : index
    %c0_5 = arith.constant 0 : index
    %5 = vector.load %arg7[%c0_4, %c0_5] : memref<1x64xf32, #tpu.memory_space<vmem>>, vector<1x64xf32>
    %cst = arith.constant dense<0.000000e+00> : vector<16xf32>
    %6 = vector.multi_reduction <add>, %3, %cst [1] : vector<16x64xf32> to vector<16xf32>
    %7 = vector.shape_cast %6 : vector<16xf32> to vector<16x1xf32>
    %cst_6 = arith.constant 6.400000e+01 : f32
    %8 = vector.broadcast %cst_6 : f32 to vector<16x1xf32>
    %9 = arith.divf %7, %8 : vector<16x1xf32>
    %10 = vector.broadcast %9 : vector<16x1xf32> to vector<16x64xf32>
    %11 = arith.subf %3, %10 : vector<16x64xf32>
    %12 = arith.mulf %11, %11 : vector<16x64xf32>
    %cst_7 = arith.constant dense<0.000000e+00> : vector<16xf32>
    %13 = vector.multi_reduction <add>, %12, %cst_7 [1] : vector<16x64xf32> to vector<16xf32>
    %14 = vector.shape_cast %13 : vector<16xf32> to vector<16x1xf32>
    %cst_8 = arith.constant 6.400000e+01 : f32
    %15 = vector.broadcast %cst_8 : f32 to vector<16x1xf32>
    %16 = arith.divf %14, %15 : vector<16x1xf32>
    %cst_9 = arith.constant 9.99999974E-6 : f32
    %17 = vector.broadcast %cst_9 : f32 to vector<16x1xf32>
    %18 = arith.addf %16, %17 : vector<16x1xf32>
    %19 = math.rsqrt %18 : vector<16x1xf32>
    %20 = vector.broadcast %19 : vector<16x1xf32> to vector<16x64xf32>
    %21 = arith.mulf %11, %20 : vector<16x64xf32>
    %22 = vector.broadcast %4 : vector<1x64xf32> to vector<16x64xf32>
    %23 = arith.mulf %21, %22 : vector<16x64xf32>
    %24 = vector.broadcast %5 : vector<1x64xf32> to vector<16x64xf32>
    %25 = arith.addf %23, %24 : vector<16x64xf32>
    %26 = arith.truncf %25 : vector<16x64xf32> to vector<16x64xbf16>
    %c0_10 = arith.constant 0 : index
    %c0_11 = arith.constant 0 : index
    %27 = vector.load %arg8[%c0_10, %c0_11] : memref<16x64xf32, #tpu.memory_space<vmem>>, vector<16x64xf32>
    %c0_12 = arith.constant 0 : index
    %c0_13 = arith.constant 0 : index
    %28 = vector.load %arg4[%c0_12, %c0_13] : memref<64x64xf32, #tpu.memory_space<vmem>>, vector<64x64xf32>
    %29 = arith.truncf %28 : vector<64x64xf32> to vector<64x64xbf16>
    %cst_14 = arith.constant dense<0.000000e+00> : vector<16x64xf32>
    %30 = tpu.matmul %26, %29, %cst_14 {dimension_numbers = #tpu.dot_dimension_numbers<[1], [0], [0], [1], [0, 0, 1, 1], [], []>} : vector<16x64xbf16>, vector<64x64xbf16>, vector<16x64xf32> -> vector<16x64xf32>
    %31 = arith.addf %27, %30 : vector<16x64xf32>
    %c0_15 = arith.constant 0 : index
    %c0_16 = arith.constant 0 : index
    %32 = vector.load %arg8[%c0_15, %c0_16] : memref<16x64xf32, #tpu.memory_space<vmem>>, vector<16x64xf32>
    tpu.vector_store %arg8[%c0_15, %c0_16], %31 {strides = array<i32>} : memref<16x64xf32, #tpu.memory_space<vmem>>, vector<16x64xf32>,
    %c0_i32_17 = arith.constant 0 : i32
    %33 = arith.cmpi eq, %arg2, %c0_i32_17 : i32
    %34 = arith.extui %33 : i1 to i32
    %c0_i32_18 = arith.constant 0 : i32
    %35 = arith.cmpi ne, %34, %c0_i32_18 : i32
    scf.if %35 {
      %c0_19 = arith.constant 0 : index
      %c0_20 = arith.constant 0 : index
      %36 = vector.load %arg8[%c0_19, %c0_20] : memref<16x64xf32, #tpu.memory_space<vmem>>, vector<16x64xf32>
      %c0_21 = arith.constant 0 : index
      %c0_22 = arith.constant 0 : index
      %37 = vector.load %arg5[%c0_21, %c0_22] : memref<1x64xf32, #tpu.memory_space<vmem>>, vector<1x64xf32>
      %38 = vector.broadcast %37 : vector<1x64xf32> to vector<16x64xf32>
      %39 = arith.addf %36, %38 : vector<16x64xf32>
      %cst_23 = arith.constant 5.000000e-01 : f32
      %40 = vector.broadcast %cst_23 : f32 to vector<16x64xf32>
      %41 = arith.mulf %40, %39 : vector<16x64xf32>
      %cst_24 = arith.constant 4.471500e-02 : f32
      %42 = vector.broadcast %cst_24 : f32 to vector<16x64xf32>
      %43 = arith.mulf %42, %39 : vector<16x64xf32>
      %44 = arith.mulf %43, %39 : vector<16x64xf32>
      %45 = arith.mulf %44, %39 : vector<16x64xf32>
      %46 = arith.addf %39, %45 : vector<16x64xf32>
      %cst_25 = arith.constant 0.797884583 : f32
      %47 = vector.broadcast %cst_25 : f32 to vector<16x64xf32>
      %48 = arith.mulf %47, %46 : vector<16x64xf32>
      %49 = math.tanh %48 : vector<16x64xf32>
      %cst_26 = arith.constant 1.000000e+00 : f32
      %50 = vector.broadcast %cst_26 : f32 to vector<16x64xf32>
      %51 = arith.addf %50, %49 : vector<16x64xf32>
      %52 = arith.mulf %41, %51 : vector<16x64xf32>
      %c0_27 = arith.constant 0 : index
      %c0_28 = arith.constant 0 : index
      %53 = vector.load %arg8[%c0_27, %c0_28] : memref<16x64xf32, #tpu.memory_space<vmem>>, vector<16x64xf32>
      tpu.vector_store %arg8[%c0_27, %c0_28], %52 {strides = array<i32>} : memref<16x64xf32, #tpu.memory_space<vmem>>, vector<16x64xf32>,
    } else {
    }
    return
  }
  func.func @transform_0(%arg0: i32, %arg1: i32, %arg2: i32) -> (i32, i32) {
    %c0_i32 = arith.constant 0 : i32
    return %arg0, %arg2 : i32, i32
  }
  func.func @transform_1(%arg0: i32, %arg1: i32, %arg2: i32) -> (i32, i32) {
    %c0_i32 = arith.constant 0 : i32
    return %arg2, %arg1 : i32, i32
  }
  func.func @transform_2(%arg0: i32, %arg1: i32, %arg2: i32) -> (i32, i32) {
    %c0_i32 = arith.constant 0 : i32
    %c0_i32_0 = arith.constant 0 : i32
    return %c0_i32, %arg1 : i32, i32
  }
  func.func @transform_3(%arg0: i32, %arg1: i32, %arg2: i32) -> (i32, i32) {
    %c0_i32 = arith.constant 0 : i32
    %c0_i32_0 = arith.constant 0 : i32
    return %c0_i32, %arg2 : i32, i32
  }
  func.func @transform_4(%arg0: i32, %arg1: i32, %arg2: i32) -> (i32, i32) {
    %c0_i32 = arith.constant 0 : i32
    %c0_i32_0 = arith.constant 0 : i32
    return %c0_i32, %arg2 : i32, i32
  }
  func.func @transform_5(%arg0: i32, %arg1: i32, %arg2: i32) -> (i32, i32) {
    %c0_i32 = arith.constant 0 : i32
    return %arg0, %arg1 : i32, i32
  }
}

module attributes {stable_mosaic.version = 11 : i64} {
  func.func @kernel(%arg0: i32, %arg1: i32, %arg2: i32, %arg3: memref<16x64xf32, #tpu.memory_space<vmem>>, %arg4: memref<64x64xf32, #tpu.memory_space<vmem>>, %arg5: memref<1x64xf32, #tpu.memory_space<vmem>>, %arg6: memref<16x64xf32, #tpu.memory_space<vmem>>) attributes {dimension_semantics = [#tpu.dimension_semantics<parallel>, #tpu.dimension_semantics<parallel>, #tpu.dimension_semantics<arbitrary>], iteration_bounds = array<i64: 2, 1, 1>, scalar_prefetch = 0 : i64, scratch_operands = 0 : i64, tpu.core_type = #tpu.core_type<tc>, window_params = [{transform_indices = @transform_0, window_bounds = array<i64: 16, 64>}, {transform_indices = @transform_1, window_bounds = array<i64: 64, 64>}, {transform_indices = @transform_2, window_bounds = array<i64: 1, 64>}, {transform_indices = @transform_3, window_bounds = array<i64: 16, 64>}]} {
    %c0_i32 = arith.constant 0 : i32
    %0 = arith.cmpi eq, %arg2, %c0_i32 : i32
    %1 = arith.extui %0 : i1 to i32
    %c0_i32_0 = arith.constant 0 : i32
    %2 = arith.cmpi ne, %1, %c0_i32_0 : i32
    scf.if %2 {
      %cst_10 = arith.constant 0.000000e+00 : f32
      %14 = vector.broadcast %cst_10 : f32 to vector<16x64xf32>
      %c0_11 = arith.constant 0 : index
      %c0_12 = arith.constant 0 : index
      %15 = vector.load %arg6[%c0_11, %c0_12] : memref<16x64xf32, #tpu.memory_space<vmem>>, vector<16x64xf32>
      tpu.vector_store %arg6[%c0_11, %c0_12], %14 {strides = array<i32>} : memref<16x64xf32, #tpu.memory_space<vmem>>, vector<16x64xf32>,
    } else {
    }
    %c0 = arith.constant 0 : index
    %c0_1 = arith.constant 0 : index
    %3 = vector.load %arg3[%c0, %c0_1] : memref<16x64xf32, #tpu.memory_space<vmem>>, vector<16x64xf32>
    %4 = arith.truncf %3 : vector<16x64xf32> to vector<16x64xbf16>
    %c0_2 = arith.constant 0 : index
    %c0_3 = arith.constant 0 : index
    %5 = vector.load %arg6[%c0_2, %c0_3] : memref<16x64xf32, #tpu.memory_space<vmem>>, vector<16x64xf32>
    %c0_4 = arith.constant 0 : index
    %c0_5 = arith.constant 0 : index
    %6 = vector.load %arg4[%c0_4, %c0_5] : memref<64x64xf32, #tpu.memory_space<vmem>>, vector<64x64xf32>
    %7 = arith.truncf %6 : vector<64x64xf32> to vector<64x64xbf16>
    %cst = arith.constant dense<0.000000e+00> : vector<16x64xf32>
    %8 = tpu.matmul %4, %7, %cst {dimension_numbers = #tpu.dot_dimension_numbers<[1], [0], [0], [1], [0, 0, 1, 1], [], []>} : vector<16x64xbf16>, vector<64x64xbf16>, vector<16x64xf32> -> vector<16x64xf32>
    %9 = arith.addf %5, %8 : vector<16x64xf32>
    %c0_6 = arith.constant 0 : index
    %c0_7 = arith.constant 0 : index
    %10 = vector.load %arg6[%c0_6, %c0_7] : memref<16x64xf32, #tpu.memory_space<vmem>>, vector<16x64xf32>
    tpu.vector_store %arg6[%c0_6, %c0_7], %9 {strides = array<i32>} : memref<16x64xf32, #tpu.memory_space<vmem>>, vector<16x64xf32>,
    %c0_i32_8 = arith.constant 0 : i32
    %11 = arith.cmpi eq, %arg2, %c0_i32_8 : i32
    %12 = arith.extui %11 : i1 to i32
    %c0_i32_9 = arith.constant 0 : i32
    %13 = arith.cmpi ne, %12, %c0_i32_9 : i32
    scf.if %13 {
      %c0_10 = arith.constant 0 : index
      %c0_11 = arith.constant 0 : index
      %14 = vector.load %arg6[%c0_10, %c0_11] : memref<16x64xf32, #tpu.memory_space<vmem>>, vector<16x64xf32>
      %c0_12 = arith.constant 0 : index
      %c0_13 = arith.constant 0 : index
      %15 = vector.load %arg5[%c0_12, %c0_13] : memref<1x64xf32, #tpu.memory_space<vmem>>, vector<1x64xf32>
      %16 = vector.broadcast %15 : vector<1x64xf32> to vector<16x64xf32>
      %17 = arith.addf %14, %16 : vector<16x64xf32>
      %c0_14 = arith.constant 0 : index
      %c0_15 = arith.constant 0 : index
      %18 = vector.load %arg6[%c0_14, %c0_15] : memref<16x64xf32, #tpu.memory_space<vmem>>, vector<16x64xf32>
      tpu.vector_store %arg6[%c0_14, %c0_15], %17 {strides = array<i32>} : memref<16x64xf32, #tpu.memory_space<vmem>>, vector<16x64xf32>,
    } else {
    }
    return
  }
  func.func @transform_0(%arg0: i32, %arg1: i32, %arg2: i32) -> (i32, i32) {
    %c0_i32 = arith.constant 0 : i32
    return %arg0, %arg2 : i32, i32
  }
  func.func @transform_1(%arg0: i32, %arg1: i32, %arg2: i32) -> (i32, i32) {
    %c0_i32 = arith.constant 0 : i32
    return %arg2, %arg1 : i32, i32
  }
  func.func @transform_2(%arg0: i32, %arg1: i32, %arg2: i32) -> (i32, i32) {
    %c0_i32 = arith.constant 0 : i32
    %c0_i32_0 = arith.constant 0 : i32
    return %c0_i32, %arg1 : i32, i32
  }
  func.func @transform_3(%arg0: i32, %arg1: i32, %arg2: i32) -> (i32, i32) {
    %c0_i32 = arith.constant 0 : i32
    return %arg0, %arg1 : i32, i32
  }
}

module attributes {stable_mosaic.version = 11 : i64} {
  func.func @_attn_cross_kernel(%arg0: i32, %arg1: memref<1x1x32xf32, #tpu.memory_space<vmem>>, %arg2: memref<1x9x64xf32, #tpu.memory_space<vmem>>, %arg3: memref<1x1x32xf32, #tpu.memory_space<vmem>>) attributes {dimension_semantics = [#tpu.dimension_semantics<parallel>], iteration_bounds = array<i64: 2>, scalar_prefetch = 0 : i64, scratch_operands = 0 : i64, tpu.core_type = #tpu.core_type<tc>, window_params = [{transform_indices = @transform_0, window_bounds = array<i64: 1, 1, 32>}, {transform_indices = @transform_1, window_bounds = array<i64: 1, 9, 64>}, {transform_indices = @transform_2, window_bounds = array<i64: 1, 1, 32>}]} {
    %c0 = arith.constant 0 : index
    %c0_0 = arith.constant 0 : index
    %c0_1 = arith.constant 0 : index
    %0 = vector.load %arg2[%c0, %c0_0, %c0_1] : memref<1x9x64xf32, #tpu.memory_space<vmem>>, vector<1x9x64xf32>
    %1 = vector.shape_cast %0 : vector<1x9x64xf32> to vector<9x64xf32>
    %c0_2 = arith.constant 0 : index
    %c0_3 = arith.constant 0 : index
    %c0_4 = arith.constant 0 : index
    %2 = vector.load %arg1[%c0_2, %c0_3, %c0_4] : memref<1x1x32xf32, #tpu.memory_space<vmem>>, vector<1x1x32xf32>
    %3 = vector.shape_cast %2 : vector<1x1x32xf32> to vector<1x32xf32>
    %4 = vector.extract_strided_slice %1 {offsets = [0, 0], sizes = [9, 32], strides = [1, 1]} : vector<9x64xf32> to vector<9x32xf32>
    %5 = vector.extract_strided_slice %1 {offsets = [0, 32], sizes = [9, 32], strides = [1, 1]} : vector<9x64xf32> to vector<9x32xf32>
    %6 = vector.extract_strided_slice %3 {offsets = [0, 0], sizes = [1, 16], strides = [1, 1]} : vector<1x32xf32> to vector<1x16xf32>
    %7 = arith.truncf %6 : vector<1x16xf32> to vector<1x16xbf16>
    %8 = vector.extract_strided_slice %4 {offsets = [0, 0], sizes = [9, 16], strides = [1, 1]} : vector<9x32xf32> to vector<9x16xf32>
    %9 = arith.truncf %8 : vector<9x16xf32> to vector<9x16xbf16>
    %10 = vector.extract_strided_slice %5 {offsets = [0, 0], sizes = [9, 16], strides = [1, 1]} : vector<9x32xf32> to vector<9x16xf32>
    %11 = arith.truncf %10 : vector<9x16xf32> to vector<9x16xbf16>
    %cst = arith.constant dense<0.000000e+00> : vector<1x9xf32>
    %12 = tpu.matmul %7, %9, %cst {dimension_numbers = #tpu.dot_dimension_numbers<[1], [1], [0], [0], [0, 0, 1, 0], [], []>} : vector<1x16xbf16>, vector<9x16xbf16>, vector<1x9xf32> -> vector<1x9xf32>
    %cst_5 = arith.constant 2.500000e-01 : f32
    %13 = vector.broadcast %cst_5 : f32 to vector<1x9xf32>
    %14 = arith.mulf %12, %13 : vector<1x9xf32>
    %cst_6 = arith.constant dense<0xFF800000> : vector<1xf32>
    %15 = vector.multi_reduction <maximumf>, %14, %cst_6 [1] : vector<1x9xf32> to vector<1xf32>
    %16 = vector.shape_cast %15 : vector<1xf32> to vector<1x1xf32>
    %17 = vector.broadcast %16 : vector<1x1xf32> to vector<1x9xf32>
    %18 = arith.subf %14, %17 : vector<1x9xf32>
    %19 = math.exp %18 : vector<1x9xf32>
    %cst_7 = arith.constant dense<0.000000e+00> : vector<1xf32>
    %20 = vector.multi_reduction <add>, %19, %cst_7 [1] : vector<1x9xf32> to vector<1xf32>
    %21 = vector.shape_cast %20 : vector<1xf32> to vector<1x1xf32>
    %22 = tpu.reciprocal %21 {approx = true} : vector<1x1xf32> -> vector<1x1xf32>
    %23 = vector.broadcast %22 : vector<1x1xf32> to vector<1x9xf32>
    %24 = arith.mulf %19, %23 : vector<1x9xf32>
    %25 = arith.truncf %24 : vector<1x9xf32> to vector<1x9xbf16>
    %cst_8 = arith.constant dense<0.000000e+00> : vector<1x16xf32>
    %26 = tpu.matmul %25, %11, %cst_8 {dimension_numbers = #tpu.dot_dimension_numbers<[1], [0], [0], [1], [0, 0, 1, 1], [], []>} : vector<1x9xbf16>, vector<9x16xbf16>, vector<1x16xf32> -> vector<1x16xf32>
    %27 = vector.extract_strided_slice %3 {offsets = [0, 16], sizes = [1, 16], strides = [1, 1]} : vector<1x32xf32> to vector<1x16xf32>
    %28 = arith.truncf %27 : vector<1x16xf32> to vector<1x16xbf16>
    %29 = vector.extract_strided_slice %4 {offsets = [0, 16], sizes = [9, 16], strides = [1, 1]} : vector<9x32xf32> to vector<9x16xf32>
    %30 = arith.truncf %29 : vector<9x16xf32> to vector<9x16xbf16>
    %31 = vector.extract_strided_slice %5 {offsets = [0, 16], sizes = [9, 16], strides = [1, 1]} : vector<9x32xf32> to vector<9x16xf32>
    %32 = arith.truncf %31 : vector<9x16xf32> to vector<9x16xbf16>
    %cst_9 = arith.constant dense<0.000000e+00> : vector<1x9xf32>
    %33 = tpu.matmul %28, %30, %cst_9 {dimension_numbers = #tpu.dot_dimension_numbers<[1], [1], [0], [0], [0, 0, 1, 0], [], []>} : vector<1x16xbf16>, vector<9x16xbf16>, vector<1x9xf32> -> vector<1x9xf32>
    %cst_10 = arith.constant 2.500000e-01 : f32
    %34 = vector.broadcast %cst_10 : f32 to vector<1x9xf32>
    %35 = arith.mulf %33, %34 : vector<1x9xf32>
    %cst_11 = arith.constant dense<0xFF800000> : vector<1xf32>
    %36 = vector.multi_reduction <maximumf>, %35, %cst_11 [1] : vector<1x9xf32> to vector<1xf32>
    %37 = vector.shape_cast %36 : vector<1xf32> to vector<1x1xf32>
    %38 = vector.broadcast %37 : vector<1x1xf32> to vector<1x9xf32>
    %39 = arith.subf %35, %38 : vector<1x9xf32>
    %40 = math.exp %39 : vector<1x9xf32>
    %cst_12 = arith.constant dense<0.000000e+00> : vector<1xf32>
    %41 = vector.multi_reduction <add>, %40, %cst_12 [1] : vector<1x9xf32> to vector<1xf32>
    %42 = vector.shape_cast %41 : vector<1xf32> to vector<1x1xf32>
    %43 = tpu.reciprocal %42 {approx = true} : vector<1x1xf32> -> vector<1x1xf32>
    %44 = vector.broadcast %43 : vector<1x1xf32> to vector<1x9xf32>
    %45 = arith.mulf %40, %44 : vector<1x9xf32>
    %46 = arith.truncf %45 : vector<1x9xf32> to vector<1x9xbf16>
    %cst_13 = arith.constant dense<0.000000e+00> : vector<1x16xf32>
    %47 = tpu.matmul %46, %32, %cst_13 {dimension_numbers = #tpu.dot_dimension_numbers<[1], [0], [0], [1], [0, 0, 1, 1], [], []>} : vector<1x9xbf16>, vector<9x16xbf16>, vector<1x16xf32> -> vector<1x16xf32>
    %48 = tpu.concatenate %26, %47 in 1 : vector<1x16xf32>, vector<1x16xf32> -> vector<1x32xf32>
    %c0_14 = arith.constant 0 : index
    %c0_15 = arith.constant 0 : index
    %c0_16 = arith.constant 0 : index
    %49 = vector.load %arg3[%c0_14, %c0_15, %c0_16] : memref<1x1x32xf32, #tpu.memory_space<vmem>>, vector<1x1x32xf32>
    %50 = vector.shape_cast %49 : vector<1x1x32xf32> to vector<1x32xf32>
    %51 = vector.shape_cast %48 : vector<1x32xf32> to vector<1x1x32xf32>
    tpu.vector_store %arg3[%c0_14, %c0_15, %c0_16], %51 {strides = array<i32>} : memref<1x1x32xf32, #tpu.memory_space<vmem>>, vector<1x1x32xf32>,
    return
  }
  func.func @transform_0(%arg0: i32) -> (i32, i32, i32) {
    %c0_i32 = arith.constant 0 : i32
    %c0_i32_0 = arith.constant 0 : i32
    %c0_i32_1 = arith.constant 0 : i32
    return %arg0, %c0_i32, %c0_i32_0 : i32, i32, i32
  }
  func.func @transform_1(%arg0: i32) -> (i32, i32, i32) {
    %c0_i32 = arith.constant 0 : i32
    %c0_i32_0 = arith.constant 0 : i32
    %c0_i32_1 = arith.constant 0 : i32
    return %arg0, %c0_i32, %c0_i32_0 : i32, i32, i32
  }
  func.func @transform_2(%arg0: i32) -> (i32, i32, i32) {
    %c0_i32 = arith.constant 0 : i32
    %c0_i32_0 = arith.constant 0 : i32
    %c0_i32_1 = arith.constant 0 : i32
    return %arg0, %c0_i32, %c0_i32_0 : i32, i32, i32
  }
}

module attributes {stable_mosaic.version = 11 : i64} {
  func.func @_attn_cross_kernel(%arg0: i32, %arg1: memref<1x1x32xf32, #tpu.memory_space<vmem>>, %arg2: memref<1x17x64xf32, #tpu.memory_space<vmem>>, %arg3: memref<1x1x32xf32, #tpu.memory_space<vmem>>) attributes {dimension_semantics = [#tpu.dimension_semantics<parallel>], iteration_bounds = array<i64: 2>, scalar_prefetch = 0 : i64, scratch_operands = 0 : i64, tpu.core_type = #tpu.core_type<tc>, window_params = [{transform_indices = @transform_0, window_bounds = array<i64: 1, 1, 32>}, {transform_indices = @transform_1, window_bounds = array<i64: 1, 17, 64>}, {transform_indices = @transform_2, window_bounds = array<i64: 1, 1, 32>}]} {
    %c0 = arith.constant 0 : index
    %c0_0 = arith.constant 0 : index
    %c0_1 = arith.constant 0 : index
    %0 = vector.load %arg2[%c0, %c0_0, %c0_1] : memref<1x17x64xf32, #tpu.memory_space<vmem>>, vector<1x17x64xf32>
    %1 = vector.shape_cast %0 : vector<1x17x64xf32> to vector<17x64xf32>
    %c0_2 = arith.constant 0 : index
    %c0_3 = arith.constant 0 : index
    %c0_4 = arith.constant 0 : index
    %2 = vector.load %arg1[%c0_2, %c0_3, %c0_4] : memref<1x1x32xf32, #tpu.memory_space<vmem>>, vector<1x1x32xf32>
    %3 = vector.shape_cast %2 : vector<1x1x32xf32> to vector<1x32xf32>
    %4 = vector.extract_strided_slice %1 {offsets = [0, 0], sizes = [17, 32], strides = [1, 1]} : vector<17x64xf32> to vector<17x32xf32>
    %5 = vector.extract_strided_slice %1 {offsets = [0, 32], sizes = [17, 32], strides = [1, 1]} : vector<17x64xf32> to vector<17x32xf32>
    %6 = vector.extract_strided_slice %3 {offsets = [0, 0], sizes = [1, 16], strides = [1, 1]} : vector<1x32xf32> to vector<1x16xf32>
    %7 = arith.truncf %6 : vector<1x16xf32> to vector<1x16xbf16>
    %8 = vector.extract_strided_slice %4 {offsets = [0, 0], sizes = [17, 16], strides = [1, 1]} : vector<17x32xf32> to vector<17x16xf32>
    %9 = arith.truncf %8 : vector<17x16xf32> to vector<17x16xbf16>
    %10 = vector.extract_strided_slice %5 {offsets = [0, 0], sizes = [17, 16], strides = [1, 1]} : vector<17x32xf32> to vector<17x16xf32>
    %11 = arith.truncf %10 : vector<17x16xf32> to vector<17x16xbf16>
    %cst = arith.constant dense<0.000000e+00> : vector<1x17xf32>
    %12 = tpu.matmul %7, %9, %cst {dimension_numbers = #tpu.dot_dimension_numbers<[1], [1], [0], [0], [0, 0, 1, 0], [], []>} : vector<1x16xbf16>, vector<17x16xbf16>, vector<1x17xf32> -> vector<1x17xf32>
    %cst_5 = arith.constant 2.500000e-01 : f32
    %13 = vector.broadcast %cst_5 : f32 to vector<1x17xf32>
    %14 = arith.mulf %12, %13 : vector<1x17xf32>
    %cst_6 = arith.constant dense<0xFF800000> : vector<1xf32>
    %15 = vector.multi_reduction <maximumf>, %14, %cst_6 [1] : vector<1x17xf32> to vector<1xf32>
    %16 = vector.shape_cast %15 : vector<1xf32> to vector<1x1xf32>
    %17 = vector.broadcast %16 : vector<1x1xf32> to vector<1x17xf32>
    %18 = arith.subf %14, %17 : vector<1x17xf32>
    %19 = math.exp %18 : vector<1x17xf32>
    %cst_7 = arith.constant dense<0.000000e+00> : vector<1xf32>
    %20 = vector.multi_reduction <add>, %19, %cst_7 [1] : vector<1x17xf32> to vector<1xf32>
    %21 = vector.shape_cast %20 : vector<1xf32> to vector<1x1xf32>
    %22 = tpu.reciprocal %21 {approx = true} : vector<1x1xf32> -> vector<1x1xf32>
    %23 = vector.broadcast %22 : vector<1x1xf32> to vector<1x17xf32>
    %24 = arith.mulf %19, %23 : vector<1x17xf32>
    %25 = arith.truncf %24 : vector<1x17xf32> to vector<1x17xbf16>
    %cst_8 = arith.constant dense<0.000000e+00> : vector<1x16xf32>
    %26 = tpu.matmul %25, %11, %cst_8 {dimension_numbers = #tpu.dot_dimension_numbers<[1], [0], [0], [1], [0, 0, 1, 1], [], []>} : vector<1x17xbf16>, vector<17x16xbf16>, vector<1x16xf32> -> vector<1x16xf32>
    %27 = vector.extract_strided_slice %3 {offsets = [0, 16], sizes = [1, 16], strides = [1, 1]} : vector<1x32xf32> to vector<1x16xf32>
    %28 = arith.truncf %27 : vector<1x16xf32> to vector<1x16xbf16>
    %29 = vector.extract_strided_slice %4 {offsets = [0, 16], sizes = [17, 16], strides = [1, 1]} : vector<17x32xf32> to vector<17x16xf32>
    %30 = arith.truncf %29 : vector<17x16xf32> to vector<17x16xbf16>
    %31 = vector.extract_strided_slice %5 {offsets = [0, 16], sizes = [17, 16], strides = [1, 1]} : vector<17x32xf32> to vector<17x16xf32>
    %32 = arith.truncf %31 : vector<17x16xf32> to vector<17x16xbf16>
    %cst_9 = arith.constant dense<0.000000e+00> : vector<1x17xf32>
    %33 = tpu.matmul %28, %30, %cst_9 {dimension_numbers = #tpu.dot_dimension_numbers<[1], [1], [0], [0], [0, 0, 1, 0], [], []>} : vector<1x16xbf16>, vector<17x16xbf16>, vector<1x17xf32> -> vector<1x17xf32>
    %cst_10 = arith.constant 2.500000e-01 : f32
    %34 = vector.broadcast %cst_10 : f32 to vector<1x17xf32>
    %35 = arith.mulf %33, %34 : vector<1x17xf32>
    %cst_11 = arith.constant dense<0xFF800000> : vector<1xf32>
    %36 = vector.multi_reduction <maximumf>, %35, %cst_11 [1] : vector<1x17xf32> to vector<1xf32>
    %37 = vector.shape_cast %36 : vector<1xf32> to vector<1x1xf32>
    %38 = vector.broadcast %37 : vector<1x1xf32> to vector<1x17xf32>
    %39 = arith.subf %35, %38 : vector<1x17xf32>
    %40 = math.exp %39 : vector<1x17xf32>
    %cst_12 = arith.constant dense<0.000000e+00> : vector<1xf32>
    %41 = vector.multi_reduction <add>, %40, %cst_12 [1] : vector<1x17xf32> to vector<1xf32>
    %42 = vector.shape_cast %41 : vector<1xf32> to vector<1x1xf32>
    %43 = tpu.reciprocal %42 {approx = true} : vector<1x1xf32> -> vector<1x1xf32>
    %44 = vector.broadcast %43 : vector<1x1xf32> to vector<1x17xf32>
    %45 = arith.mulf %40, %44 : vector<1x17xf32>
    %46 = arith.truncf %45 : vector<1x17xf32> to vector<1x17xbf16>
    %cst_13 = arith.constant dense<0.000000e+00> : vector<1x16xf32>
    %47 = tpu.matmul %46, %32, %cst_13 {dimension_numbers = #tpu.dot_dimension_numbers<[1], [0], [0], [1], [0, 0, 1, 1], [], []>} : vector<1x17xbf16>, vector<17x16xbf16>, vector<1x16xf32> -> vector<1x16xf32>
    %48 = tpu.concatenate %26, %47 in 1 : vector<1x16xf32>, vector<1x16xf32> -> vector<1x32xf32>
    %c0_14 = arith.constant 0 : index
    %c0_15 = arith.constant 0 : index
    %c0_16 = arith.constant 0 : index
    %49 = vector.load %arg3[%c0_14, %c0_15, %c0_16] : memref<1x1x32xf32, #tpu.memory_space<vmem>>, vector<1x1x32xf32>
    %50 = vector.shape_cast %49 : vector<1x1x32xf32> to vector<1x32xf32>
    %51 = vector.shape_cast %48 : vector<1x32xf32> to vector<1x1x32xf32>
    tpu.vector_store %arg3[%c0_14, %c0_15, %c0_16], %51 {strides = array<i32>} : memref<1x1x32xf32, #tpu.memory_space<vmem>>, vector<1x1x32xf32>,
    return
  }
  func.func @transform_0(%arg0: i32) -> (i32, i32, i32) {
    %c0_i32 = arith.constant 0 : i32
    %c0_i32_0 = arith.constant 0 : i32
    %c0_i32_1 = arith.constant 0 : i32
    return %arg0, %c0_i32, %c0_i32_0 : i32, i32, i32
  }
  func.func @transform_1(%arg0: i32) -> (i32, i32, i32) {
    %c0_i32 = arith.constant 0 : i32
    %c0_i32_0 = arith.constant 0 : i32
    %c0_i32_1 = arith.constant 0 : i32
    return %arg0, %c0_i32, %c0_i32_0 : i32, i32, i32
  }
  func.func @transform_2(%arg0: i32) -> (i32, i32, i32) {
    %c0_i32 = arith.constant 0 : i32
    %c0_i32_0 = arith.constant 0 : i32
    %c0_i32_1 = arith.constant 0 : i32
    return %arg0, %c0_i32, %c0_i32_0 : i32, i32, i32
  }
}

module attributes {stable_mosaic.version = 11 : i64} {
  func.func @kernel(%arg0: i32, %arg1: i32, %arg2: i32, %arg3: memref<24x32xf32, #tpu.memory_space<vmem>>, %arg4: memref<32x64xf32, #tpu.memory_space<vmem>>, %arg5: memref<1x64xf32, #tpu.memory_space<vmem>>, %arg6: memref<24x64xf32, #tpu.memory_space<vmem>>) attributes {dimension_semantics = [#tpu.dimension_semantics<parallel>, #tpu.dimension_semantics<parallel>, #tpu.dimension_semantics<arbitrary>], iteration_bounds = array<i64: 2, 1, 1>, scalar_prefetch = 0 : i64, scratch_operands = 0 : i64, tpu.core_type = #tpu.core_type<tc>, window_params = [{transform_indices = @transform_0, window_bounds = array<i64: 24, 32>}, {transform_indices = @transform_1, window_bounds = array<i64: 32, 64>}, {transform_indices = @transform_2, window_bounds = array<i64: 1, 64>}, {transform_indices = @transform_3, window_bounds = array<i64: 24, 64>}]} {
    %c0_i32 = arith.constant 0 : i32
    %0 = arith.cmpi eq, %arg2, %c0_i32 : i32
    %1 = arith.extui %0 : i1 to i32
    %c0_i32_0 = arith.constant 0 : i32
    %2 = arith.cmpi ne, %1, %c0_i32_0 : i32
    scf.if %2 {
      %cst_10 = arith.constant 0.000000e+00 : f32
      %14 = vector.broadcast %cst_10 : f32 to vector<24x64xf32>
      %c0_11 = arith.constant 0 : index
      %c0_12 = arith.constant 0 : index
      %15 = vector.load %arg6[%c0_11, %c0_12] : memref<24x64xf32, #tpu.memory_space<vmem>>, vector<24x64xf32>
      tpu.vector_store %arg6[%c0_11, %c0_12], %14 {strides = array<i32>} : memref<24x64xf32, #tpu.memory_space<vmem>>, vector<24x64xf32>,
    } else {
    }
    %c0 = arith.constant 0 : index
    %c0_1 = arith.constant 0 : index
    %3 = vector.load %arg3[%c0, %c0_1] : memref<24x32xf32, #tpu.memory_space<vmem>>, vector<24x32xf32>
    %4 = arith.truncf %3 : vector<24x32xf32> to vector<24x32xbf16>
    %c0_2 = arith.constant 0 : index
    %c0_3 = arith.constant 0 : index
    %5 = vector.load %arg6[%c0_2, %c0_3] : memref<24x64xf32, #tpu.memory_space<vmem>>, vector<24x64xf32>
    %c0_4 = arith.constant 0 : index
    %c0_5 = arith.constant 0 : index
    %6 = vector.load %arg4[%c0_4, %c0_5] : memref<32x64xf32, #tpu.memory_space<vmem>>, vector<32x64xf32>
    %7 = arith.truncf %6 : vector<32x64xf32> to vector<32x64xbf16>
    %cst = arith.constant dense<0.000000e+00> : vector<24x64xf32>
    %8 = tpu.matmul %4, %7, %cst {dimension_numbers = #tpu.dot_dimension_numbers<[1], [0], [0], [1], [0, 0, 1, 1], [], []>} : vector<24x32xbf16>, vector<32x64xbf16>, vector<24x64xf32> -> vector<24x64xf32>
    %9 = arith.addf %5, %8 : vector<24x64xf32>
    %c0_6 = arith.constant 0 : index
    %c0_7 = arith.constant 0 : index
    %10 = vector.load %arg6[%c0_6, %c0_7] : memref<24x64xf32, #tpu.memory_space<vmem>>, vector<24x64xf32>
    tpu.vector_store %arg6[%c0_6, %c0_7], %9 {strides = array<i32>} : memref<24x64xf32, #tpu.memory_space<vmem>>, vector<24x64xf32>,
    %c0_i32_8 = arith.constant 0 : i32
    %11 = arith.cmpi eq, %arg2, %c0_i32_8 : i32
    %12 = arith.extui %11 : i1 to i32
    %c0_i32_9 = arith.constant 0 : i32
    %13 = arith.cmpi ne, %12, %c0_i32_9 : i32
    scf.if %13 {
      %c0_10 = arith.constant 0 : index
      %c0_11 = arith.constant 0 : index
      %14 = vector.load %arg6[%c0_10, %c0_11] : memref<24x64xf32, #tpu.memory_space<vmem>>, vector<24x64xf32>
      %c0_12 = arith.constant 0 : index
      %c0_13 = arith.constant 0 : index
      %15 = vector.load %arg5[%c0_12, %c0_13] : memref<1x64xf32, #tpu.memory_space<vmem>>, vector<1x64xf32>
      %16 = vector.broadcast %15 : vector<1x64xf32> to vector<24x64xf32>
      %17 = arith.addf %14, %16 : vector<24x64xf32>
      %c0_14 = arith.constant 0 : index
      %c0_15 = arith.constant 0 : index
      %18 = vector.load %arg6[%c0_14, %c0_15] : memref<24x64xf32, #tpu.memory_space<vmem>>, vector<24x64xf32>
      tpu.vector_store %arg6[%c0_14, %c0_15], %17 {strides = array<i32>} : memref<24x64xf32, #tpu.memory_space<vmem>>, vector<24x64xf32>,
    } else {
    }
    return
  }
  func.func @transform_0(%arg0: i32, %arg1: i32, %arg2: i32) -> (i32, i32) {
    %c0_i32 = arith.constant 0 : i32
    return %arg0, %arg2 : i32, i32
  }
  func.func @transform_1(%arg0: i32, %arg1: i32, %arg2: i32) -> (i32, i32) {
    %c0_i32 = arith.constant 0 : i32
    return %arg2, %arg1 : i32, i32
  }
  func.func @transform_2(%arg0: i32, %arg1: i32, %arg2: i32) -> (i32, i32) {
    %c0_i32 = arith.constant 0 : i32
    %c0_i32_0 = arith.constant 0 : i32
    return %c0_i32, %arg1 : i32, i32
  }
  func.func @transform_3(%arg0: i32, %arg1: i32, %arg2: i32) -> (i32, i32) {
    %c0_i32 = arith.constant 0 : i32
    return %arg0, %arg1 : i32, i32
  }
}

</mosaic_0001>

<bundles_post_ra>
// kernel: multi_scale_encoder_forward.14
= control target key start
LH: loop header
LB: loop body
LE: loop exit
PB: predicated region body
PF: predicated region fallthrough
CT: control target
= control target key end

     0   :  { %s1105_s18 = smov 0   ;;  %s1107_s19 = smov 0   ;;  %s1253_s0 = inlined_call_operand.vmem [shape: f32[34,32], index: 0, kind: input, shape index: {}]   ;;  %s1254_s1 = inlined_call_operand.vmem [shape: f32[32,96], index: 1, kind: input, shape index: {}]   ;;  %s1255_s2 = inlined_call_operand.vmem [shape: f32[1,96], index: 2, kind: input, shape index: {}]   ;;  %s1256_s3 = inlined_call_operand.vmem [shape: f32[1,32], index: 3, kind: input, shape index: {}]   ;;  %s1257_s4 = inlined_call_operand.vmem [shape: f32[1,32], index: 4, kind: input, shape index: {}]   ;;  %s1258_s5 = inlined_call_operand.vmem [shape: f32[34,96], index: 5, kind: output, shape index: {}]  }
   0x1   :  { %s1109_s20 = smov 0   ;;  %s1111_s21 = smov 0  }
   0x2   :  { %s1113_s22 = smov 0  }
   0x3 LB: > { %s813_s23 = sadd.s32 4294967295, %s1040_s22   ;;  %s34_s24 = sadd.s32 1, %s1036_s21  ;;  %s1040_s22 = sphi %s1113_s22, %s15_s22   ;;  %s1036_s21 = sphi %s1111_s21, %s1263_s21   ;;  %s1032_s20 = sphi %s1109_s20, %s1262_s20   ;;  %s1028_s19 = sphi %s1107_s19, %s1261_s19   ;;  %s1024_s18 = sphi %s1105_s18, %s1260_s18  }
   0x4   : > { %p36_p0 = scmp.ge.s32.totalorder %s34_s24, 2  ;;  %s177_s25 = sadd.s32 1, %s1028_s19 }
   0x5   : > { %p187_p1 = scmp.ne.s32.totalorder %s1028_s19, %s1024_s18  ;;  %p188_p2 = scmp.eq.s32.totalorder %s813_s23, 1 }
   0x6   : > { %s1265_s24 = smov (%p36_p0, %s34_s24), 0  ;;  %p821_p4 = scmp.ge.s32.totalorder %s1040_s22, 1 }
   0x7   : > { %p1137_p3 = por %p188_p2, %p187_p1  ;;  %s172_s27 = ssub.s32 %s1036_s21, %s1265_s24 }
   0x8   : > { %p262_p5 = scmp.lt.s32.totalorder %s1040_s22, 3  ;;  %p175_p6 = scmp.eq.s32.totalorder %s172_s27, 0 }
   0xa   : > { %p263_p7 = pnand %p821_p4, %p262_p5 }
   0xb   : > { %s1146_s28 = scalar_select %p175_p6, %s1028_s19, %s177_s25  }
   0xc   : > { %266 = sbr.rel (%p263_p7) target bundleno = 634 (0x27a), region = 40  ;;  %vm367_vm0 = vcmask (!%p263_p7), 261120   ;;  %v431_v21 = vld [vmem:[%s1254_s1] sm:$0xff] (!%p263_p7)  ;;  %v432_v22 = vld [vmem:[%s1254_s1 + $0x8] sm:$0xff] (!%p263_p7)  ;;  %v433_v24 = vld [vmem:[%s1254_s1 + $0x10] sm:$0xff] (!%p263_p7)  ;;  %s310_s23 = sand.u32 (!%p263_p7), 1, %s1024_s18  }
   0xd   : > { %s1149_s29 = smul.u32 (!%p263_p7), 3, %s1032_s20  ;;  %v435_v23 = vpack.c.bf16 (!%p263_p7), %v432_v22, %v431_v21  ;;  %v434_v25 = vld [vmem:[%s1254_s1 + $0x18] sm:$0xff] (!%p263_p7)  ;;  %vm358_vm1 = vcmask (!%p263_p7), 785408   ;;  %v1074_v27 = vmov (!%p263_p7), 0.0   ;;  %v823_v39 = vld [vmem:[%s1256_s3] ss:$0 sm:$0xff] (!%p263_p7) }
   0xe   : > { %v436_v26 = vpack.c.bf16 (!%p263_p7), %v434_v25, %v433_v24  ;;  %s853_s25 = smul.u32 (!%p263_p7), 24, %s310_s23  ;;  %v824_v45 = vld [vmem:[%s1257_s4] ss:$0 sm:$0xff] (!%p263_p7) }
   0xf   : > { %p318_p8 = scmp.lt.s32.totalorder (!%p263_p7), %s1149_s29, 4  ;;  %845 = vmatprep.subr.bf16.mxu0 (!%p263_p7), %v435_v23  ;;  %v827_v63 = vld [vmem:[%s1255_s2] ss:$0 sm:$0xff] (!%p263_p7) }
  0x10   : > { %846 = vmatpush3.bf16.msra.mxu0 (!%p263_p7), %v435_v23  ;;  %s1175_s27 = scalar_lea.vmem (!%p263_p7), [#allocation2], %s853_s25  }
  0x11   : > { %847 = vmatprep.subr.bf16.mxu0 (!%p263_p7), %v436_v26  ;;  %361 = vst.msk [vmem:[%s1175_s27 + $0x10] sm:$0xff] (!%p263_p7), %vm358_vm1, %v1074_v27  ;;  %359 = vst.msk [vmem:[%s1175_s27] sm:$0xff] (!%p263_p7), %vm358_vm1, %v1074_v27 }
  0x12   : > { %360 = vst.msk [vmem:[%s1175_s27 + $0x8] sm:$0xff] (!%p263_p7), %vm358_vm1, %v1074_v27 }
  0x13   : > { %s319_s30 = scalar_select %p318_p8, %s1149_s29, 4 }
  0x14   : > { %848 = vmatpush3.bf16.msra.mxu0 %v436_v26  ;;  %s525_s10 = ssub.s32 (%p1137_p3), 5, %s1149_s29  ;;  %s840_s11 = smul.u32 (%p1137_p3), 24, %s1032_s20 }
  0x15   : > { %s822_s6 = sshll.u32 %s319_s30, 3  ;;  %p526_p9 = scmp.lt.s32.totalorder (%p1137_p3), %s525_s10, 3 }
  0x16   : > { %s324_s9 = scalar_lea.vmem %s1253_s0, %s822_s6  ;;  %s1219_s14 = scalar_lea.vmem (%p1137_p3), %s1258_s5, %s840_s11  }
  0x17   : > { %v362_v0 = vld [vmem:[%s324_s9] sm:$0xff]  ;;  %v364_v1 = vld [vmem:[%s324_s9 + $0x10] sm:$0xff]  ;;  %v363_v2 = vld [vmem:[%s324_s9 + $0x8] sm:$0xff] }
  0x18   : > { %v368_v3 = vsel %vm367_vm0, %v362_v0, 0.0  ;;  %v374_v4 = vsel %vm367_vm0, %v364_v1, 0.0  ;;  %v371_v5 = vsel %vm367_vm0, %v363_v2, 0.0  ;;  %v430_v53 = vld [vmem:[%s1175_s27 + $0x10] sm:$0xff]  ;;  %v428_v54 = vld [vmem:[%s1175_s27] sm:$0xff] }
  0x19   : > { %369 = vadd.xlane.f32.xlu0 %v368_v3  ;;  %375 = vadd.xlane.f32.xlu1 %v374_v4  ;;  %v429_v58 = vld [vmem:[%s1175_s27 + $0x8] sm:$0xff] }
  0x1d   : > { %372 = vadd.xlane.f32.xlu0 %v371_v5 }
  0xa6   : > { %v370_v6 = vpop.xlane.xlu0 %369  ;;  %v376_v7 = vpop.xlane.xlu1 %375 }
  0xa7   : > { %v378_v8 = vmul.f32 0.03125, %v370_v6  ;;  %v380_v9 = vmul.f32 0.03125, %v376_v7 }
  0xa9   : > { %v381_v10 = vsub.f32 %v362_v0, %v378_v8  ;;  %v383_v11 = vsub.f32 %v364_v1, %v380_v9 }
  0xaa   : > { %v373_v12 = vpop.xlane.xlu0 %372 }
  0xab   : > { %v379_v13 = vmul.f32 0.03125, %v373_v12  ;;  %v384_v14 = vmul.f32 %v381_v10, %v381_v10  ;;  %v386_v15 = vmul.f32 %v383_v11, %v383_v11 }
  0xad   : > { %v382_v16 = vsub.f32 %v363_v2, %v379_v13  ;;  %v387_v17 = vsel %vm367_vm0, %v384_v14, 0.0  ;;  %v393_v18 = vsel %vm367_vm0, %v386_v15, 0.0 }
  0xae   : > { %388 = vadd.xlane.f32.xlu1 %v387_v17 }
  0xaf   : > { %v385_v19 = vmul.f32 %v382_v16, %v382_v16 }
  0xb1   : > { %v390_v20 = vsel %vm367_vm0, %v385_v19, 0.0 }
  0xb2   : > { %394 = vadd.xlane.f32.xlu1 %v393_v18  ;;  %391 = vadd.xlane.f32.xlu0 %v390_v20 }
 0x13b   : > { %v389_v28 = vpop.xlane.xlu1 %388 }
 0x13c   : > { %v396_v29 = vmul.f32 0.03125, %v389_v28 }
 0x13e   : > { %v399_v30 = vadd.f32 1e-05, %v396_v29 }
 0x13f   : > { %v395_v31 = vpop.xlane.xlu1 %394  ;;  %v392_v32 = vpop.xlane.xlu0 %391 }
 0x140   : > { %960 = vrsqrt.f32 %v399_v30  ;;  %v398_v33 = vmul.f32 0.03125, %v395_v31  ;;  %v397_v34 = vmul.f32 0.03125, %v392_v32 }
 0x142   : > { %v401_v35 = vadd.f32 1e-05, %v398_v33  ;;  %v400_v36 = vadd.f32 1e-05, %v397_v34 }
 0x144   : > { %962 = vrsqrt.f32 %v401_v35 }
 0x145   : > { %964 = vrsqrt.f32 %v400_v36 }
 0x14a   : > { %v961_v37 = vpop.eup %960 }
 0x14b   : > { %v405_v38 = vmul.f32 %v961_v37, %v381_v10 }
 0x14d   : > { %v414_v44 = vmul.f32 %v823_v39, %v405_v38 }
 0x14e   : > { %v963_v40 = vpop.eup %962 }
 0x14f   : > { %v965_v41 = vpop.eup %964  ;;  %v407_v42 = vmul.f32 %v963_v40, %v383_v11  ;;  %v423_v49 = vadd.f32 %v824_v45, %v414_v44 }
 0x150   : > { %v406_v43 = vmul.f32 %v965_v41, %v382_v16 }
 0x151   : > { %v416_v46 = vmul.f32 %v823_v39, %v407_v42 }
 0x152   : > { %v415_v47 = vmul.f32 %v823_v39, %v406_v43 }
 0x153   : > { %v425_v48 = vadd.f32 %v824_v45, %v416_v46 }
 0x154   : > { %v424_v50 = vadd.f32 %v824_v45, %v415_v47 }
 0x155   : > { %v427_v51 = vpack.c.bf16 %v425_v48, %v425_v48 }
 0x156   : > { %v426_v52 = vpack.c.bf16 %v424_v50, %v423_v49 }
 0x158   : > { %849 = vmatprep.mubr.msk.bf16.mxu0 %vm367_vm0, %v426_v52 }
 0x159   : > { %850 = vmatmul.mubr.msk.bf16.vlgmr.msra.gmra.mrb[0].mxu0 %vm367_vm0, %v427_v51 }
 0x22c   : > { %v851_v55 = vpop.f32.mrb[0].mxu0 }
 0x22d   : > { %v493_v56 = vadd.f32 %v851_v55, %v430_v53  ;;  %v477_v57 = vpop.f32.mrb[1].mxu0 }
 0x22e   : > { %v491_v59 = vadd.f32 %v477_v57, %v428_v54  ;;  %v852_v60 = vpop.f32.mrb[2].mxu0 }
 0x22f   : > { %497 = vst.msk [vmem:[%s1175_s27 + $0x10] sm:$0xff] %vm358_vm1, %v493_v56  ;;  %v480_v61 = vpop.f32.mrb[3].mxu0 }
 0x230   : > { %495 = vst.msk [vmem:[%s1175_s27] sm:$0xff] %vm358_vm1, %v491_v59  ;;  %v492_v62 = vadd.f32 %v480_v61, %v429_v58 }
 0x232   : > { %496 = vst.msk [vmem:[%s1175_s27 + $0x8] sm:$0xff] %vm358_vm1, %v492_v62 }
 0x236   : > { %v503_v0 = vld [vmem:[%s1175_s27 + $0x10] sm:$0xff]  ;;  %523 = sbr.rel (!%p1137_p3) target bundleno = 634 (0x27a), region = 52 }
 0x237   : > { %v513_v1 = vadd.f32 %v827_v63, %v503_v0  ;;  %v501_v2 = vld [vmem:[%s1175_s27] sm:$0xff] }
 0x238   : > { %v511_v3 = vadd.f32 %v827_v63, %v501_v2 }
 0x239   : > { %516 = vst.msk [vmem:[%s1175_s27 + $0x10] sm:$0xff] %vm358_vm1, %v513_v1  ;;  %v502_v4 = vld [vmem:[%s1175_s27 + $0x8] sm:$0xff] }
 0x23a   : > { %514 = vst.msk [vmem:[%s1175_s27] sm:$0xff] %vm358_vm1, %v511_v3  ;;  %v512_v5 = vadd.f32 %v827_v63, %v502_v4 }
 0x23c   : > { %515 = vst.msk [vmem:[%s1175_s27 + $0x8] sm:$0xff] %vm358_vm1, %v512_v5 }
 0x23d   : > { %s1267_s10 = smov (!%p526_p9, %s525_s10), 3 }
 0x23e   : > { %s828_s15 = sshll.u32 %s1267_s10, 7 }
 0x23f   : > { %p831_p10 = scmp.eq.s32.totalorder %s828_s15, 0 }
 0x240   : > { %966 = sdivrem.u32 (!%p831_p10), %s1267_s10, 3 }
 0x241   : > { %535 = sbr.rel (%p831_p10) target bundleno = 634 (0x27a), region = 56 }
 0x249   : > { %s1225_s26 = spop.drf %966 }
 0x24a   : > { %p832_p11 = scmp.le.s32.totalorder %s1225_s26, 0 }
 0x24b   : > { %s1042_s20 = smov (!%p832_p11), %s1219_s14   ;;  %s1046_s29 = smov (!%p832_p11), %s1175_s27  }
 0x24c   : > { %722 = sbr.rel (%p832_p11) target bundleno = 605 (0x25d), region = 144  ;;  %s1050_s16 = smov (!%p832_p11), 0  }
 0x24d   : > { %s1054_s17 = smov (!%p832_p11), 0  }
 0x253 LB: >> { %v603_v6 = vld [vmem:[%s1048_s29] sm:$0xff]  ;;  %v605_v7 = vld [vmem:[%s1048_s29 + $0x8] sm:$0xff]  ;;  %v607_v8 = vld [vmem:[%s1048_s29 + $0x10] sm:$0xff]  ;;  %s609_s23 = sadd.s32 1, %s1052_s16  ;;  %s597_s17 = sadd.s32 1, %s1056_s17   ;;  %s1056_s17 = sphi %s1054_s17, %s597_s17   ;;  %s1052_s16 = sphi %s1050_s16, %s1051_s16   ;;  %s1048_s29 = sphi %s1046_s29, %s614_s29   ;;  %s1044_s20 = sphi %s1042_s20, %s615_s20  }
 0x254   : >> { %604 = vst [vmem:[%s1044_s20] sm:$0xff] %v603_v6  ;;  %606 = vst [vmem:[%s1044_s20 + $0x8] sm:$0xff] %v605_v7  ;;  %p610_p12 = scmp.ge.s32.totalorder %s609_s23, %s1225_s26  ;;  %p596_p13 = scmp.ge.s32.totalorder %s597_s17, %s1225_s26 }
 0x255   : >> { %608 = vst [vmem:[%s1044_s20 + $0x10] sm:$0xff] %v607_v8 }
 0x256   : >> { %s1269_s23 = smov (%p610_p12, %s609_s23), 0  ;;  %599 = sbr.rel (!%p596_p13) target bundleno = 595 (0x253), region = 150 }
 0x257   : >> { %s612_s25 = smul.u32 24, %s1269_s23  ;;  %s1051_s16 = smov %s1269_s23  }
 0x259   : >> { %s614_s29 = scalar_lea.vmem %s1175_s27, %s612_s25 [#allocation2]   ;;  %s615_s20 = scalar_lea.vmem %s1219_s14, %s612_s25  }
 0x25d PF: > { %968 = sdivrem.u32 %s1267_s10, 3 }
 0x25e   : > { %s833_s18 = smul.u32 24, %s1225_s26 }
 0x260   : > { %s620_s30 = scalar_lea.vmem %s1175_s27, %s833_s18 [#allocation2]   ;;  %s622_s6 = scalar_lea.vmem %s1219_s14, %s833_s18  }
 0x266   : > { %s969_s7 = spop.drf %968 }
 0x267   : > { %p835_p0 = scmp.le.s32.totalorder %s969_s7, 0 }
 0x268   : > { %s1058_s8 = smov (!%p835_p0), %s622_s6   ;;  %s1062_s9 = smov (!%p835_p0), %s620_s30  }
 0x269   : > { %736 = sbr.rel (%p835_p0) target bundleno = 634 (0x27a), region = 155  ;;  %s1066_s11 = smov (!%p835_p0), 0  }
 0x26a   : > { %s1070_s12 = smov (!%p835_p0), 0  }
 0x270 LB: >> { %v632_v9 = vld [vmem:[%s1064_s9] sm:$0xff]  ;;  %s634_s13 = sadd.s32 1, %s1068_s11  ;;  %s626_s12 = sadd.s32 1, %s1072_s12   ;;  %s1072_s12 = sphi %s1070_s12, %s626_s12   ;;  %s1068_s11 = sphi %s1066_s11, %s1067_s11   ;;  %s1064_s9 = sphi %s1062_s9, %s639_s9   ;;  %s1060_s8 = sphi %s1058_s8, %s640_s8  }
 0x271   : >> { %633 = vst [vmem:[%s1060_s8] sm:$0xff] %v632_v9  ;;  %p635_p1 = scmp.ge.s32.totalorder %s634_s13, %s969_s7  ;;  %p625_p2 = scmp.ge.s32.totalorder %s626_s12, %s969_s7 }
 0x273   : >> { %s1271_s13 = smov (%p635_p1, %s634_s13), 0  ;;  %628 = sbr.rel (!%p625_p2) target bundleno = 624 (0x270), region = 161 }
 0x274   : >> { %s836_s27 = sshll.u32 %s1271_s13, 3  ;;  %s1067_s11 = smov %s1271_s13  }
 0x275   : >> { %s639_s9 = scalar_lea.vmem %s620_s30, %s836_s27 [#allocation2]   ;;  %s640_s8 = scalar_lea.vmem %s622_s6, %s836_s27  }
 0x27a PF: > { %s15_s22 = sadd.s32 1, %s1040_s22   ;;  %s1260_s18 = smov %s1028_s19 }
 0x27b   : > { %p12_p3 = scmp.ge.s32.totalorder %s15_s22, 4   ;;  %s1261_s19 = smov %s1146_s28 }
 0x27c   : > { %s1262_s20 = smov %s1036_s21  ;;  %s1263_s21 = smov %s1265_s24 }
 0x27d   :  { %14 = sbr.rel (!%p12_p3) target bundleno = 3 (0x3), region = 172 }

// kernel: multi_scale_encoder_forward.17
= control target key start
LH: loop header
LB: loop body
LE: loop exit
PB: predicated region body
PF: predicated region fallthrough
CT: control target
= control target key end

     0   :  { %s1138_s18 = smov 0   ;;  %s1140_s19 = smov 0   ;;  %s1286_s0 = inlined_call_operand.vmem [shape: f32[34,32], index: 0, kind: input, shape index: {}]   ;;  %s1287_s1 = inlined_call_operand.vmem [shape: f32[32,64], index: 1, kind: input, shape index: {}]   ;;  %s1288_s2 = inlined_call_operand.vmem [shape: f32[1,64], index: 2, kind: input, shape index: {}]   ;;  %s1289_s3 = inlined_call_operand.vmem [shape: f32[1,32], index: 3, kind: input, shape index: {}]   ;;  %s1290_s4 = inlined_call_operand.vmem [shape: f32[1,32], index: 4, kind: input, shape index: {}]   ;;  %s1291_s5 = inlined_call_operand.vmem [shape: f32[34,64], index: 5, kind: output, shape index: {}]  }
   0x1   :  { %s1142_s20 = smov 0   ;;  %s1144_s21 = smov 0  }
   0x2   :  { %s1146_s22 = smov 0  }
   0x3 LB: > { %s840_s23 = sadd.s32 4294967295, %s1073_s22   ;;  %s34_s24 = sadd.s32 1, %s1069_s21  ;;  %s1073_s22 = sphi %s1146_s22, %s15_s22   ;;  %s1069_s21 = sphi %s1144_s21, %s1296_s21   ;;  %s1065_s20 = sphi %s1142_s20, %s1295_s20   ;;  %s1061_s19 = sphi %s1140_s19, %s1294_s19   ;;  %s1057_s18 = sphi %s1138_s18, %s1293_s18  }
   0x4   : > { %p36_p0 = scmp.ge.s32.totalorder %s34_s24, 2  ;;  %s177_s25 = sadd.s32 1, %s1061_s19 }
   0x5   : > { %p187_p1 = scmp.ne.s32.totalorder %s1061_s19, %s1057_s18  ;;  %p188_p2 = scmp.eq.s32.totalorder %s840_s23, 1 }
   0x6   : > { %s1298_s24 = smov (%p36_p0, %s34_s24), 0  ;;  %p848_p4 = scmp.ge.s32.totalorder %s1073_s22, 1 }
   0x7   : > { %p1170_p3 = por %p188_p2, %p187_p1  ;;  %s172_s27 = ssub.s32 %s1069_s21, %s1298_s24 }
   0x8   : > { %p262_p5 = scmp.lt.s32.totalorder %s1073_s22, 3  ;;  %p175_p6 = scmp.eq.s32.totalorder %s172_s27, 0 }
   0xa   : > { %p263_p7 = pnand %p848_p4, %p262_p5 }
   0xb   : > { %s1179_s28 = scalar_select %p175_p6, %s1061_s19, %s177_s25  }
   0xc   : > { %266 = sbr.rel (%p263_p7) target bundleno = 659 (0x293), region = 40  ;;  %vm367_vm0 = vcmask (!%p263_p7), 261120   ;;  %v431_v21 = vld [vmem:[%s1287_s1] sm:$0xff] (!%p263_p7)  ;;  %v432_v22 = vld [vmem:[%s1287_s1 + $0x8] sm:$0xff] (!%p263_p7)  ;;  %v433_v24 = vld [vmem:[%s1287_s1 + $0x10] sm:$0xff] (!%p263_p7)  ;;  %s310_s23 = sand.u32 (!%p263_p7), 1, %s1057_s18  }
   0xd   : > { %s1182_s29 = smul.u32 (!%p263_p7), 3, %s1065_s20  ;;  %v435_v23 = vpack.c.bf16 (!%p263_p7), %v432_v22, %v431_v21  ;;  %v434_v25 = vld [vmem:[%s1287_s1 + $0x18] sm:$0xff] (!%p263_p7)  ;;  %vm358_vm1 = vcmask (!%p263_p7), 523264   ;;  %v1107_v27 = vmov (!%p263_p7), 0.0   ;;  %v850_v39 = vld [vmem:[%s1289_s3] ss:$0 sm:$0xff] (!%p263_p7) }
   0xe   : > { %v436_v26 = vpack.c.bf16 (!%p263_p7), %v434_v25, %v433_v24  ;;  %s880_s25 = smul.u32 (!%p263_p7), 24, %s310_s23  ;;  %v851_v45 = vld [vmem:[%s1290_s4] ss:$0 sm:$0xff] (!%p263_p7) }
   0xf   : > { %p318_p8 = scmp.lt.s32.totalorder (!%p263_p7), %s1182_s29, 4  ;;  %872 = vmatprep.subr.bf16.mxu0 (!%p263_p7), %v435_v23  ;;  %v854_v63 = vld [vmem:[%s1288_s2] ss:$0 sm:$0xff] (!%p263_p7) }
  0x10   : > { %873 = vmatpush3.bf16.msra.mxu0 (!%p263_p7), %v435_v23  ;;  %s1208_s27 = scalar_lea.vmem (!%p263_p7), [#allocation2], %s880_s25  }
  0x11   : > { %874 = vmatprep.subr.bf16.mxu0 (!%p263_p7), %v436_v26  ;;  %361 = vst.msk [vmem:[%s1208_s27 + $0x10] sm:$0xff] (!%p263_p7), %vm358_vm1, %v1107_v27  ;;  %359 = vst.msk [vmem:[%s1208_s27] sm:$0xff] (!%p263_p7), %vm358_vm1, %v1107_v27 }
  0x12   : > { %360 = vst.msk [vmem:[%s1208_s27 + $0x8] sm:$0xff] (!%p263_p7), %vm358_vm1, %v1107_v27 }
  0x13   : > { %s319_s30 = scalar_select %p318_p8, %s1182_s29, 4 }
  0x14   : > { %875 = vmatpush3.bf16.msra.mxu0 %v436_v26  ;;  %s552_s10 = ssub.s32 (%p1170_p3), 5, %s1182_s29  ;;  %s867_s11 = smul.u32 (%p1170_p3), 24, %s1065_s20 }
  0x15   : > { %s849_s6 = sshll.u32 %s319_s30, 3  ;;  %p553_p9 = scmp.lt.s32.totalorder (%p1170_p3), %s552_s10, 3 }
  0x16   : > { %s324_s9 = scalar_lea.vmem %s1286_s0, %s849_s6  ;;  %s1252_s14 = scalar_lea.vmem (%p1170_p3), %s1291_s5, %s867_s11  }
  0x17   : > { %v362_v0 = vld [vmem:[%s324_s9] sm:$0xff]  ;;  %v364_v1 = vld [vmem:[%s324_s9 + $0x10] sm:$0xff]  ;;  %v363_v2 = vld [vmem:[%s324_s9 + $0x8] sm:$0xff] }
  0x18   : > { %v368_v3 = vsel %vm367_vm0, %v362_v0, 0.0  ;;  %v374_v4 = vsel %vm367_vm0, %v364_v1, 0.0  ;;  %v371_v5 = vsel %vm367_vm0, %v363_v2, 0.0  ;;  %v430_v53 = vld [vmem:[%s1208_s27 + $0x10] sm:$0xff]  ;;  %v428_v54 = vld [vmem:[%s1208_s27] sm:$0xff] }
  0x19   : > { %369 = vadd.xlane.f32.xlu0 %v368_v3  ;;  %375 = vadd.xlane.f32.xlu1 %v374_v4  ;;  %v429_v58 = vld [vmem:[%s1208_s27 + $0x8] sm:$0xff] }
  0x1d   : > { %372 = vadd.xlane.f32.xlu0 %v371_v5 }
  0xa6   : > { %v370_v6 = vpop.xlane.xlu0 %369  ;;  %v376_v7 = vpop.xlane.xlu1 %375 }
  0xa7   : > { %v378_v8 = vmul.f32 0.03125, %v370_v6  ;;  %v380_v9 = vmul.f32 0.03125, %v376_v7 }
  0xa9   : > { %v381_v10 = vsub.f32 %v362_v0, %v378_v8  ;;  %v383_v11 = vsub.f32 %v364_v1, %v380_v9 }
  0xaa   : > { %v373_v12 = vpop.xlane.xlu0 %372 }
  0xab   : > { %v379_v13 = vmul.f32 0.03125, %v373_v12  ;;  %v384_v14 = vmul.f32 %v381_v10, %v381_v10  ;;  %v386_v15 = vmul.f32 %v383_v11, %v383_v11 }
  0xad   : > { %v382_v16 = vsub.f32 %v363_v2, %v379_v13  ;;  %v387_v17 = vsel %vm367_vm0, %v384_v14, 0.0  ;;  %v393_v18 = vsel %vm367_vm0, %v386_v15, 0.0 }
  0xae   : > { %388 = vadd.xlane.f32.xlu1 %v387_v17 }
  0xaf   : > { %v385_v19 = vmul.f32 %v382_v16, %v382_v16 }
  0xb1   : > { %v390_v20 = vsel %vm367_vm0, %v385_v19, 0.0 }
  0xb2   : > { %394 = vadd.xlane.f32.xlu1 %v393_v18  ;;  %391 = vadd.xlane.f32.xlu0 %v390_v20 }
 0x13b   : > { %v389_v28 = vpop.xlane.xlu1 %388 }
 0x13c   : > { %v396_v29 = vmul.f32 0.03125, %v389_v28 }
 0x13e   : > { %v399_v30 = vadd.f32 1e-05, %v396_v29 }
 0x13f   : > { %v395_v31 = vpop.xlane.xlu1 %394  ;;  %v392_v32 = vpop.xlane.xlu0 %391 }
 0x140   : > { %987 = vrsqrt.f32 %v399_v30  ;;  %v398_v33 = vmul.f32 0.03125, %v395_v31  ;;  %v397_v34 = vmul.f32 0.03125, %v392_v32 }
 0x142   : > { %v401_v35 = vadd.f32 1e-05, %v398_v33  ;;  %v400_v36 = vadd.f32 1e-05, %v397_v34 }
 0x144   : > { %989 = vrsqrt.f32 %v401_v35 }
 0x145   : > { %991 = vrsqrt.f32 %v400_v36 }
 0x14a   : > { %v988_v37 = vpop.eup %987 }
 0x14b   : > { %v405_v38 = vmul.f32 %v988_v37, %v381_v10 }
 0x14d   : > { %v414_v44 = vmul.f32 %v850_v39, %v405_v38 }
 0x14e   : > { %v990_v40 = vpop.eup %989 }
 0x14f   : > { %v992_v41 = vpop.eup %991  ;;  %v407_v42 = vmul.f32 %v990_v40, %v383_v11  ;;  %v423_v49 = vadd.f32 %v851_v45, %v414_v44 }
 0x150   : > { %v406_v43 = vmul.f32 %v992_v41, %v382_v16 }
 0x151   : > { %v416_v46 = vmul.f32 %v850_v39, %v407_v42 }
 0x152   : > { %v415_v47 = vmul.f32 %v850_v39, %v406_v43 }
 0x153   : > { %v425_v48 = vadd.f32 %v851_v45, %v416_v46 }
 0x154   : > { %v424_v50 = vadd.f32 %v851_v45, %v415_v47 }
 0x155   : > { %v427_v51 = vpack.c.bf16 %v425_v48, %v425_v48 }
 0x156   : > { %v426_v52 = vpack.c.bf16 %v424_v50, %v423_v49 }
 0x158   : > { %876 = vmatprep.mubr.msk.bf16.mxu0 %vm367_vm0, %v426_v52 }
 0x159   : > { %877 = vmatmul.mubr.msk.bf16.vlgmr.msra.gmra.mrb[0].mxu0 %vm367_vm0, %v427_v51 }
 0x22c   : > { %v878_v55 = vpop.f32.mrb[0].mxu0 }
 0x22d   : > { %v493_v56 = vadd.f32 %v878_v55, %v430_v53  ;;  %v477_v57 = vpop.f32.mrb[1].mxu0 }
 0x22e   : > { %v491_v59 = vadd.f32 %v477_v57, %v428_v54  ;;  %v879_v60 = vpop.f32.mrb[2].mxu0 }
 0x22f   : > { %497 = vst.msk [vmem:[%s1208_s27 + $0x10] sm:$0xff] %vm358_vm1, %v493_v56  ;;  %v480_v61 = vpop.f32.mrb[3].mxu0 }
 0x230   : > { %495 = vst.msk [vmem:[%s1208_s27] sm:$0xff] %vm358_vm1, %v491_v59  ;;  %v492_v62 = vadd.f32 %v480_v61, %v429_v58 }
 0x232   : > { %496 = vst.msk [vmem:[%s1208_s27 + $0x8] sm:$0xff] %vm358_vm1, %v492_v62 }
 0x236   : > { %v503_v0 = vld [vmem:[%s1208_s27 + $0x10] sm:$0xff] }
 0x237   : > { %v513_v1 = vadd.f32 %v854_v63, %v503_v0  ;;  %v501_v2 = vld [vmem:[%s1208_s27] sm:$0xff] }
 0x238   : > { %v511_v3 = vadd.f32 %v854_v63, %v501_v2 }
 0x239   : > { %v519_v4 = vmul.f32 0.044715, %v513_v1  ;;  %v502_v5 = vld [vmem:[%s1208_s27 + $0x8] sm:$0xff]  ;;  %v516_v23 = vmul.f32 0.5, %v513_v1 }
 0x23a   : > { %v517_v6 = vmul.f32 0.044715, %v511_v3  ;;  %v512_v7 = vadd.f32 %v854_v63, %v502_v5  ;;  %v514_v25 = vmul.f32 0.5, %v511_v3 }
 0x23b   : > { %v522_v8 = vmul.f32 %v519_v4, %v513_v1 }
 0x23c   : > { %v520_v9 = vmul.f32 %v517_v6, %v511_v3  ;;  %v518_v10 = vmul.f32 0.044715, %v512_v7  ;;  %v515_v30 = vmul.f32 0.5, %v512_v7 }
 0x23d   : > { %v525_v11 = vmul.f32 %v522_v8, %v513_v1 }
 0x23e   : > { %v523_v12 = vmul.f32 %v520_v9, %v511_v3  ;;  %v521_v13 = vmul.f32 %v518_v10, %v512_v7 }
 0x23f   : > { %v528_v14 = vadd.f32 %v525_v11, %v513_v1 }
 0x240   : > { %v526_v15 = vadd.f32 %v523_v12, %v511_v3  ;;  %v524_v16 = vmul.f32 %v521_v13, %v512_v7 }
 0x241   : > { %v531_v17 = vmul.f32 0.7978846, %v528_v14 }
 0x242   : > { %v529_v18 = vmul.f32 0.7978846, %v526_v15  ;;  %v527_v19 = vadd.f32 %v524_v16, %v512_v7 }
 0x243   : > { %993 = vtanh.f32 %v531_v17 }
 0x244   : > { %995 = vtanh.f32 %v529_v18  ;;  %v530_v20 = vmul.f32 0.7978846, %v527_v19 }
 0x246   : > { %997 = vtanh.f32 %v530_v20 }
 0x24d   : > { %v994_v21 = vpop.eup %993 }
 0x24e   : > { %v996_v22 = vpop.eup %995  ;;  %v537_v24 = vadd.f32 1.0, %v994_v21 }
 0x24f   : > { %v535_v26 = vadd.f32 1.0, %v996_v22  ;;  %550 = sbr.rel (!%p1170_p3) target bundleno = 659 (0x293), region = 52 }
 0x250   : > { %v998_v27 = vpop.eup %997  ;;  %v540_v28 = vmul.f32 %v537_v24, %v516_v23 }
 0x251   : > { %v538_v29 = vmul.f32 %v535_v26, %v514_v25  ;;  %v536_v31 = vadd.f32 1.0, %v998_v27 }
 0x252   : > { %543 = vst.msk [vmem:[%s1208_s27 + $0x10] sm:$0xff] %vm358_vm1, %v540_v28 }
 0x253   : > { %541 = vst.msk [vmem:[%s1208_s27] sm:$0xff] %vm358_vm1, %v538_v29  ;;  %v539_v32 = vmul.f32 %v536_v31, %v515_v30 }
 0x255   : > { %542 = vst.msk [vmem:[%s1208_s27 + $0x8] sm:$0xff] %vm358_vm1, %v539_v32 }
 0x256   : > { %s1300_s10 = smov (!%p553_p9, %s552_s10), 3 }
 0x257   : > { %s855_s15 = sshll.u32 %s1300_s10, 7 }
 0x258   : > { %p858_p10 = scmp.eq.s32.totalorder %s855_s15, 0 }
 0x259   : > { %999 = sdivrem.u32 (!%p858_p10), %s1300_s10, 3 }
 0x25a   : > { %562 = sbr.rel (%p858_p10) target bundleno = 659 (0x293), region = 56 }
 0x262   : > { %s1258_s26 = spop.drf %999 }
 0x263   : > { %p859_p11 = scmp.le.s32.totalorder %s1258_s26, 0 }
 0x264   : > { %s1075_s20 = smov (!%p859_p11), %s1252_s14   ;;  %s1079_s29 = smov (!%p859_p11), %s1208_s27  }
 0x265   : > { %749 = sbr.rel (%p859_p11) target bundleno = 630 (0x276), region = 144  ;;  %s1083_s16 = smov (!%p859_p11), 0  }
 0x266   : > { %s1087_s17 = smov (!%p859_p11), 0  }
 0x26c LB: >> { %v630_v33 = vld [vmem:[%s1081_s29] sm:$0xff]  ;;  %v632_v34 = vld [vmem:[%s1081_s29 + $0x8] sm:$0xff]  ;;  %v634_v35 = vld [vmem:[%s1081_s29 + $0x10] sm:$0xff]  ;;  %s636_s23 = sadd.s32 1, %s1085_s16  ;;  %s624_s17 = sadd.s32 1, %s1089_s17   ;;  %s1089_s17 = sphi %s1087_s17, %s624_s17   ;;  %s1085_s16 = sphi %s1083_s16, %s1084_s16   ;;  %s1081_s29 = sphi %s1079_s29, %s641_s29   ;;  %s1077_s20 = sphi %s1075_s20, %s642_s20  }
 0x26d   : >> { %631 = vst [vmem:[%s1077_s20] sm:$0xff] %v630_v33  ;;  %633 = vst [vmem:[%s1077_s20 + $0x8] sm:$0xff] %v632_v34  ;;  %p637_p12 = scmp.ge.s32.totalorder %s636_s23, %s1258_s26  ;;  %p623_p13 = scmp.ge.s32.totalorder %s624_s17, %s1258_s26 }
 0x26e   : >> { %635 = vst [vmem:[%s1077_s20 + $0x10] sm:$0xff] %v634_v35 }
 0x26f   : >> { %s1302_s23 = smov (%p637_p12, %s636_s23), 0  ;;  %626 = sbr.rel (!%p623_p13) target bundleno = 620 (0x26c), region = 150 }
 0x270   : >> { %s639_s25 = smul.u32 24, %s1302_s23  ;;  %s1084_s16 = smov %s1302_s23  }
 0x272   : >> { %s641_s29 = scalar_lea.vmem %s1208_s27, %s639_s25 [#allocation2]   ;;  %s642_s20 = scalar_lea.vmem %s1252_s14, %s639_s25  }
 0x276 PF: > { %1001 = sdivrem.u32 %s1300_s10, 3 }
 0x277   : > { %s860_s18 = smul.u32 24, %s1258_s26 }
 0x279   : > { %s647_s30 = scalar_lea.vmem %s1208_s27, %s860_s18 [#allocation2]   ;;  %s649_s6 = scalar_lea.vmem %s1252_s14, %s860_s18  }
 0x27f   : > { %s1002_s7 = spop.drf %1001 }
 0x280   : > { %p862_p0 = scmp.le.s32.totalorder %s1002_s7, 0 }
 0x281   : > { %s1091_s8 = smov (!%p862_p0), %s649_s6   ;;  %s1095_s9 = smov (!%p862_p0), %s647_s30  }
 0x282   : > { %763 = sbr.rel (%p862_p0) target bundleno = 659 (0x293), region = 155  ;;  %s1099_s11 = smov (!%p862_p0), 0  }
 0x283   : > { %s1103_s12 = smov (!%p862_p0), 0  }
 0x289 LB: >> { %v659_v36 = vld [vmem:[%s1097_s9] sm:$0xff]  ;;  %s661_s13 = sadd.s32 1, %s1101_s11  ;;  %s653_s12 = sadd.s32 1, %s1105_s12   ;;  %s1105_s12 = sphi %s1103_s12, %s653_s12   ;;  %s1101_s11 = sphi %s1099_s11, %s1100_s11   ;;  %s1097_s9 = sphi %s1095_s9, %s666_s9   ;;  %s1093_s8 = sphi %s1091_s8, %s667_s8  }
 0x28a   : >> { %660 = vst [vmem:[%s1093_s8] sm:$0xff] %v659_v36  ;;  %p662_p1 = scmp.ge.s32.totalorder %s661_s13, %s1002_s7  ;;  %p652_p2 = scmp.ge.s32.totalorder %s653_s12, %s1002_s7 }
 0x28c   : >> { %s1304_s13 = smov (%p662_p1, %s661_s13), 0  ;;  %655 = sbr.rel (!%p652_p2) target bundleno = 649 (0x289), region = 161 }
 0x28d   : >> { %s863_s27 = sshll.u32 %s1304_s13, 3  ;;  %s1100_s11 = smov %s1304_s13  }
 0x28e   : >> { %s666_s9 = scalar_lea.vmem %s647_s30, %s863_s27 [#allocation2]   ;;  %s667_s8 = scalar_lea.vmem %s649_s6, %s863_s27  }
 0x293 PF: > { %s15_s22 = sadd.s32 1, %s1073_s22   ;;  %s1293_s18 = smov %s1061_s19 }
 0x294   : > { %p12_p3 = scmp.ge.s32.totalorder %s15_s22, 4   ;;  %s1294_s19 = smov %s1179_s28 }
 0x295   : > { %s1295_s20 = smov %s1069_s21  ;;  %s1296_s21 = smov %s1298_s24 }
 0x296   :  { %14 = sbr.rel (!%p12_p3) target bundleno = 3 (0x3), region = 172 }

// kernel: multi_scale_encoder_forward.16
= control target key start
LH: loop header
LB: loop body
LE: loop exit
PB: predicated region body
PF: predicated region fallthrough
CT: control target
= control target key end

     0   :  { %s1025_s15 = smov 0   ;;  %s1027_s16 = smov 0   ;;  %s1163_s0 = inlined_call_operand.vmem [shape: f32[34,32], index: 0, kind: input, shape index: {}]   ;;  %s1164_s1 = inlined_call_operand.vmem [shape: f32[32,32], index: 1, kind: input, shape index: {}]   ;;  %s1165_s2 = inlined_call_operand.vmem [shape: f32[1,32], index: 2, kind: input, shape index: {}]   ;;  %s1166_s3 = inlined_call_operand.vmem [shape: f32[34,32], index: 3, kind: input, shape index: {}]   ;;  %s1167_s4 = inlined_call_operand.vmem [shape: f32[34,32], index: 4, kind: output, shape index: {}]  }
   0x1   :  { %s1029_s17 = smov 0   ;;  %s1031_s18 = smov 0  }
   0x2   :  { %s1033_s19 = smov 0  }
   0x3 LB: > { %s747_s20 = sadd.s32 4294967295, %s965_s19   ;;  %s33_s21 = sadd.s32 1, %s961_s18  ;;  %s965_s19 = sphi %s1033_s19, %s14_s19   ;;  %s961_s18 = sphi %s1031_s18, %s1172_s18   ;;  %s957_s17 = sphi %s1029_s17, %s1171_s17   ;;  %s953_s16 = sphi %s1027_s16, %s1170_s16   ;;  %s949_s15 = sphi %s1025_s15, %s1169_s15  }
   0x4   : > { %p35_p0 = scmp.ge.s32.totalorder %s33_s21, 2  ;;  %s152_s22 = sadd.s32 1, %s953_s16 }
   0x5   : > { %p162_p1 = scmp.ne.s32.totalorder %s953_s16, %s949_s15  ;;  %p163_p2 = scmp.eq.s32.totalorder %s747_s20, 1 }
   0x6   : > { %s1174_s21 = smov (%p35_p0, %s33_s21), 0  ;;  %p753_p4 = scmp.ge.s32.totalorder %s965_s19, 1 }
   0x7   : > { %p1054_p3 = por %p163_p2, %p162_p1  ;;  %s147_s24 = ssub.s32 %s961_s18, %s1174_s21 }
   0x8   : > { %p245_p5 = scmp.lt.s32.totalorder %s965_s19, 3  ;;  %p150_p6 = scmp.eq.s32.totalorder %s147_s24, 0 }
   0xa   : > { %p246_p7 = pnand %p753_p4, %p245_p5 }
   0xb   : > { %s1063_s25 = scalar_select %p150_p6, %s953_s16, %s152_s22  }
   0xc   : > { %249 = sbr.rel (%p246_p7) target bundleno = 318 (0x13e), region = 36  ;;  %v368_v0 = vld [vmem:[%s1164_s1] sm:$0xff] (!%p246_p7)  ;;  %v369_v1 = vld [vmem:[%s1164_s1 + $0x8] sm:$0xff] (!%p246_p7)  ;;  %v370_v2 = vld [vmem:[%s1164_s1 + $0x10] sm:$0xff] (!%p246_p7)  ;;  %s297_s7 = sand.u32 (!%p246_p7), 1, %s949_s15   ;;  %vm356_vm0 = vcmask (!%p246_p7), 261120  }
   0xd   : > { %s1075_s6 = smul.u32 (!%p246_p7), 3, %s957_s17  ;;  %v372_v3 = vpack.c.bf16 (!%p246_p7), %v369_v1, %v368_v0  ;;  %v371_v4 = vld [vmem:[%s1164_s1 + $0x18] sm:$0xff] (!%p246_p7)  ;;  %v999_v6 = vmov (!%p246_p7), 0.0   ;;  %v758_v22 = vld [vmem:[%s1165_s2] ss:$0 sm:$0xff] (!%p246_p7) }
   0xe   : > { %s784_s10 = smul.u32 (!%p246_p7), 24, %s297_s7  ;;  %v373_v5 = vpack.c.bf16 (!%p246_p7), %v371_v4, %v370_v2 }
   0xf   : > { %p305_p8 = scmp.lt.s32.totalorder (!%p246_p7), %s1075_s6, 4  ;;  %776 = vmatprep.subr.bf16.mxu0 (!%p246_p7), %v372_v3 }
  0x10   : > { %777 = vmatpush3.bf16.msra.mxu0 (!%p246_p7), %v372_v3  ;;  %s1084_s12 = scalar_lea.vmem (!%p246_p7), [#allocation2], %s784_s10  }
  0x11   : > { %359 = vst.msk [vmem:[%s1084_s12 + $0x10] sm:$0xff] (!%p246_p7), %vm356_vm0, %v999_v6  ;;  %357 = vst.msk [vmem:[%s1084_s12] sm:$0xff] (!%p246_p7), %vm356_vm0, %v999_v6  ;;  %778 = vmatprep.subr.bf16.mxu0 (!%p246_p7), %v373_v5 }
  0x12   : > { %358 = vst.msk [vmem:[%s1084_s12 + $0x8] sm:$0xff] (!%p246_p7), %vm356_vm0, %v999_v6 }
  0x13   : > { %s1082_s11 = scalar_select %p305_p8, %s1075_s6, 4 }
  0x14   : > { %779 = vmatpush3.bf16.msra.mxu0 %v373_v5  ;;  %s468_s29 = ssub.s32 (%p1054_p3), 5, %s1075_s6  ;;  %s771_s30 = smul.u32 (%p1054_p3), 24, %s957_s17 }
  0x15   : > { %s754_s13 = sshll.u32 %s1082_s11, 3  ;;  %p469_p9 = scmp.lt.s32.totalorder (%p1054_p3), %s468_s29, 3 }
  0x16   : > { %s311_s20 = scalar_lea.vmem %s1163_s0, %s754_s13  ;;  %s340_s26 = scalar_lea.vmem %s1166_s3, %s754_s13 }
  0x17   : > { %v360_v7 = vld [vmem:[%s311_s20] sm:$0xff]  ;;  %v361_v8 = vld [vmem:[%s311_s20 + $0x8] sm:$0xff]  ;;  %v362_v9 = vld [vmem:[%s311_s20 + $0x10] sm:$0xff]  ;;  %s1129_s8 = scalar_lea.vmem (%p1054_p3), %s1167_s4, %s771_s30  }
  0x18   : > { %v363_v10 = vpack.c.bf16 %v361_v8, %v360_v7  ;;  %v364_v11 = vpack.c.bf16 %v362_v9, %v362_v9  ;;  %v367_v12 = vld [vmem:[%s1084_s12 + $0x10] sm:$0xff]  ;;  %v365_v13 = vld [vmem:[%s1084_s12] sm:$0xff] }
  0x19   : > { %v366_v17 = vld [vmem:[%s1084_s12 + $0x8] sm:$0xff]  ;;  %v453_v23 = vld [vmem:[%s340_s26 + $0x10] sm:$0xff] }
  0x1a   : > { %780 = vmatprep.mubr.msk.bf16.mxu0 %vm356_vm0, %v363_v10  ;;  %v451_v25 = vld [vmem:[%s340_s26] sm:$0xff]  ;;  %v452_v29 = vld [vmem:[%s340_s26 + $0x8] sm:$0xff] }
  0x1b   : > { %781 = vmatmul.mubr.msk.bf16.vlgmr.msra.gmra.mrb[0].mxu0 %vm356_vm0, %v364_v11 }
  0xee   : > { %v782_v14 = vpop.f32.mrb[0].mxu0 }
  0xef   : > { %v431_v15 = vadd.f32 %v782_v14, %v367_v12  ;;  %v415_v16 = vpop.f32.mrb[1].mxu0 }
  0xf0   : > { %v429_v18 = vadd.f32 %v415_v16, %v365_v13  ;;  %v783_v19 = vpop.f32.mrb[2].mxu0 }
  0xf1   : > { %434 = vst.msk [vmem:[%s1084_s12 + $0x10] sm:$0xff] %vm356_vm0, %v431_v15  ;;  %v418_v20 = vpop.f32.mrb[3].mxu0 }
  0xf2   : > { %432 = vst.msk [vmem:[%s1084_s12] sm:$0xff] %vm356_vm0, %v429_v18  ;;  %v430_v21 = vadd.f32 %v418_v20, %v366_v17 }
  0xf4   : > { %433 = vst.msk [vmem:[%s1084_s12 + $0x8] sm:$0xff] %vm356_vm0, %v430_v21 }
  0xf8   : > { %v440_v24 = vld [vmem:[%s1084_s12 + $0x10] sm:$0xff] }
  0xf9   : > { %v450_v26 = vadd.f32 %v758_v22, %v440_v24  ;;  %v438_v27 = vld [vmem:[%s1084_s12] sm:$0xff] }
  0xfa   : > { %v448_v28 = vadd.f32 %v758_v22, %v438_v27  ;;  %466 = sbr.rel (!%p1054_p3) target bundleno = 318 (0x13e), region = 48 }
  0xfb   : > { %v456_v30 = vadd.f32 %v453_v23, %v450_v26  ;;  %v439_v31 = vld [vmem:[%s1084_s12 + $0x8] sm:$0xff] }
  0xfc   : > { %v454_v32 = vadd.f32 %v451_v25, %v448_v28  ;;  %v449_v33 = vadd.f32 %v758_v22, %v439_v31 }
  0xfd   : > { %459 = vst.msk [vmem:[%s1084_s12 + $0x10] sm:$0xff] %vm356_vm0, %v456_v30 }
  0xfe   : > { %457 = vst.msk [vmem:[%s1084_s12] sm:$0xff] %vm356_vm0, %v454_v32  ;;  %v455_v34 = vadd.f32 %v452_v29, %v449_v33 }
 0x100   : > { %458 = vst.msk [vmem:[%s1084_s12 + $0x8] sm:$0xff] %vm356_vm0, %v455_v34 }
 0x101   : > { %s1176_s29 = smov (!%p469_p9, %s468_s29), 3 }
 0x102   : > { %s759_s9 = sshll.u32 %s1176_s29, 7 }
 0x103   : > { %p762_p10 = scmp.eq.s32.totalorder %s759_s9, 0 }
 0x104   : > { %891 = sdivrem.u32 (!%p762_p10), %s1176_s29, 3 }
 0x105   : > { %478 = sbr.rel (%p762_p10) target bundleno = 318 (0x13e), region = 52 }
 0x10d   : > { %s1135_s23 = spop.drf %891 }
 0x10e   : > { %p763_p11 = scmp.le.s32.totalorder %s1135_s23, 0 }
 0x10f   : > { %s967_s17 = smov (!%p763_p11), %s1129_s8   ;;  %s971_s6 = smov (!%p763_p11), %s1084_s12  }
 0x110   : > { %668 = sbr.rel (%p763_p11) target bundleno = 289 (0x121), region = 137  ;;  %s975_s10 = smov (!%p763_p11), 0  }
 0x111   : > { %s979_s11 = smov (!%p763_p11), 0  }
 0x117 LB: >> { %v546_v35 = vld [vmem:[%s973_s6] sm:$0xff]  ;;  %v548_v36 = vld [vmem:[%s973_s6 + $0x8] sm:$0xff]  ;;  %v550_v37 = vld [vmem:[%s973_s6 + $0x10] sm:$0xff]  ;;  %s552_s13 = sadd.s32 1, %s977_s10  ;;  %s540_s11 = sadd.s32 1, %s981_s11   ;;  %s981_s11 = sphi %s979_s11, %s540_s11   ;;  %s977_s10 = sphi %s975_s10, %s976_s10   ;;  %s973_s6 = sphi %s971_s6, %s557_s6   ;;  %s969_s17 = sphi %s967_s17, %s558_s17  }
 0x118   : >> { %547 = vst [vmem:[%s969_s17] sm:$0xff] %v546_v35  ;;  %549 = vst [vmem:[%s969_s17 + $0x8] sm:$0xff] %v548_v36  ;;  %p553_p12 = scmp.ge.s32.totalorder %s552_s13, %s1135_s23  ;;  %p539_p13 = scmp.ge.s32.totalorder %s540_s11, %s1135_s23 }
 0x119   : >> { %551 = vst [vmem:[%s969_s17 + $0x10] sm:$0xff] %v550_v37 }
 0x11a   : >> { %s1178_s13 = smov (%p553_p12, %s552_s13), 0  ;;  %542 = sbr.rel (!%p539_p13) target bundleno = 279 (0x117), region = 143 }
 0x11b   : >> { %s555_s14 = smul.u32 24, %s1178_s13  ;;  %s976_s10 = smov %s1178_s13  }
 0x11d   : >> { %s557_s6 = scalar_lea.vmem %s1084_s12, %s555_s14 [#allocation2]   ;;  %s558_s17 = scalar_lea.vmem %s1129_s8, %s555_s14  }
 0x121 PF: > { %893 = sdivrem.u32 %s1176_s29, 3 }
 0x122   : > { %s764_s15 = smul.u32 24, %s1135_s23 }
 0x124   : > { %s563_s20 = scalar_lea.vmem %s1084_s12, %s764_s15 [#allocation2]   ;;  %s565_s22 = scalar_lea.vmem %s1129_s8, %s764_s15  }
 0x12a   : > { %s894_s24 = spop.drf %893 }
 0x12b   : > { %p766_p0 = scmp.le.s32.totalorder %s894_s24, 0 }
 0x12c   : > { %s983_s26 = smov (!%p766_p0), %s565_s22   ;;  %s987_s27 = smov (!%p766_p0), %s563_s20  }
 0x12d   : > { %682 = sbr.rel (%p766_p0) target bundleno = 318 (0x13e), region = 148  ;;  %s991_s28 = smov (!%p766_p0), 0  }
 0x12e   : > { %s995_s30 = smov (!%p766_p0), 0  }
 0x134 LB: >> { %v575_v38 = vld [vmem:[%s989_s27] sm:$0xff]  ;;  %s577_s5 = sadd.s32 1, %s993_s28  ;;  %s569_s30 = sadd.s32 1, %s997_s30   ;;  %s997_s30 = sphi %s995_s30, %s569_s30   ;;  %s993_s28 = sphi %s991_s28, %s992_s28   ;;  %s989_s27 = sphi %s987_s27, %s582_s27   ;;  %s985_s26 = sphi %s983_s26, %s583_s26  }
 0x135   : >> { %576 = vst [vmem:[%s985_s26] sm:$0xff] %v575_v38  ;;  %p578_p1 = scmp.ge.s32.totalorder %s577_s5, %s894_s24  ;;  %p568_p2 = scmp.ge.s32.totalorder %s569_s30, %s894_s24 }
 0x137   : >> { %s1180_s5 = smov (%p578_p1, %s577_s5), 0  ;;  %571 = sbr.rel (!%p568_p2) target bundleno = 308 (0x134), region = 154 }
 0x138   : >> { %s767_s12 = sshll.u32 %s1180_s5, 3  ;;  %s992_s28 = smov %s1180_s5  }
 0x139   : >> { %s582_s27 = scalar_lea.vmem %s563_s20, %s767_s12 [#allocation2]   ;;  %s583_s26 = scalar_lea.vmem %s565_s22, %s767_s12  }
 0x13e PF: > { %s14_s19 = sadd.s32 1, %s965_s19   ;;  %s1169_s15 = smov %s953_s16 }
 0x13f   : > { %p11_p3 = scmp.ge.s32.totalorder %s14_s19, 4   ;;  %s1170_s16 = smov %s1063_s25 }
 0x140   : > { %s1171_s17 = smov %s961_s18  ;;  %s1172_s18 = smov %s1174_s21 }
 0x141   :  { %13 = sbr.rel (!%p11_p3) target bundleno = 3 (0x3), region = 165 }

// kernel: multi_scale_encoder_forward.15
= control target key start
LH: loop header
LB: loop body
LE: loop exit
PB: predicated region body
PF: predicated region fallthrough
CT: control target
= control target key end

     0   :  { %s672_s6 = smov 0   ;;  %s756_s0 = inlined_call_operand.vmem [shape: f32[2,17,96], index: 0, kind: input, shape index: {}]   ;;  %s757_s1 = inlined_call_operand.vmem [shape: f32[2,17,32], index: 1, kind: output, shape index: {}]  }
   0x1 LB: > { %s538_s7 = sadd.s32 4294967295, %s653_s6   ;;  %p542_p0 = scmp.ge.s32.totalorder %s653_s6, 1  ;;  %s653_s6 = sphi %s672_s6, %s11_s6  }
   0x2   : > { %p87_p1 = scmp.lt.s32.totalorder %s653_s6, 3 }
   0x4   : > { %p88_p2 = pnand %p542_p0, %p87_p1 }
   0x5   : > { %p107_p3 = scmp.lt.s32.totalorder (!%p88_p2), %s538_s7, 1  ;;  %vm129_vm0 = vcmask (!%p88_p2), 130048   ;;  %s655_s12 = smov (!%p88_p2), 96   ;;  %vm200_vm1 = vcmask (!%p88_p2), 131072   ;;  %vm193_vm2 = vcmask (!%p88_p2), 138240   ;;  %vm241_vm3 = vcmask (!%p88_p2), 1040384  }
   0x6   : > { %91 = sbr.rel (%p88_p2) target bundleno = 1580 (0x62c), region = 24  ;;  %s656_s13 = smov (!%p88_p2), 64   ;;  %v659_v38 = vmov (!%p88_p2), 0   ;;  %vm481_vm4 = vcmask (!%p88_p2), 253952   ;;  %vm478_vm5 = vcmask (!%p88_p2), 261120  }
   0x7   : > { %s657_s14 = smov (!%p88_p2), 80   ;;  %s658_s15 = smov (!%p88_p2), 112   ;;  %v714_v39 = vsel (!%p88_p2), %vm241_vm3, 65535, %v659_v38 }
   0x8   : > { %s660_s16 = smov (!%p88_p2), 48   ;;  %s661_s17 = smov (!%p88_p2), 16  }
   0xd   : > { %s759_s7 = smov (!%p107_p3, %s538_s7), 1 }
   0xe   : > { %s607_s8 = smul.u32 24, %s759_s7 }
  0x10   : > { %s111_s11 = scalar_lea.vmem %s756_s0, %s607_s8  ;;  %s116_s20 = scalar_lea.vmem %s757_s1, %s607_s8 }
  0x11   : > { %v118_v0 = vld [vmem:[%s111_s11] sm:$0xff]  ;;  %v119_v1 = vld [vmem:[%s111_s11 + $0x8] sm:$0xff]  ;;  %v120_v2 = vld [vmem:[%s111_s11 + $0x10] sm:$0x1] }
  0x12   : > { %v688_v3 = vpack.c.bf16 %v119_v1, %v118_v0  ;;  %v691_v4 = vpack.c.bf16 %v120_v2, %v120_v2 }
  0x14   : > { %125 = vrot.lane.b32.xlu0 %v688_v3, %s655_s12  ;;  %575 = vmatprep.mubr.msk.bf16.mxu0 %vm129_vm0, %v688_v3 }
  0x18   : > { %127 = vrot.lane.b32.xlu0 %v691_v4, %s655_s12 }
  0x86   : > { %v126_v5 = vpop.permute.xlu0 %125 }
  0x87   : > { %603 = vmatprep.subr.msk.bf16.mxu0 %vm129_vm0, %v126_v5  ;;  %v137_v6 = vsel %vm129_vm0, %v126_v5, 0 }
  0x88   : > { %572 = vmatpush3.bf16.xpose.msra.mxu0 %v137_v6 }
  0x8a   : > { %v128_v7 = vpop.permute.xlu0 %127 }
  0x8b   : > { %604 = vmatprep.subr.msk.bf16.mxu0 %vm129_vm0, %v128_v7  ;;  %v140_v8 = vsel %vm129_vm0, %v128_v7, 0 }
  0x90   : > { %574 = vmatpush3.bf16.xpose.msra.mxu0 %v140_v8 }
  0x97   : > { %576 = vmatmul.mubr.msk.bf16.vlgmr.msra.gmra.mrb[0].mxu0 %vm129_vm0, %v691_v4 }
 0x16a   : > { %v577_v9 = vpop.f32.mrb[0].mxu0 }
 0x16b   : > { %v192_v10 = vmul.f32 0.25, %v577_v9  ;;  %v176_v11 = vpop.f32.mrb[1].mxu0 }
 0x16c   : > { %v190_v12 = vmul.f32 0.25, %v176_v11  ;;  %v578_v13 = vpop.f32.mrb[2].mxu0 }
 0x16d   : > { %v179_v14 = vpop.f32.mrb[3].mxu0  ;;  %v201_v15 = vsel %vm200_vm1, %v192_v10, -inf }
 0x16e   : > { %v191_v16 = vmul.f32 0.25, %v179_v14  ;;  %202 = vmax.xlane.f32.xlu0 %v201_v15  ;;  %v194_v17 = vsel %vm193_vm2, %v190_v12, -inf }
 0x16f   : > { %195 = vmax.xlane.f32.xlu1 %v194_v17 }
 0x170   : > { %v197_v18 = vsel %vm193_vm2, %v191_v16, -inf }
 0x173   : > { %198 = vmax.xlane.f32.xlu1 %v197_v18 }
 0x184   : > { %230 = vrot.lane.b32.xlu1 %v688_v3, %s656_s13  ;;  %299 = vrot.lane.b32.xlu0 %v688_v3, %s657_s14 }
 0x1fb   : > { %v203_v19 = vpop.xlane.xlu0 %202 }
 0x1fc   : > { %v206_v20 = vsub.f32 %v192_v10, %v203_v19  ;;  %v196_v21 = vpop.xlane.xlu1 %195 }
 0x1fd   : > { %v204_v22 = vsub.f32 %v190_v12, %v196_v21 }
 0x1fe   : > { %v211_v23 = vmul.f32 1.442695, %v206_v20 }
 0x1ff   : > { %v207_v24 = vmul.f32 1.442695, %v204_v22  ;;  %v300_v42 = vpop.permute.xlu0 %299 }
 0x200   : > { %623 = vpow2.f32 %v211_v23  ;;  %v199_v25 = vpop.xlane.xlu1 %198  ;;  %v310_v51 = vsel %vm129_vm0, %v300_v42, 0 }
 0x201   : > { %v205_v26 = vsub.f32 %v191_v16, %v199_v25  ;;  %625 = vpow2.f32 %v207_v24 }
 0x203   : > { %v209_v27 = vmul.f32 1.442695, %v205_v26 }
 0x204   : > { %v231_v28 = vpop.permute.xlu1 %230 }
 0x205   : > { %579 = vmatprep.subr.bf16.mxu1 %v231_v28  ;;  %627 = vpow2.f32 %v209_v27 }
 0x206   : > { %580 = vmatpush3.bf16.msra.mxu1 %v231_v28 }
 0x20a   : > { %v624_v29 = vpop.eup %623 }
 0x20b   : > { %v219_v30 = vsel %vm200_vm1, %v624_v29, 0.0  ;;  %v626_v31 = vpop.eup %625 }
 0x20c   : > { %220 = vadd.xlane.f32.xlu1 %v219_v30  ;;  %v213_v32 = vsel %vm193_vm2, %v626_v31, 0.0 }
 0x20f   : > { %v628_v33 = vpop.eup %627 }
 0x210   : > { %214 = vadd.xlane.f32.xlu1 %v213_v32  ;;  %v216_v34 = vsel %vm193_vm2, %v628_v33, 0.0 }
 0x214   : > { %217 = vadd.xlane.f32.xlu1 %v216_v34 }
 0x225   : > { %232 = vrot.lane.b32.xlu1 %v691_v4, %s656_s13 }
 0x229   : > { %301 = vrot.lane.b32.xlu1 %v691_v4, %s657_s14 }
 0x22d   : > { %295 = vrot.lane.b32.xlu1 %v688_v3, %s658_s15 }
 0x231   : > { %297 = vrot.lane.b32.xlu1 %v691_v4, %s658_s15 }
 0x299   : > { %v221_v35 = vpop.xlane.xlu1 %220 }
 0x29a   : > { %629 = vrcp.f32 %v221_v35 }
 0x29d   : > { %v215_v36 = vpop.xlane.xlu1 %214 }
 0x29e   : > { %631 = vrcp.f32 %v215_v36 }
 0x2a1   : > { %v218_v37 = vpop.xlane.xlu1 %217 }
 0x2a2   : > { %633 = vrcp.f32 %v218_v37 }
 0x2a4   : > { %v630_v43 = vpop.eup %629 }
 0x2a5   : > { %v233_v40 = vpop.permute.xlu1 %232  ;;  %v227_v47 = vmul.f32 %v630_v43, %v624_v29 }
 0x2a6   : > { %v245_v41 = vand.u32 %v714_v39, %v233_v40 }
 0x2a7   : > { %v229_v52 = vpack.c.bf16 %v227_v47, %v227_v47 }
 0x2a8   : > { %581 = vmatprep.subr.bf16.mxu1 %v245_v41  ;;  %v632_v44 = vpop.eup %631 }
 0x2a9   : > { %582 = vmatpush3.bf16.msra.mxu1 %v245_v41  ;;  %v302_v45 = vpop.permute.xlu1 %301  ;;  %v225_v48 = vmul.f32 %v632_v44, %v626_v31 }
 0x2aa   : > { %605 = vmatprep.subr.msk.bf16.mxu1 %vm129_vm0, %v300_v42  ;;  %v313_v54 = vsel %vm129_vm0, %v302_v45, 0 }
 0x2ac   : > { %v634_v46 = vpop.eup %633 }
 0x2ad   : > { %v226_v49 = vmul.f32 %v634_v46, %v628_v33  ;;  %v296_v53 = vpop.permute.xlu1 %295 }
 0x2af   : > { %v228_v50 = vpack.c.bf16 %v226_v49, %v225_v48 }
 0x2b1   : > { %583 = vmatprep.mubr.msk.bf16.mxu1 %vm193_vm2, %v228_v50  ;;  %v298_v55 = vpop.permute.xlu1 %297 }
 0x2b2   : > { %584 = vmatmul.mubr.msk.bf16.vlgmr.msra.gmra.mrb[0].mxu1 %vm193_vm2, %v229_v52 }
 0x2b3   : > { %588 = vmatpush3.bf16.xpose.msra.mxu1 %v310_v51  ;;  %591 = vmatprep.mubr.msk.bf16.mxu1 %vm129_vm0, %v296_v53 }
 0x2b4   : > { %606 = vmatprep.subr.msk.bf16.mxu1 %vm129_vm0, %v302_v45 }
 0x2bb   : > { %590 = vmatpush3.bf16.xpose.msra.mxu1 %v313_v54 }
 0x2c2   : > { %592 = vmatmul.mubr.msk.bf16.vlgmr.msra.gmra.mrb[4].mxu1 %vm129_vm0, %v298_v55 }
 0x385   : > { %v725_v56 = vpop.f32.mrb[0].mxu1 }
 0x386   : > { %v727_v57 = vpop.f32.mrb[1].mxu1 }
 0x387   : > { %v586_v58 = vpop.f32.mrb[2].mxu1 }
 0x388   : > { %v729_v59 = vpop.f32.mrb[3].mxu1 }
 0x395   : > { %v593_v60 = vpop.f32.mrb[4].mxu1 }
 0x396   : > { %v349_v61 = vpop.f32.mrb[5].mxu1  ;;  %v365_v1 = vmul.f32 0.25, %v593_v60 }
 0x397   : > { %v363_v62 = vmul.f32 0.25, %v349_v61  ;;  %v594_v63 = vpop.f32.mrb[6].mxu1 }
 0x398   : > { %v352_v0 = vpop.f32.mrb[7].mxu1  ;;  %v372_v7 = vsel %vm200_vm1, %v365_v1, -inf }
 0x399   : > { %v364_v2 = vmul.f32 0.25, %v352_v0  ;;  %v366_v5 = vsel %vm193_vm2, %v363_v62, -inf }
 0x39a   : > { %367 = vmax.xlane.f32.xlu1 %v366_v5 }
 0x39b   : > { %v369_v6 = vsel %vm193_vm2, %v364_v2, -inf }
 0x39c   : > { %370 = vmax.xlane.f32.xlu0 %v369_v6 }
 0x39e   : > { %373 = vmax.xlane.f32.xlu1 %v372_v7 }
 0x427   : > { %v368_v8 = vpop.xlane.xlu1 %367 }
 0x428   : > { %v375_v10 = vsub.f32 %v363_v62, %v368_v8 }
 0x429   : > { %v371_v9 = vpop.xlane.xlu0 %370 }
 0x42a   : > { %v376_v11 = vsub.f32 %v364_v2, %v371_v9  ;;  %v378_v15 = vmul.f32 1.442695, %v375_v10 }
 0x42b   : > { %v374_v12 = vpop.xlane.xlu1 %373 }
 0x42c   : > { %v380_v13 = vmul.f32 1.442695, %v376_v11  ;;  %v377_v14 = vsub.f32 %v365_v1, %v374_v12 }
 0x42e   : > { %635 = vpow2.f32 %v380_v13  ;;  %v382_v16 = vmul.f32 1.442695, %v377_v14 }
 0x430   : > { %637 = vpow2.f32 %v382_v16 }
 0x431   : > { %639 = vpow2.f32 %v378_v15 }
 0x438   : > { %v636_v17 = vpop.eup %635 }
 0x439   : > { %v387_v18 = vsel %vm193_vm2, %v636_v17, 0.0 }
 0x43a   : > { %v638_v19 = vpop.eup %637  ;;  %388 = vadd.xlane.f32.xlu1 %v387_v18 }
 0x43b   : > { %v390_v20 = vsel %vm200_vm1, %v638_v19, 0.0  ;;  %v640_v21 = vpop.eup %639 }
 0x43c   : > { %391 = vadd.xlane.f32.xlu0 %v390_v20  ;;  %v384_v22 = vsel %vm193_vm2, %v640_v21, 0.0 }
 0x440   : > { %385 = vadd.xlane.f32.xlu0 %v384_v22 }
 0x44b   : > { %401 = vrot.lane.b32.xlu1 %v688_v3, %s660_s16 }
 0x456   : > { %403 = vrot.lane.b32.xlu0 %v691_v4, %s660_s16 }
 0x4c7   : > { %v389_v23 = vpop.xlane.xlu1 %388 }
 0x4c9   : > { %v392_v24 = vpop.xlane.xlu0 %391 }
 0x4ca   : > { %641 = vrcp.f32 %v392_v24 }
 0x4cb   : > { %v402_v25 = vpop.permute.xlu1 %401  ;;  %643 = vrcp.f32 %v389_v23 }
 0x4cc   : > { %595 = vmatprep.subr.bf16.mxu0 %v402_v25 }
 0x4cd   : > { %v386_v26 = vpop.xlane.xlu0 %385  ;;  %596 = vmatpush3.bf16.msra.mxu0 %v402_v25 }
 0x4ce   : > { %645 = vrcp.f32 %v386_v26 }
 0x4d1   : > { %v404_v27 = vpop.permute.xlu0 %403 }
 0x4d2   : > { %v413_v28 = vand.u32 %v404_v27, %v714_v39 }
 0x4d4   : > { %597 = vmatprep.subr.bf16.mxu0 %v413_v28  ;;  %v642_v29 = vpop.eup %641 }
 0x4d5   : > { %598 = vmatpush3.bf16.msra.mxu0 %v413_v28  ;;  %v644_v30 = vpop.eup %643  ;;  %v398_v3 = vmul.f32 %v642_v29, %v638_v19 }
 0x4d6   : > { %v397_v32 = vmul.f32 %v644_v30, %v636_v17 }
 0x4d7   : > { %v400_v34 = vpack.c.bf16 %v398_v3, %v398_v3 }
 0x4d8   : > { %v646_v31 = vpop.eup %645 }
 0x4d9   : > { %v396_v4 = vmul.f32 %v646_v31, %v640_v21 }
 0x4db   : > { %v399_v33 = vpack.c.bf16 %v397_v32, %v396_v4 }
 0x4dd   : > { %599 = vmatprep.mubr.msk.bf16.mxu0 %vm193_vm2, %v399_v33 }
 0x4de   : > { %600 = vmatmul.mubr.msk.bf16.vlgmr.msra.gmra.mrb[4].mxu0 %vm193_vm2, %v400_v34 }
 0x5b1   : > { %v601_v35 = vpop.f32.mrb[4].mxu0 }
 0x5b2   : > { %470 = vrot.lane.b32.xlu0 %v601_v35, %s661_s17  ;;  %v449_v36 = vpop.f32.mrb[5].mxu0 }
 0x5b3   : > { %466 = vrot.lane.b32.xlu1 %v449_v36, %s661_s17  ;;  %v602_v37 = vpop.f32.mrb[6].mxu0 }
 0x5b4   : > { %v452_v38 = vpop.f32.mrb[7].mxu0 }
 0x5b7   : > { %468 = vrot.lane.b32.xlu1 %v452_v38, %s661_s17 }
 0x624   : > { %v471_v39 = vpop.permute.xlu0 %470 }
 0x625   : > { %v477_v40 = vsel %vm129_vm0, %v725_v56, %v471_v39  ;;  %v467_v41 = vpop.permute.xlu1 %466 }
 0x626   : > { %482 = vst.msk [vmem:[%s116_s20 + $0x10] sm:$0x1] %vm481_vm4, %v477_v40  ;;  %v475_v42 = vsel %vm129_vm0, %v727_v57, %v467_v41 }
 0x627   : > { %479 = vst.msk [vmem:[%s116_s20] sm:$0xff] %vm478_vm5, %v475_v42 }
 0x629   : > { %v469_v43 = vpop.permute.xlu1 %468 }
 0x62a   : > { %v476_v44 = vsel %vm129_vm0, %v729_v59, %v469_v43 }
 0x62b   : > { %480 = vst.msk [vmem:[%s116_s20 + $0x8] sm:$0xff] %vm478_vm5, %v476_v44 }
 0x62c PF: > { %s11_s6 = sadd.s32 1, %s653_s6  }
 0x62d   : > { %p8_p4 = scmp.ge.s32.totalorder %s11_s6, 4  }
 0x62f   :  { %10 = sbr.rel (!%p8_p4) target bundleno = 1 (0x1), region = 54 }

// kernel: multi_scale_encoder_forward.18
= control target key start
LH: loop header
LB: loop body
LE: loop exit
PB: predicated region body
PF: predicated region fallthrough
CT: control target
= control target key end

     0   :  { %s1038_s15 = smov 0   ;;  %s1040_s16 = smov 0   ;;  %s1190_s0 = inlined_call_operand.vmem [shape: f32[34,64], index: 0, kind: input, shape index: {}]   ;;  %s1191_s1 = inlined_call_operand.vmem [shape: f32[64,32], index: 1, kind: input, shape index: {}]   ;;  %s1192_s2 = inlined_call_operand.vmem [shape: f32[1,32], index: 2, kind: input, shape index: {}]   ;;  %s1193_s3 = inlined_call_operand.vmem [shape: f32[34,32], index: 3, kind: input, shape index: {}]   ;;  %s1194_s4 = inlined_call_operand.vmem [shape: f32[34,32], index: 4, kind: output, shape index: {}]  }
   0x1   :  { %s1042_s17 = smov 0   ;;  %s1044_s18 = smov 0  }
   0x2   :  { %s1046_s19 = smov 0  }
   0x3 LB: > { %s754_s20 = sadd.s32 4294967295, %s978_s19   ;;  %s33_s21 = sadd.s32 1, %s974_s18  ;;  %s978_s19 = sphi %s1046_s19, %s14_s19   ;;  %s974_s18 = sphi %s1044_s18, %s1199_s18   ;;  %s970_s17 = sphi %s1042_s17, %s1198_s17   ;;  %s966_s16 = sphi %s1040_s16, %s1197_s16   ;;  %s962_s15 = sphi %s1038_s15, %s1196_s15  }
   0x4   : > { %p35_p0 = scmp.ge.s32.totalorder %s33_s21, 2  ;;  %s152_s22 = sadd.s32 1, %s966_s16 }
   0x5   : > { %p162_p1 = scmp.ne.s32.totalorder %s966_s16, %s962_s15  ;;  %p163_p2 = scmp.eq.s32.totalorder %s754_s20, 1 }
   0x6   : > { %s1201_s21 = smov (%p35_p0, %s33_s21), 0  ;;  %p760_p4 = scmp.ge.s32.totalorder %s978_s19, 1 }
   0x7   : > { %p1067_p3 = por %p163_p2, %p162_p1  ;;  %s147_s24 = ssub.s32 %s974_s18, %s1201_s21 }
   0x8   : > { %p245_p5 = scmp.lt.s32.totalorder %s978_s19, 3  ;;  %p150_p6 = scmp.eq.s32.totalorder %s147_s24, 0 }
   0xa   : > { %p246_p7 = pnand %p760_p4, %p245_p5 }
   0xb   : > { %s1076_s25 = scalar_select %p150_p6, %s966_s16, %s152_s22  }
   0xc   : > { %249 = sbr.rel (%p246_p7) target bundleno = 322 (0x142), region = 36  ;;  %v368_v0 = vld [vmem:[%s1191_s1] sm:$0xff] (!%p246_p7)  ;;  %v369_v1 = vld [vmem:[%s1191_s1 + $0x8] sm:$0xff] (!%p246_p7)  ;;  %v370_v2 = vld [vmem:[%s1191_s1 + $0x10] sm:$0xff] (!%p246_p7)  ;;  %s297_s7 = sand.u32 (!%p246_p7), 1, %s962_s15   ;;  %vm356_vm0 = vcmask (!%p246_p7), 261120  }
   0xd   : > { %s1088_s6 = smul.u32 (!%p246_p7), 3, %s970_s17  ;;  %v376_v3 = vpack.c.bf16 (!%p246_p7), %v369_v1, %v368_v0  ;;  %v371_v4 = vld [vmem:[%s1191_s1 + $0x18] sm:$0xff] (!%p246_p7)  ;;  %v372_v6 = vld [vmem:[%s1191_s1 + $0x20] sm:$0xff] (!%p246_p7)  ;;  %v373_v7 = vld [vmem:[%s1191_s1 + $0x28] sm:$0xff] (!%p246_p7)  ;;  %v1012_v8 = vmov (!%p246_p7), 0.0   ;;  %vm380_vm1 = vcmask (!%p246_p7), 523264  }
   0xe   : > { %s797_s10 = smul.u32 (!%p246_p7), 24, %s297_s7  ;;  %v377_v5 = vpack.c.bf16 (!%p246_p7), %v371_v4, %v370_v2  ;;  %v378_v9 = vpack.c.bf16 (!%p246_p7), %v373_v7, %v372_v6  ;;  %v374_v10 = vld [vmem:[%s1191_s1 + $0x30] sm:$0xff] (!%p246_p7)  ;;  %v375_v11 = vld [vmem:[%s1191_s1 + $0x38] sm:$0xff] (!%p246_p7)  ;;  %v765_v28 = vld [vmem:[%s1192_s2] ss:$0 sm:$0xff] (!%p246_p7) }
   0xf   : > { %p305_p8 = scmp.lt.s32.totalorder (!%p246_p7), %s1088_s6, 4  ;;  %785 = vmatprep.subr.bf16.mxu0 (!%p246_p7), %v376_v3  ;;  %v379_v14 = vpack.c.bf16 (!%p246_p7), %v375_v11, %v374_v10 }
  0x10   : > { %786 = vmatpush3.bf16.msra.mxu0 (!%p246_p7), %v376_v3  ;;  %s1103_s20 = scalar_lea.vmem (!%p246_p7), [#allocation2], %s797_s10  }
  0x11   : > { %359 = vst.msk [vmem:[%s1103_s20 + $0x10] sm:$0xff] (!%p246_p7), %vm356_vm0, %v1012_v8  ;;  %357 = vst.msk [vmem:[%s1103_s20] sm:$0xff] (!%p246_p7), %vm356_vm0, %v1012_v8  ;;  %787 = vmatprep.subr.bf16.mxu0 (!%p246_p7), %v377_v5 }
  0x12   : > { %358 = vst.msk [vmem:[%s1103_s20 + $0x8] sm:$0xff] (!%p246_p7), %vm356_vm0, %v1012_v8 }
  0x13   : > { %s1101_s15 = scalar_select %p305_p8, %s1088_s6, 4 }
  0x14   : > { %788 = vmatpush3.bf16.msra.mxu0 %v377_v5  ;;  %s475_s12 = ssub.s32 (%p1067_p3), 5, %s1088_s6  ;;  %s778_s13 = smul.u32 (%p1067_p3), 24, %s970_s17 }
  0x15   : > { %s761_s28 = sshll.u32 %s1101_s15, 3  ;;  %789 = vmatprep.subr.bf16.mxu0 %v378_v9  ;;  %p476_p9 = scmp.lt.s32.totalorder (%p1067_p3), %s475_s12, 3 }
  0x16   : > { %s311_s5 = scalar_lea.vmem %s1190_s0, %s761_s28  ;;  %s340_s9 = scalar_lea.vmem %s1193_s3, %s761_s28 }
  0x17   : > { %v360_v12 = vld [vmem:[%s311_s5] sm:$0xff]  ;;  %v361_v13 = vld [vmem:[%s311_s5 + $0x8] sm:$0xff]  ;;  %v362_v16 = vld [vmem:[%s311_s5 + $0x10] sm:$0xff]  ;;  %s1156_s22 = scalar_lea.vmem (%p1067_p3), %s1194_s4, %s778_s13  }
  0x18   : > { %v363_v15 = vpack.c.bf16 %v361_v13, %v360_v12  ;;  %790 = vmatpush3.bf16.msra.mxu0 %v378_v9  ;;  %v364_v17 = vpack.c.bf16 %v362_v16, %v362_v16  ;;  %v367_v18 = vld [vmem:[%s1103_s20 + $0x10] sm:$0xff]  ;;  %v365_v19 = vld [vmem:[%s1103_s20] sm:$0xff] }
  0x19   : > { %791 = vmatprep.subr.bf16.mxu0 %v379_v14  ;;  %v366_v23 = vld [vmem:[%s1103_s20 + $0x8] sm:$0xff]  ;;  %v460_v29 = vld [vmem:[%s340_s9 + $0x10] sm:$0xff] }
  0x1a   : > { %793 = vmatprep.mubr.msk.bf16.mxu0 %vm380_vm1, %v363_v15  ;;  %v458_v31 = vld [vmem:[%s340_s9] sm:$0xff]  ;;  %v459_v35 = vld [vmem:[%s340_s9 + $0x8] sm:$0xff] }
  0x1c   : > { %792 = vmatpush3.bf16.msra.mxu0 %v379_v14 }
  0x1f   : > { %794 = vmatmul.mubr.msk.bf16.vlgmr.msra.gmra.mrb[0].mxu0 %vm380_vm1, %v364_v17 }
  0xf2   : > { %v795_v20 = vpop.f32.mrb[0].mxu0 }
  0xf3   : > { %v437_v21 = vadd.f32 %v795_v20, %v367_v18  ;;  %v421_v22 = vpop.f32.mrb[1].mxu0 }
  0xf4   : > { %v435_v24 = vadd.f32 %v421_v22, %v365_v19  ;;  %v796_v25 = vpop.f32.mrb[2].mxu0 }
  0xf5   : > { %441 = vst.msk [vmem:[%s1103_s20 + $0x10] sm:$0xff] %vm356_vm0, %v437_v21  ;;  %v424_v26 = vpop.f32.mrb[3].mxu0 }
  0xf6   : > { %439 = vst.msk [vmem:[%s1103_s20] sm:$0xff] %vm356_vm0, %v435_v24  ;;  %v436_v27 = vadd.f32 %v424_v26, %v366_v23 }
  0xf8   : > { %440 = vst.msk [vmem:[%s1103_s20 + $0x8] sm:$0xff] %vm356_vm0, %v436_v27 }
  0xfc   : > { %v447_v30 = vld [vmem:[%s1103_s20 + $0x10] sm:$0xff] }
  0xfd   : > { %v457_v32 = vadd.f32 %v765_v28, %v447_v30  ;;  %v445_v33 = vld [vmem:[%s1103_s20] sm:$0xff] }
  0xfe   : > { %v455_v34 = vadd.f32 %v765_v28, %v445_v33  ;;  %473 = sbr.rel (!%p1067_p3) target bundleno = 322 (0x142), region = 48 }
  0xff   : > { %v463_v36 = vadd.f32 %v460_v29, %v457_v32  ;;  %v446_v37 = vld [vmem:[%s1103_s20 + $0x8] sm:$0xff] }
 0x100   : > { %v461_v38 = vadd.f32 %v458_v31, %v455_v34  ;;  %v456_v39 = vadd.f32 %v765_v28, %v446_v37 }
 0x101   : > { %466 = vst.msk [vmem:[%s1103_s20 + $0x10] sm:$0xff] %vm356_vm0, %v463_v36 }
 0x102   : > { %464 = vst.msk [vmem:[%s1103_s20] sm:$0xff] %vm356_vm0, %v461_v38  ;;  %v462_v40 = vadd.f32 %v459_v35, %v456_v39 }
 0x104   : > { %465 = vst.msk [vmem:[%s1103_s20 + $0x8] sm:$0xff] %vm356_vm0, %v462_v40 }
 0x105   : > { %s1203_s12 = smov (!%p476_p9, %s475_s12), 3 }
 0x106   : > { %s766_s24 = sshll.u32 %s1203_s12, 7 }
 0x107   : > { %p769_p10 = scmp.eq.s32.totalorder %s766_s24, 0 }
 0x108   : > { %904 = sdivrem.u32 (!%p769_p10), %s1203_s12, 3 }
 0x109   : > { %485 = sbr.rel (%p769_p10) target bundleno = 322 (0x142), region = 52 }
 0x111   : > { %s1162_s23 = spop.drf %904 }
 0x112   : > { %p770_p11 = scmp.le.s32.totalorder %s1162_s23, 0 }
 0x113   : > { %s980_s17 = smov (!%p770_p11), %s1156_s22   ;;  %s984_s6 = smov (!%p770_p11), %s1103_s20  }
 0x114   : > { %675 = sbr.rel (%p770_p11) target bundleno = 293 (0x125), region = 137  ;;  %s988_s26 = smov (!%p770_p11), 0  }
 0x115   : > { %s992_s27 = smov (!%p770_p11), 0  }
 0x11b LB: >> { %v553_v41 = vld [vmem:[%s986_s6] sm:$0xff]  ;;  %v555_v42 = vld [vmem:[%s986_s6 + $0x8] sm:$0xff]  ;;  %v557_v43 = vld [vmem:[%s986_s6 + $0x10] sm:$0xff]  ;;  %s559_s28 = sadd.s32 1, %s990_s26  ;;  %s547_s27 = sadd.s32 1, %s994_s27   ;;  %s994_s27 = sphi %s992_s27, %s547_s27   ;;  %s990_s26 = sphi %s988_s26, %s989_s26   ;;  %s986_s6 = sphi %s984_s6, %s564_s6   ;;  %s982_s17 = sphi %s980_s17, %s565_s17  }
 0x11c   : >> { %554 = vst [vmem:[%s982_s17] sm:$0xff] %v553_v41  ;;  %556 = vst [vmem:[%s982_s17 + $0x8] sm:$0xff] %v555_v42  ;;  %p560_p12 = scmp.ge.s32.totalorder %s559_s28, %s1162_s23  ;;  %p546_p13 = scmp.ge.s32.totalorder %s547_s27, %s1162_s23 }
 0x11d   : >> { %558 = vst [vmem:[%s982_s17 + $0x10] sm:$0xff] %v557_v43 }
 0x11e   : >> { %s1205_s28 = smov (%p560_p12, %s559_s28), 0  ;;  %549 = sbr.rel (!%p546_p13) target bundleno = 283 (0x11b), region = 143 }
 0x11f   : >> { %s562_s29 = smul.u32 24, %s1205_s28  ;;  %s989_s26 = smov %s1205_s28  }
 0x121   : >> { %s564_s6 = scalar_lea.vmem %s1103_s20, %s562_s29 [#allocation2]   ;;  %s565_s17 = scalar_lea.vmem %s1156_s22, %s562_s29  }
 0x125 PF: > { %906 = sdivrem.u32 %s1203_s12, 3 }
 0x126   : > { %s771_s30 = smul.u32 24, %s1162_s23 }
 0x128   : > { %s570_s5 = scalar_lea.vmem %s1103_s20, %s771_s30 [#allocation2]   ;;  %s572_s7 = scalar_lea.vmem %s1156_s22, %s771_s30  }
 0x12e   : > { %s907_s8 = spop.drf %906 }
 0x12f   : > { %p773_p0 = scmp.le.s32.totalorder %s907_s8, 0 }
 0x130   : > { %s996_s9 = smov (!%p773_p0), %s572_s7   ;;  %s1000_s10 = smov (!%p773_p0), %s570_s5  }
 0x131   : > { %689 = sbr.rel (%p773_p0) target bundleno = 322 (0x142), region = 148  ;;  %s1004_s11 = smov (!%p773_p0), 0  }
 0x132   : > { %s1008_s13 = smov (!%p773_p0), 0  }
 0x138 LB: >> { %v582_v44 = vld [vmem:[%s1002_s10] sm:$0xff]  ;;  %s584_s14 = sadd.s32 1, %s1006_s11  ;;  %s576_s13 = sadd.s32 1, %s1010_s13   ;;  %s1010_s13 = sphi %s1008_s13, %s576_s13   ;;  %s1006_s11 = sphi %s1004_s11, %s1005_s11   ;;  %s1002_s10 = sphi %s1000_s10, %s589_s10   ;;  %s998_s9 = sphi %s996_s9, %s590_s9  }
 0x139   : >> { %583 = vst [vmem:[%s998_s9] sm:$0xff] %v582_v44  ;;  %p585_p1 = scmp.ge.s32.totalorder %s584_s14, %s907_s8  ;;  %p575_p2 = scmp.ge.s32.totalorder %s576_s13, %s907_s8 }
 0x13b   : >> { %s1207_s14 = smov (%p585_p1, %s584_s14), 0  ;;  %578 = sbr.rel (!%p575_p2) target bundleno = 312 (0x138), region = 154 }
 0x13c   : >> { %s774_s20 = sshll.u32 %s1207_s14, 3  ;;  %s1005_s11 = smov %s1207_s14  }
 0x13d   : >> { %s589_s10 = scalar_lea.vmem %s570_s5, %s774_s20 [#allocation2]   ;;  %s590_s9 = scalar_lea.vmem %s572_s7, %s774_s20  }
 0x142 PF: > { %s14_s19 = sadd.s32 1, %s978_s19   ;;  %s1196_s15 = smov %s966_s16 }
 0x143   : > { %p11_p3 = scmp.ge.s32.totalorder %s14_s19, 4   ;;  %s1197_s16 = smov %s1076_s25 }
 0x144   : > { %s1198_s17 = smov %s974_s18  ;;  %s1199_s18 = smov %s1201_s21 }
 0x145   :  { %13 = sbr.rel (!%p11_p3) target bundleno = 3 (0x3), region = 165 }

// kernel: multi_scale_encoder_forward.19
= control target key start
LH: loop header
LB: loop body
LE: loop exit
PB: predicated region body
PF: predicated region fallthrough
CT: control target
= control target key end

     0   :  { %s1078_s18 = smov 0   ;;  %s1080_s19 = smov 0   ;;  %s1232_s0 = inlined_call_operand.vmem [shape: f32[18,64], index: 0, kind: input, shape index: {}]   ;;  %s1233_s1 = inlined_call_operand.vmem [shape: f32[64,96], index: 1, kind: input, shape index: {}]   ;;  %s1234_s2 = inlined_call_operand.vmem [shape: f32[1,96], index: 2, kind: input, shape index: {}]   ;;  %s1235_s3 = inlined_call_operand.vmem [shape: f32[1,64], index: 3, kind: input, shape index: {}]   ;;  %s1236_s4 = inlined_call_operand.vmem [shape: f32[1,64], index: 4, kind: input, shape index: {}]   ;;  %s1237_s5 = inlined_call_operand.vmem [shape: f32[18,96], index: 5, kind: output, shape index: {}]  }
   0x1   :  { %s1082_s20 = smov 0   ;;  %s1084_s21 = smov 0  }
   0x2   :  { %s1086_s22 = smov 0  }
   0x3 LB: > { %s779_s23 = sadd.s32 4294967295, %s1012_s22   ;;  %s34_s24 = sadd.s32 1, %s1008_s21  ;;  %s1012_s22 = sphi %s1086_s22, %s15_s22   ;;  %s1008_s21 = sphi %s1084_s21, %s1242_s21   ;;  %s1004_s20 = sphi %s1082_s20, %s1241_s20   ;;  %s1000_s19 = sphi %s1080_s19, %s1240_s19   ;;  %s996_s18 = sphi %s1078_s18, %s1239_s18  }
   0x4   : > { %p36_p0 = scmp.ge.s32.totalorder %s34_s24, 2  ;;  %s177_s25 = sadd.s32 1, %s1000_s19 }
   0x5   : > { %p187_p1 = scmp.ne.s32.totalorder %s1000_s19, %s996_s18  ;;  %p188_p2 = scmp.eq.s32.totalorder %s779_s23, 1 }
   0x6   : > { %s1244_s24 = smov (%p36_p0, %s34_s24), 0  ;;  %p787_p4 = scmp.ge.s32.totalorder %s1012_s22, 1 }
   0x7   : > { %p1110_p3 = por %p188_p2, %p187_p1  ;;  %s172_s27 = ssub.s32 %s1008_s21, %s1244_s24 }
   0x8   : > { %p262_p5 = scmp.lt.s32.totalorder %s1012_s22, 3  ;;  %p175_p6 = scmp.eq.s32.totalorder %s172_s27, 0 }
   0xa   : > { %p263_p7 = pnand %p787_p4, %p262_p5 }
   0xb   : > { %s1119_s28 = scalar_select %p175_p6, %s1000_s19, %s177_s25  }
   0xc   : > { %266 = sbr.rel (%p263_p7) target bundleno = 619 (0x26b), region = 40  ;;  %s1122_s29 = sshll.u32 (!%p263_p7), %s1004_s20, 1  ;;  %vm365_vm0 = vcmask (!%p263_p7), 523264   ;;  %v412_v14 = vld [vmem:[%s1233_s1] sm:$0xff] (!%p263_p7)  ;;  %v413_v15 = vld [vmem:[%s1233_s1 + $0x8] sm:$0xff] (!%p263_p7)  ;;  %v1046_v17 = vmov (!%p263_p7), 0.0  }
   0xd   : > { %p318_p8 = scmp.lt.s32.totalorder (!%p263_p7), %s1122_s29, 2  ;;  %v420_v16 = vpack.c.bf16 (!%p263_p7), %v413_v15, %v412_v14  ;;  %820 = vmatprep.subr.bf16.mxu0 (!%p263_p7), %v1046_v17  ;;  %v414_v18 = vld [vmem:[%s1233_s1 + $0x10] sm:$0xff] (!%p263_p7)  ;;  %v415_v19 = vld [vmem:[%s1233_s1 + $0x18] sm:$0xff] (!%p263_p7)  ;;  %v416_v21 = vld [vmem:[%s1233_s1 + $0x20] sm:$0xff] (!%p263_p7)  ;;  %vm1047_vm1 = vmmov (!%p263_p7), 0   ;;  %s310_s10 = sand.u32 (!%p263_p7), 1, %s996_s18  }
   0xe   : > { %v421_v20 = vpack.c.bf16 (!%p263_p7), %v415_v19, %v414_v18  ;;  %v417_v22 = vld [vmem:[%s1233_s1 + $0x28] sm:$0xff] (!%p263_p7)  ;;  %v418_v24 = vld [vmem:[%s1233_s1 + $0x30] sm:$0xff] (!%p263_p7)  ;;  %v419_v25 = vld [vmem:[%s1233_s1 + $0x38] sm:$0xff] (!%p263_p7)  ;;  %828 = vmatprep.mubr.msk.bf16.mxu0 (!%p263_p7), %vm1047_vm1, %v1046_v17  ;;  %vm358_vm2 = vcmask (!%p263_p7), 785408   ;;  %s788_s11 = sshll.u32 (!%p263_p7), %s310_s10, 4 }
   0xf   : > { %821 = vmatpush3.bf16.msra.mxu0 (!%p263_p7), %v420_v16  ;;  %v422_v23 = vpack.c.bf16 (!%p263_p7), %v417_v22, %v416_v21  ;;  %v423_v26 = vpack.c.bf16 (!%p263_p7), %v419_v25, %v418_v24  ;;  %s1158_s12 = scalar_lea.vmem (!%p263_p7), [#allocation2], %s788_s11   ;;  %v791_v35 = vld [vmem:[%s1235_s3] ss:$0 sm:$0xff] (!%p263_p7) }
  0x10   : > { %822 = vmatprep.subr.bf16.mxu0 (!%p263_p7), %v1046_v17  ;;  %359 = vst.msk [vmem:[%s1158_s12] sm:$0xff] (!%p263_p7), %vm358_vm2, %v1046_v17  ;;  %360 = vst.msk [vmem:[%s1158_s12 + $0x8] sm:$0xff] (!%p263_p7), %vm358_vm2, %v1046_v17  ;;  %v792_v39 = vld [vmem:[%s1236_s4] ss:$0 sm:$0xff] (!%p263_p7) }
  0x11   : > { %v794_v52 = vld [vmem:[%s1234_s2] ss:$0 sm:$0xff] (!%p263_p7) }
  0x13   : > { %s319_s30 = scalar_select %p318_p8, %s1122_s29, 2  ;;  %823 = vmatpush3.bf16.msra.mxu0 %v421_v20 }
  0x14   : > { %824 = vmatprep.subr.bf16.mxu0 %v1046_v17  ;;  %s497_s23 = ssub.s32 (%p1110_p3), 3, %s1122_s29  ;;  %s812_s25 = sshll.u32 (%p1110_p3), %s1004_s20, 4 }
  0x15   : > { %s790_s6 = sshll.u32 %s319_s30, 3  ;;  %p498_p9 = scmp.lt.s32.totalorder (%p1110_p3), %s497_s23, 2 }
  0x16   : > { %s324_s9 = scalar_lea.vmem %s1232_s0, %s790_s6  ;;  %s1193_s6 = scalar_lea.vmem (%p1110_p3), %s1237_s5, %s812_s25  }
  0x17   : > { %v361_v0 = vld [vmem:[%s324_s9] sm:$0xff]  ;;  %v362_v1 = vld [vmem:[%s324_s9 + $0x8] sm:$0xff]  ;;  %825 = vmatpush3.bf16.msra.mxu0 %v422_v23 }
  0x18   : > { %v366_v2 = vsel %vm365_vm0, %v361_v0, 0.0  ;;  %v369_v3 = vsel %vm365_vm0, %v362_v1, 0.0  ;;  %826 = vmatprep.subr.bf16.mxu0 %v1046_v17  ;;  %v410_v44 = vld [vmem:[%s1158_s12] sm:$0xff]  ;;  %v411_v46 = vld [vmem:[%s1158_s12 + $0x8] sm:$0xff] }
  0x19   : > { %367 = vadd.xlane.f32.xlu0 %v366_v2 }
  0x1b   : > { %827 = vmatpush3.bf16.msra.mxu0 %v423_v26 }
  0x1d   : > { %370 = vadd.xlane.f32.xlu0 %v369_v3 }
  0xa6   : > { %v368_v4 = vpop.xlane.xlu0 %367 }
  0xa7   : > { %v373_v5 = vmul.f32 0.015625, %v368_v4 }
  0xa9   : > { %v375_v6 = vsub.f32 %v361_v0, %v373_v5 }
  0xaa   : > { %v371_v7 = vpop.xlane.xlu0 %370 }
  0xab   : > { %v374_v8 = vmul.f32 0.015625, %v371_v7  ;;  %v377_v9 = vmul.f32 %v375_v6, %v375_v6 }
  0xad   : > { %v376_v10 = vsub.f32 %v362_v1, %v374_v8  ;;  %v379_v11 = vsel %vm365_vm0, %v377_v9, 0.0 }
  0xae   : > { %380 = vadd.xlane.f32.xlu1 %v379_v11 }
  0xaf   : > { %v378_v12 = vmul.f32 %v376_v10, %v376_v10 }
  0xb1   : > { %v382_v13 = vsel %vm365_vm0, %v378_v12, 0.0 }
  0xb2   : > { %383 = vadd.xlane.f32.xlu1 %v382_v13 }
 0x13b   : > { %v381_v27 = vpop.xlane.xlu1 %380 }
 0x13c   : > { %v385_v28 = vmul.f32 0.015625, %v381_v27 }
 0x13e   : > { %v387_v29 = vadd.f32 1e-05, %v385_v28 }
 0x13f   : > { %v384_v30 = vpop.xlane.xlu1 %383 }
 0x140   : > { %938 = vrsqrt.f32 %v387_v29  ;;  %v386_v31 = vmul.f32 0.015625, %v384_v30 }
 0x142   : > { %v388_v32 = vadd.f32 1e-05, %v386_v31 }
 0x144   : > { %940 = vrsqrt.f32 %v388_v32 }
 0x14a   : > { %v939_v33 = vpop.eup %938 }
 0x14b   : > { %v391_v34 = vmul.f32 %v939_v33, %v375_v6 }
 0x14d   : > { %v399_v38 = vmul.f32 %v791_v35, %v391_v34 }
 0x14e   : > { %v941_v36 = vpop.eup %940 }
 0x14f   : > { %v392_v37 = vmul.f32 %v941_v36, %v376_v10  ;;  %v407_v41 = vadd.f32 %v792_v39, %v399_v38 }
 0x151   : > { %v400_v40 = vmul.f32 %v791_v35, %v392_v37 }
 0x153   : > { %v408_v42 = vadd.f32 %v792_v39, %v400_v40 }
 0x155   : > { %v409_v43 = vpack.c.bf16 %v408_v42, %v407_v41 }
 0x157   : > { %829 = vmatmul.mubr.msk.bf16.vlgmr.msra.gmra.mrb[0].mxu0 %vm365_vm0, %v409_v43 }
 0x22a   : > { %v461_v45 = vpop.f32.mrb[0].mxu0 }
 0x22b   : > { %v468_v47 = vadd.f32 %v461_v45, %v410_v44  ;;  %v830_v48 = vpop.f32.mrb[1].mxu0 }
 0x22c   : > { %v464_v49 = vpop.f32.mrb[2].mxu0 }
 0x22d   : > { %471 = vst.msk [vmem:[%s1158_s12] sm:$0xff] %vm358_vm2, %v468_v47  ;;  %v469_v50 = vadd.f32 %v464_v49, %v411_v46  ;;  %v831_v51 = vpop.f32.mrb[3].mxu0 }
 0x22f   : > { %472 = vst.msk [vmem:[%s1158_s12 + $0x8] sm:$0xff] %vm358_vm2, %v469_v50 }
 0x233   : > { %495 = sbr.rel (!%p1110_p3) target bundleno = 619 (0x26b), region = 52 }
 0x234   : > { %v476_v53 = vld [vmem:[%s1158_s12] sm:$0xff] }
 0x235   : > { %v485_v54 = vadd.f32 %v794_v52, %v476_v53 }
 0x236   : > { %v477_v55 = vld [vmem:[%s1158_s12 + $0x8] sm:$0xff] }
 0x237   : > { %487 = vst.msk [vmem:[%s1158_s12] sm:$0xff] %vm358_vm2, %v485_v54  ;;  %v486_v56 = vadd.f32 %v794_v52, %v477_v55 }
 0x239   : > { %488 = vst.msk [vmem:[%s1158_s12 + $0x8] sm:$0xff] %vm358_vm2, %v486_v56 }
 0x23a   : > { %s1246_s23 = smov (!%p498_p9, %s497_s23), 2 }
 0x23b   : > { %s797_s7 = sshll.u32 %s1246_s23, 7 }
 0x23c   : > { %p800_p10 = scmp.eq.s32.totalorder %s797_s7, 0 }
 0x23d   : > { %s1199_s8 = sshrl.u32 (!%p800_p10), %s1246_s23, 1 }
 0x23e   : > { %507 = sbr.rel (%p800_p10) target bundleno = 619 (0x26b), region = 56  ;;  %p801_p11 = scmp.le.s32.totalorder (!%p800_p10), %s1199_s8, 0 }
 0x245   : > { %688 = sbr.rel (%p801_p11) target bundleno = 598 (0x256), region = 144  ;;  %s1014_s20 = smov (!%p801_p11), %s1193_s6  }
 0x246   : > { %s1018_s26 = smov (!%p801_p11), %s1158_s12   ;;  %s1022_s29 = smov (!%p801_p11), 0  }
 0x247   : > { %s1026_s9 = smov (!%p801_p11), 0  }
 0x24c LB: >> { %v571_v57 = vld [vmem:[%s1020_s26] sm:$0xff]  ;;  %v573_v58 = vld [vmem:[%s1020_s26 + $0x8] sm:$0xff]  ;;  %s575_s10 = sadd.s32 1, %s1024_s29  ;;  %s565_s9 = sadd.s32 1, %s1028_s9   ;;  %s1028_s9 = sphi %s1026_s9, %s565_s9   ;;  %s1024_s29 = sphi %s1022_s29, %s1023_s29   ;;  %s1020_s26 = sphi %s1018_s26, %s580_s26   ;;  %s1016_s20 = sphi %s1014_s20, %s581_s20  }
 0x24d   : >> { %572 = vst [vmem:[%s1016_s20] sm:$0xff] %v571_v57  ;;  %574 = vst [vmem:[%s1016_s20 + $0x8] sm:$0xff] %v573_v58  ;;  %p576_p12 = scmp.ge.s32.totalorder %s575_s10, %s1199_s8  ;;  %p564_p13 = scmp.ge.s32.totalorder %s565_s9, %s1199_s8 }
 0x24f   : >> { %s1248_s10 = smov (%p576_p12, %s575_s10), 0  ;;  %567 = sbr.rel (!%p564_p13) target bundleno = 588 (0x24c), region = 150 }
 0x250   : >> { %s802_s11 = sshll.u32 %s1248_s10, 4  ;;  %s1023_s29 = smov %s1248_s10  }
 0x251   : >> { %s580_s26 = scalar_lea.vmem %s1158_s12, %s802_s11 [#allocation2]   ;;  %s581_s20 = scalar_lea.vmem %s1193_s6, %s802_s11  }
 0x256 PF: > { %s1209_s18 = sand.u32 1, %s1246_s23   ;;  %s813_s13 = sshll.u32 %s1199_s8, 4 }
 0x257   : > { %s586_s14 = scalar_lea.vmem %s1158_s12, %s813_s13 [#allocation2]   ;;  %s588_s15 = scalar_lea.vmem %s1193_s6, %s813_s13  }
 0x258   : > { %p807_p0 = scmp.le.s32.totalorder %s1209_s18, 0 }
 0x259   : > { %s1030_s16 = smov (!%p807_p0), %s588_s15   ;;  %s1034_s17 = smov (!%p807_p0), %s586_s14  }
 0x25a   : > { %702 = sbr.rel (%p807_p0) target bundleno = 619 (0x26b), region = 155  ;;  %s1038_s25 = smov (!%p807_p0), 0  }
 0x25b   : > { %s1042_s27 = smov (!%p807_p0), 0  }
 0x261 LB: >> { %v598_v59 = vld [vmem:[%s1036_s17] sm:$0xff]  ;;  %s600_s23 = sadd.s32 1, %s1040_s25  ;;  %s592_s27 = sadd.s32 1, %s1044_s27   ;;  %s1044_s27 = sphi %s1042_s27, %s592_s27   ;;  %s1040_s25 = sphi %s1038_s25, %s1039_s25   ;;  %s1036_s17 = sphi %s1034_s17, %s605_s17   ;;  %s1032_s16 = sphi %s1030_s16, %s606_s16  }
 0x262   : >> { %599 = vst [vmem:[%s1032_s16] sm:$0xff] %v598_v59  ;;  %p601_p1 = scmp.ge.s32.totalorder %s600_s23, %s1209_s18  ;;  %p591_p2 = scmp.ge.s32.totalorder %s592_s27, %s1209_s18 }
 0x264   : >> { %s1250_s23 = smov (%p601_p1, %s600_s23), 0  ;;  %594 = sbr.rel (!%p591_p2) target bundleno = 609 (0x261), region = 161 }
 0x265   : >> { %s808_s12 = sshll.u32 %s1250_s23, 3  ;;  %s1039_s25 = smov %s1250_s23  }
 0x266   : >> { %s605_s17 = scalar_lea.vmem %s586_s14, %s808_s12 [#allocation2]   ;;  %s606_s16 = scalar_lea.vmem %s588_s15, %s808_s12  }
 0x26b PF: > { %s15_s22 = sadd.s32 1, %s1012_s22   ;;  %s1239_s18 = smov %s1000_s19 }
 0x26c   : > { %p12_p3 = scmp.ge.s32.totalorder %s15_s22, 4   ;;  %s1240_s19 = smov %s1119_s28 }
 0x26d   : > { %s1241_s20 = smov %s1008_s21  ;;  %s1242_s21 = smov %s1244_s24 }
 0x26e   :  { %14 = sbr.rel (!%p12_p3) target bundleno = 3 (0x3), region = 172 }

// kernel: multi_scale_encoder_forward.20
= control target key start
LH: loop header
LB: loop body
LE: loop exit
PB: predicated region body
PF: predicated region fallthrough
CT: control target
= control target key end

     0   :  { %s555_s6 = smov 0   ;;  %s619_s0 = inlined_call_operand.vmem [shape: f32[2,9,96], index: 0, kind: input, shape index: {}]   ;;  %s620_s1 = inlined_call_operand.vmem [shape: f32[2,9,32], index: 1, kind: output, shape index: {}]  }
   0x1 LB: > { %s446_s7 = sadd.s32 4294967295, %s534_s6   ;;  %p450_p0 = scmp.ge.s32.totalorder %s534_s6, 1  ;;  %s534_s6 = sphi %s555_s6, %s11_s6  }
   0x2   : > { %p87_p1 = scmp.lt.s32.totalorder %s534_s6, 3 }
   0x4   : > { %p88_p2 = pnand %p450_p0, %p87_p1 }
   0x5   : > { %p107_p3 = scmp.lt.s32.totalorder (!%p88_p2), %s446_s7, 1  ;;  %v536_v0 = vmov (!%p88_p2), 0.0   ;;  %vm537_vm0 = vmmov (!%p88_p2), 0   ;;  %s538_s12 = smov (!%p88_p2), 96   ;;  %vm124_vm1 = vcmask (!%p88_p2), 130048   ;;  %vm174_vm2 = vcmask (!%p88_p2), 72704  }
   0x6   : > { %91 = sbr.rel (%p88_p2) target bundleno = 1551 (0x60f), region = 24  ;;  %471 = vmatprep.subr.bf16.mxu0 (!%p88_p2), %v536_v0  ;;  %473 = vmatprep.mubr.msk.bf16.mxu0 (!%p88_p2), %vm537_vm0, %v536_v0  ;;  %vm178_vm3 = vcmask (!%p88_p2), 65536   ;;  %s539_s13 = smov (!%p88_p2), 64   ;;  %vm204_vm4 = vcmask (!%p88_p2), 1043456   ;;  %vm205_vm5 = vcmask (!%p88_p2), 1044480   ;;  %v540_v16 = vmov (!%p88_p2), 65535  }
   0x7   : > { %477 = vmatprep.subr.bf16.mxu1 (!%p88_p2), %v536_v0  ;;  %479 = vmatprep.mubr.msk.bf16.mxu1 (!%p88_p2), %vm537_vm0, %v536_v0  ;;  %v206_v17 = vsel (!%p88_p2), %vm204_vm4, 4294967295, %v540_v16  ;;  %s541_s14 = smov (!%p88_p2), 80   ;;  %s542_s15 = smov (!%p88_p2), 112   ;;  %vm387_vm6 = vcmask (!%p88_p2), 261120   ;;  %vm389_vm7 = vcmask (!%p88_p2), 253952  }
   0x8   : > { %v589_v21 = vsel (!%p88_p2), %vm205_vm5, %v206_v17, 0  ;;  %s543_s16 = smov (!%p88_p2), 48   ;;  %s544_s17 = smov (!%p88_p2), 16  }
   0xd   : > { %s622_s7 = smov (!%p107_p3, %s446_s7), 1 }
   0xe   : > { %s461_s8 = sshll.u32 %s622_s7, 4 }
   0xf   : > { %s111_s11 = scalar_lea.vmem %s619_s0, %s461_s8  ;;  %s116_s20 = scalar_lea.vmem %s620_s1, %s461_s8 }
  0x10   : > { %v118_v1 = vld [vmem:[%s111_s11] sm:$0xff]  ;;  %v119_v2 = vld [vmem:[%s111_s11 + $0x8] sm:$0x1] }
  0x11   : > { %v577_v3 = vpack.c.bf16 %v119_v2, %v118_v1 }
  0x13   : > { %122 = vrot.lane.b32.xlu0 %v577_v3, %s538_s12 }
  0x85   : > { %v123_v4 = vpop.permute.xlu0 %122 }
  0x86   : > { %v129_v5 = vsel %vm124_vm1, %v123_v4, 0 }
  0x87   : > { %472 = vmatpush3.bf16.xpose.msra.mxu0 %v129_v5 }
  0x88   : > { %489 = vmatprep.subr.bf16.mxu0 %v536_v0 }
  0x8e   : > { %474 = vmatmul.mubr.msk.bf16.vlgmr.msra.gmra.mrb[0].mxu0 %vm124_vm1, %v577_v3 }
  0x8f   : > { %491 = vmatprep.mubr.msk.bf16.mxu0 %vm537_vm0, %v536_v0 }
 0x161   : > { %v165_v6 = vpop.f32.mrb[0].mxu0 }
 0x162   : > { %v172_v7 = vmul.f32 0.25, %v165_v6  ;;  %v475_v8 = vpop.f32.mrb[1].mxu0 }
 0x163   : > { %v168_v9 = vpop.f32.mrb[2].mxu0 }
 0x164   : > { %v173_v10 = vmul.f32 0.25, %v168_v9  ;;  %v476_v11 = vpop.f32.mrb[3].mxu0  ;;  %v175_v12 = vsel %vm174_vm2, %v172_v7, -inf }
 0x165   : > { %176 = vmax.xlane.f32.xlu0 %v175_v12 }
 0x166   : > { %v179_v13 = vsel %vm178_vm3, %v173_v10, -inf }
 0x167   : > { %180 = vmax.xlane.f32.xlu1 %v179_v13 }
 0x178   : > { %199 = vrot.lane.b32.xlu1 %v577_v3, %s539_s13 }
 0x1f2   : > { %v177_v14 = vpop.xlane.xlu0 %176 }
 0x1f3   : > { %v182_v15 = vsub.f32 %v172_v7, %v177_v14 }
 0x1f4   : > { %v181_v18 = vpop.xlane.xlu1 %180 }
 0x1f5   : > { %v184_v19 = vmul.f32 1.442695, %v182_v15  ;;  %v183_v20 = vsub.f32 %v173_v10, %v181_v18 }
 0x1f7   : > { %512 = vpow2.f32 %v184_v19  ;;  %v186_v22 = vmul.f32 1.442695, %v183_v20 }
 0x1f8   : > { %v200_v23 = vpop.permute.xlu1 %199 }
 0x1f9   : > { %514 = vpow2.f32 %v186_v22  ;;  %v209_v24 = vand.u32 %v589_v21, %v200_v23 }
 0x1fb   : > { %478 = vmatpush3.bf16.msra.mxu1 %v209_v24 }
 0x1fc   : > { %483 = vmatprep.subr.bf16.mxu1 %v536_v0 }
 0x201   : > { %v513_v25 = vpop.eup %512 }
 0x202   : > { %v188_v26 = vsel %vm174_vm2, %v513_v25, 0.0 }
 0x203   : > { %v515_v27 = vpop.eup %514  ;;  %189 = vadd.xlane.f32.xlu1 %v188_v26 }
 0x204   : > { %v191_v28 = vsel %vm178_vm3, %v515_v27, 0.0 }
 0x207   : > { %192 = vadd.xlane.f32.xlu1 %v191_v28 }
 0x218   : > { %254 = vrot.lane.b32.xlu1 %v577_v3, %s541_s14 }
 0x21c   : > { %252 = vrot.lane.b32.xlu1 %v577_v3, %s542_s15 }
 0x290   : > { %v190_v29 = vpop.xlane.xlu1 %189 }
 0x291   : > { %516 = vrcp.f32 %v190_v29 }
 0x294   : > { %v193_v30 = vpop.xlane.xlu1 %192 }
 0x295   : > { %518 = vrcp.f32 %v193_v30 }
 0x298   : > { %v255_v33 = vpop.permute.xlu1 %254 }
 0x299   : > { %v260_v36 = vsel %vm124_vm1, %v255_v33, 0 }
 0x29b   : > { %v517_v31 = vpop.eup %516 }
 0x29c   : > { %v196_v34 = vmul.f32 %v517_v31, %v513_v25  ;;  %v253_v38 = vpop.permute.xlu1 %252 }
 0x29f   : > { %v519_v32 = vpop.eup %518 }
 0x2a0   : > { %v197_v35 = vmul.f32 %v519_v32, %v515_v27 }
 0x2a2   : > { %v198_v37 = vpack.c.bf16 %v197_v35, %v196_v34 }
 0x2a4   : > { %480 = vmatmul.mubr.msk.bf16.vlgmr.msra.gmra.mrb[0].mxu1 %vm174_vm2, %v198_v37 }
 0x2a5   : > { %484 = vmatpush3.bf16.xpose.msra.mxu1 %v260_v36  ;;  %485 = vmatprep.mubr.msk.bf16.mxu1 %vm537_vm0, %v536_v0 }
 0x2ac   : > { %486 = vmatmul.mubr.msk.bf16.vlgmr.msra.gmra.mrb[4].mxu1 %vm124_vm1, %v253_v38 }
 0x377   : > { %v245_v39 = vpop.f32.mrb[0].mxu1 }
 0x378   : > { %v481_v40 = vpop.f32.mrb[1].mxu1 }
 0x379   : > { %v248_v41 = vpop.f32.mrb[2].mxu1 }
 0x37a   : > { %v482_v42 = vpop.f32.mrb[3].mxu1 }
 0x37f   : > { %v296_v43 = vpop.f32.mrb[4].mxu1 }
 0x380   : > { %v303_v44 = vmul.f32 0.25, %v296_v43  ;;  %v487_v45 = vpop.f32.mrb[5].mxu1 }
 0x381   : > { %v299_v46 = vpop.f32.mrb[6].mxu1 }
 0x382   : > { %v304_v47 = vmul.f32 0.25, %v299_v46  ;;  %v488_v48 = vpop.f32.mrb[7].mxu1  ;;  %v305_v49 = vsel %vm174_vm2, %v303_v44, -inf }
 0x383   : > { %306 = vmax.xlane.f32.xlu0 %v305_v49 }
 0x384   : > { %v308_v50 = vsel %vm178_vm3, %v304_v47, -inf }
 0x385   : > { %309 = vmax.xlane.f32.xlu1 %v308_v50 }
 0x410   : > { %v307_v51 = vpop.xlane.xlu0 %306 }
 0x411   : > { %v311_v52 = vsub.f32 %v303_v44, %v307_v51 }
 0x412   : > { %v310_v53 = vpop.xlane.xlu1 %309 }
 0x413   : > { %v313_v54 = vmul.f32 1.442695, %v311_v52  ;;  %v312_v55 = vsub.f32 %v304_v47, %v310_v53 }
 0x415   : > { %520 = vpow2.f32 %v313_v54  ;;  %v315_v56 = vmul.f32 1.442695, %v312_v55 }
 0x417   : > { %522 = vpow2.f32 %v315_v56 }
 0x41f   : > { %v521_v57 = vpop.eup %520 }
 0x420   : > { %v317_v58 = vsel %vm174_vm2, %v521_v57, 0.0 }
 0x421   : > { %v523_v59 = vpop.eup %522  ;;  %318 = vadd.xlane.f32.xlu0 %v317_v58 }
 0x422   : > { %v320_v60 = vsel %vm178_vm3, %v523_v59, 0.0 }
 0x425   : > { %321 = vadd.xlane.f32.xlu0 %v320_v60 }
 0x43b   : > { %328 = vrot.lane.b32.xlu0 %v577_v3, %s543_s16 }
 0x4ae   : > { %v319_v61 = vpop.xlane.xlu0 %318 }
 0x4af   : > { %524 = vrcp.f32 %v319_v61 }
 0x4b2   : > { %v322_v62 = vpop.xlane.xlu0 %321 }
 0x4b3   : > { %526 = vrcp.f32 %v322_v62 }
 0x4b6   : > { %v329_v63 = vpop.permute.xlu0 %328 }
 0x4b7   : > { %v334_v0 = vand.u32 %v329_v63, %v589_v21 }
 0x4b9   : > { %490 = vmatpush3.bf16.msra.mxu0 %v334_v0  ;;  %v525_v1 = vpop.eup %524 }
 0x4ba   : > { %v325_v4 = vmul.f32 %v525_v1, %v521_v57 }
 0x4bd   : > { %v527_v2 = vpop.eup %526 }
 0x4be   : > { %v326_v5 = vmul.f32 %v527_v2, %v523_v59 }
 0x4c0   : > { %v327_v6 = vpack.c.bf16 %v326_v5, %v325_v4 }
 0x4c2   : > { %492 = vmatmul.mubr.msk.bf16.vlgmr.msra.gmra.mrb[4].mxu0 %vm174_vm2, %v327_v6 }
 0x595   : > { %v370_v7 = vpop.f32.mrb[4].mxu0 }
 0x596   : > { %379 = vrot.lane.b32.xlu0 %v370_v7, %s544_s17  ;;  %v493_v3 = vpop.f32.mrb[5].mxu0 }
 0x597   : > { %v373_v8 = vpop.f32.mrb[6].mxu0 }
 0x598   : > { %v494_v9 = vpop.f32.mrb[7].mxu0 }
 0x59a   : > { %381 = vrot.lane.b32.xlu0 %v373_v8, %s544_s17 }
 0x608   : > { %v380_v10 = vpop.permute.xlu0 %379 }
 0x609   : > { %v385_v11 = vsel %vm124_vm1, %v245_v39, %v380_v10 }
 0x60a   : > { %388 = vst.msk [vmem:[%s116_s20] sm:$0xff] %vm387_vm6, %v385_v11 }
 0x60c   : > { %v382_v12 = vpop.permute.xlu0 %381 }
 0x60d   : > { %v386_v13 = vsel %vm124_vm1, %v248_v41, %v382_v12 }
 0x60e   : > { %390 = vst.msk [vmem:[%s116_s20 + $0x8] sm:$0x1] %vm389_vm7, %v386_v13 }
 0x60f PF: > { %s11_s6 = sadd.s32 1, %s534_s6  }
 0x610   : > { %p8_p4 = scmp.ge.s32.totalorder %s11_s6, 4  }
 0x612   :  { %10 = sbr.rel (!%p8_p4) target bundleno = 1 (0x1), region = 54 }

// kernel: multi_scale_encoder_forward.21
= control target key start
LH: loop header
LB: loop body
LE: loop exit
PB: predicated region body
PF: predicated region fallthrough
CT: control target
= control target key end

     0   :  { %s1003_s15 = smov 0   ;;  %s1005_s16 = smov 0   ;;  %s1133_s0 = inlined_call_operand.vmem [shape: f32[18,32], index: 0, kind: input, shape index: {}]   ;;  %s1134_s1 = inlined_call_operand.vmem [shape: f32[32,64], index: 1, kind: input, shape index: {}]   ;;  %s1135_s2 = inlined_call_operand.vmem [shape: f32[1,64], index: 2, kind: input, shape index: {}]   ;;  %s1136_s3 = inlined_call_operand.vmem [shape: f32[18,64], index: 3, kind: input, shape index: {}]   ;;  %s1137_s4 = inlined_call_operand.vmem [shape: f32[18,64], index: 4, kind: output, shape index: {}]  }
   0x1   :  { %s1007_s17 = smov 0   ;;  %s1009_s18 = smov 0  }
   0x2   :  { %s1011_s19 = smov 0  }
   0x3 LB: > { %s721_s20 = sadd.s32 4294967295, %s942_s19   ;;  %s33_s21 = sadd.s32 1, %s938_s18  ;;  %s942_s19 = sphi %s1011_s19, %s14_s19   ;;  %s938_s18 = sphi %s1009_s18, %s1142_s18   ;;  %s934_s17 = sphi %s1007_s17, %s1141_s17   ;;  %s930_s16 = sphi %s1005_s16, %s1140_s16   ;;  %s926_s15 = sphi %s1003_s15, %s1139_s15  }
   0x4   : > { %p35_p0 = scmp.ge.s32.totalorder %s33_s21, 2  ;;  %s152_s22 = sadd.s32 1, %s930_s16 }
   0x5   : > { %p162_p1 = scmp.ne.s32.totalorder %s930_s16, %s926_s15  ;;  %p163_p2 = scmp.eq.s32.totalorder %s721_s20, 1 }
   0x6   : > { %s1144_s21 = smov (%p35_p0, %s33_s21), 0  ;;  %p727_p4 = scmp.ge.s32.totalorder %s942_s19, 1 }
   0x7   : > { %p1032_p3 = por %p163_p2, %p162_p1  ;;  %s147_s24 = ssub.s32 %s938_s18, %s1144_s21 }
   0x8   : > { %p245_p5 = scmp.lt.s32.totalorder %s942_s19, 3  ;;  %p150_p6 = scmp.eq.s32.totalorder %s147_s24, 0 }
   0xa   : > { %p246_p7 = pnand %p727_p4, %p245_p5 }
   0xb   : > { %s1041_s25 = scalar_select %p150_p6, %s930_s16, %s152_s22  }
   0xc   : > { %249 = sbr.rel (%p246_p7) target bundleno = 304 (0x130), region = 36  ;;  %s297_s26 = sand.u32 (!%p246_p7), 1, %s926_s15   ;;  %vm356_vm0 = vcmask (!%p246_p7), 523264   ;;  %v364_v0 = vld [vmem:[%s1134_s1] sm:$0xff] (!%p246_p7)  ;;  %v365_v1 = vld [vmem:[%s1134_s1 + $0x8] sm:$0xff] (!%p246_p7)  ;;  %v366_v2 = vld [vmem:[%s1134_s1 + $0x10] sm:$0xff] (!%p246_p7) }
   0xd   : > { %s728_s7 = sshll.u32 (!%p246_p7), %s297_s26, 4  ;;  %v976_v3 = vmov (!%p246_p7), 0.0   ;;  %v368_v4 = vpack.c.bf16 (!%p246_p7), %v365_v1, %v364_v0  ;;  %v367_v5 = vld [vmem:[%s1134_s1 + $0x18] sm:$0xff] (!%p246_p7)  ;;  %s1056_s10 = sshll.u32 (!%p246_p7), %s934_s17, 1  ;;  %vm977_vm1 = vmmov (!%p246_p7), 0   ;;  %vm370_vm2 = vcmask (!%p246_p7), 261120  }
   0xe   : > { %758 = vmatprep.subr.bf16.mxu0 (!%p246_p7), %v976_v3  ;;  %762 = vmatprep.mubr.msk.bf16.mxu0 (!%p246_p7), %vm977_vm1, %v976_v3  ;;  %p305_p8 = scmp.lt.s32.totalorder (!%p246_p7), %s1056_s10, 2  ;;  %s1059_s11 = scalar_lea.vmem (!%p246_p7), [#allocation2], %s728_s7   ;;  %v369_v6 = vpack.c.bf16 (!%p246_p7), %v367_v5, %v366_v2  ;;  %v734_v18 = vld [vmem:[%s1135_s2] ss:$0 sm:$0xff] (!%p246_p7) }
   0xf   : > { %357 = vst.msk [vmem:[%s1059_s11] sm:$0xff] (!%p246_p7), %vm356_vm0, %v976_v3  ;;  %358 = vst.msk [vmem:[%s1059_s11 + $0x8] sm:$0xff] (!%p246_p7), %vm356_vm0, %v976_v3  ;;  %759 = vmatpush3.bf16.msra.mxu0 (!%p246_p7), %v368_v4 }
  0x10   : > { %760 = vmatprep.subr.bf16.mxu0 (!%p246_p7), %v976_v3 }
  0x13   : > { %s306_s12 = scalar_select %p305_p8, %s1056_s10, 2  ;;  %761 = vmatpush3.bf16.msra.mxu0 %v369_v6 }
  0x14   : > { %s448_s29 = ssub.s32 (%p1032_p3), 3, %s1056_s10  ;;  %s752_s30 = sshll.u32 (%p1032_p3), %s934_s17, 4 }
  0x15   : > { %s730_s13 = sshll.u32 %s306_s12, 3  ;;  %p449_p9 = scmp.lt.s32.totalorder (%p1032_p3), %s448_s29, 2 }
  0x16   : > { %s311_s20 = scalar_lea.vmem %s1133_s0, %s730_s13  ;;  %v362_v10 = vld [vmem:[%s1059_s11] sm:$0xff]  ;;  %v363_v12 = vld [vmem:[%s1059_s11 + $0x8] sm:$0xff]  ;;  %s340_s26 = scalar_lea.vmem %s1136_s3, %s730_s13 }
  0x17   : > { %v359_v7 = vld [vmem:[%s311_s20] sm:$0xff]  ;;  %v360_v8 = vld [vmem:[%s311_s20 + $0x8] sm:$0xff]  ;;  %s1094_s7 = scalar_lea.vmem (%p1032_p3), %s1137_s4, %s752_s30  }
  0x18   : > { %v361_v9 = vpack.c.bf16 %v360_v8, %v359_v7  ;;  %v434_v19 = vld [vmem:[%s340_s26] sm:$0xff]  ;;  %v435_v22 = vld [vmem:[%s340_s26 + $0x8] sm:$0xff] }
  0x1a   : > { %763 = vmatmul.mubr.msk.bf16.vlgmr.msra.gmra.mrb[0].mxu0 %vm370_vm2, %v361_v9 }
  0xed   : > { %v408_v11 = vpop.f32.mrb[0].mxu0 }
  0xee   : > { %v415_v13 = vadd.f32 %v408_v11, %v362_v10  ;;  %v764_v14 = vpop.f32.mrb[1].mxu0 }
  0xef   : > { %v411_v15 = vpop.f32.mrb[2].mxu0 }
  0xf0   : > { %418 = vst.msk [vmem:[%s1059_s11] sm:$0xff] %vm356_vm0, %v415_v13  ;;  %v416_v16 = vadd.f32 %v411_v15, %v363_v12  ;;  %v765_v17 = vpop.f32.mrb[3].mxu0 }
  0xf2   : > { %419 = vst.msk [vmem:[%s1059_s11 + $0x8] sm:$0xff] %vm356_vm0, %v416_v16 }
  0xf7   : > { %v423_v20 = vld [vmem:[%s1059_s11] sm:$0xff] }
  0xf8   : > { %v432_v21 = vadd.f32 %v734_v18, %v423_v20  ;;  %446 = sbr.rel (!%p1032_p3) target bundleno = 304 (0x130), region = 48 }
  0xf9   : > { %v424_v23 = vld [vmem:[%s1059_s11 + $0x8] sm:$0xff] }
  0xfa   : > { %v436_v24 = vadd.f32 %v434_v19, %v432_v21  ;;  %v433_v25 = vadd.f32 %v734_v18, %v424_v23 }
  0xfc   : > { %438 = vst.msk [vmem:[%s1059_s11] sm:$0xff] %vm356_vm0, %v436_v24  ;;  %v437_v26 = vadd.f32 %v435_v22, %v433_v25 }
  0xfe   : > { %439 = vst.msk [vmem:[%s1059_s11 + $0x8] sm:$0xff] %vm356_vm0, %v437_v26 }
  0xff   : > { %s1146_s29 = smov (!%p449_p9, %s448_s29), 2 }
 0x100   : > { %s737_s8 = sshll.u32 %s1146_s29, 7 }
 0x101   : > { %p740_p10 = scmp.eq.s32.totalorder %s737_s8, 0 }
 0x102   : > { %s1100_s9 = sshrl.u32 (!%p740_p10), %s1146_s29, 1 }
 0x103   : > { %458 = sbr.rel (%p740_p10) target bundleno = 304 (0x130), region = 52  ;;  %p741_p11 = scmp.le.s32.totalorder (!%p740_p10), %s1100_s9, 0 }
 0x10a   : > { %642 = sbr.rel (%p741_p11) target bundleno = 283 (0x11b), region = 137  ;;  %s944_s17 = smov (!%p741_p11), %s1094_s7  }
 0x10b   : > { %s948_s23 = smov (!%p741_p11), %s1059_s11   ;;  %s952_s10 = smov (!%p741_p11), 0  }
 0x10c   : > { %s956_s12 = smov (!%p741_p11), 0  }
 0x111 LB: >> { %v522_v27 = vld [vmem:[%s950_s23] sm:$0xff]  ;;  %v524_v28 = vld [vmem:[%s950_s23 + $0x8] sm:$0xff]  ;;  %s526_s13 = sadd.s32 1, %s954_s10  ;;  %s516_s12 = sadd.s32 1, %s958_s12   ;;  %s958_s12 = sphi %s956_s12, %s516_s12   ;;  %s954_s10 = sphi %s952_s10, %s953_s10   ;;  %s950_s23 = sphi %s948_s23, %s531_s23   ;;  %s946_s17 = sphi %s944_s17, %s532_s17  }
 0x112   : >> { %523 = vst [vmem:[%s946_s17] sm:$0xff] %v522_v27  ;;  %525 = vst [vmem:[%s946_s17 + $0x8] sm:$0xff] %v524_v28  ;;  %p527_p12 = scmp.ge.s32.totalorder %s526_s13, %s1100_s9  ;;  %p515_p13 = scmp.ge.s32.totalorder %s516_s12, %s1100_s9 }
 0x114   : >> { %s1148_s13 = smov (%p527_p12, %s526_s13), 0  ;;  %518 = sbr.rel (!%p515_p13) target bundleno = 273 (0x111), region = 143 }
 0x115   : >> { %s742_s14 = sshll.u32 %s1148_s13, 4  ;;  %s953_s10 = smov %s1148_s13  }
 0x116   : >> { %s531_s23 = scalar_lea.vmem %s1059_s11, %s742_s14 [#allocation2]   ;;  %s532_s17 = scalar_lea.vmem %s1094_s7, %s742_s14  }
 0x11b PF: > { %s1110_s15 = sand.u32 1, %s1146_s29   ;;  %s753_s20 = sshll.u32 %s1100_s9, 4 }
 0x11c   : > { %s537_s22 = scalar_lea.vmem %s1059_s11, %s753_s20 [#allocation2]   ;;  %s539_s24 = scalar_lea.vmem %s1094_s7, %s753_s20  }
 0x11d   : > { %p747_p0 = scmp.le.s32.totalorder %s1110_s15, 0 }
 0x11e   : > { %s960_s26 = smov (!%p747_p0), %s539_s24   ;;  %s964_s27 = smov (!%p747_p0), %s537_s22  }
 0x11f   : > { %656 = sbr.rel (%p747_p0) target bundleno = 304 (0x130), region = 148  ;;  %s968_s28 = smov (!%p747_p0), 0  }
 0x120   : > { %s972_s30 = smov (!%p747_p0), 0  }
 0x126 LB: >> { %v549_v29 = vld [vmem:[%s966_s27] sm:$0xff]  ;;  %s551_s29 = sadd.s32 1, %s970_s28  ;;  %s543_s30 = sadd.s32 1, %s974_s30   ;;  %s974_s30 = sphi %s972_s30, %s543_s30   ;;  %s970_s28 = sphi %s968_s28, %s969_s28   ;;  %s966_s27 = sphi %s964_s27, %s556_s27   ;;  %s962_s26 = sphi %s960_s26, %s557_s26  }
 0x127   : >> { %550 = vst [vmem:[%s962_s26] sm:$0xff] %v549_v29  ;;  %p552_p1 = scmp.ge.s32.totalorder %s551_s29, %s1110_s15  ;;  %p542_p2 = scmp.ge.s32.totalorder %s543_s30, %s1110_s15 }
 0x129   : >> { %s1150_s29 = smov (%p552_p1, %s551_s29), 0  ;;  %545 = sbr.rel (!%p542_p2) target bundleno = 294 (0x126), region = 154 }
 0x12a   : >> { %s748_s11 = sshll.u32 %s1150_s29, 3  ;;  %s969_s28 = smov %s1150_s29  }
 0x12b   : >> { %s556_s27 = scalar_lea.vmem %s537_s22, %s748_s11 [#allocation2]   ;;  %s557_s26 = scalar_lea.vmem %s539_s24, %s748_s11  }
 0x130 PF: > { %s14_s19 = sadd.s32 1, %s942_s19   ;;  %s1139_s15 = smov %s930_s16 }
 0x131   : > { %p11_p3 = scmp.ge.s32.totalorder %s14_s19, 4   ;;  %s1140_s16 = smov %s1041_s25 }
 0x132   : > { %s1141_s17 = smov %s938_s18  ;;  %s1142_s18 = smov %s1144_s21 }
 0x133   :  { %13 = sbr.rel (!%p11_p3) target bundleno = 3 (0x3), region = 165 }

// kernel: multi_scale_encoder_forward.23
= control target key start
LH: loop header
LB: loop body
LE: loop exit
PB: predicated region body
PF: predicated region fallthrough
CT: control target
= control target key end

     0   :  { %s1014_s15 = smov 0   ;;  %s1016_s16 = smov 0   ;;  %s1164_s0 = inlined_call_operand.vmem [shape: f32[18,64], index: 0, kind: input, shape index: {}]   ;;  %s1165_s1 = inlined_call_operand.vmem [shape: f32[64,64], index: 1, kind: input, shape index: {}]   ;;  %s1166_s2 = inlined_call_operand.vmem [shape: f32[1,64], index: 2, kind: input, shape index: {}]   ;;  %s1167_s3 = inlined_call_operand.vmem [shape: f32[18,64], index: 3, kind: input, shape index: {}]   ;;  %s1168_s4 = inlined_call_operand.vmem [shape: f32[18,64], index: 4, kind: output, shape index: {}]  }
   0x1   :  { %s1018_s17 = smov 0   ;;  %s1020_s18 = smov 0  }
   0x2   :  { %s1022_s19 = smov 0  }
   0x3 LB: > { %s726_s20 = sadd.s32 4294967295, %s953_s19   ;;  %s33_s21 = sadd.s32 1, %s949_s18  ;;  %s953_s19 = sphi %s1022_s19, %s14_s19   ;;  %s949_s18 = sphi %s1020_s18, %s1173_s18   ;;  %s945_s17 = sphi %s1018_s17, %s1172_s17   ;;  %s941_s16 = sphi %s1016_s16, %s1171_s16   ;;  %s937_s15 = sphi %s1014_s15, %s1170_s15  }
   0x4   : > { %p35_p0 = scmp.ge.s32.totalorder %s33_s21, 2  ;;  %s152_s22 = sadd.s32 1, %s941_s16 }
   0x5   : > { %p162_p1 = scmp.ne.s32.totalorder %s941_s16, %s937_s15  ;;  %p163_p2 = scmp.eq.s32.totalorder %s726_s20, 1 }
   0x6   : > { %s1175_s21 = smov (%p35_p0, %s33_s21), 0  ;;  %p732_p4 = scmp.ge.s32.totalorder %s953_s19, 1 }
   0x7   : > { %p1046_p3 = por %p163_p2, %p162_p1  ;;  %s147_s24 = ssub.s32 %s949_s18, %s1175_s21 }
   0x8   : > { %p245_p5 = scmp.lt.s32.totalorder %s953_s19, 3  ;;  %p150_p6 = scmp.eq.s32.totalorder %s147_s24, 0 }
   0xa   : > { %p246_p7 = pnand %p732_p4, %p245_p5 }
   0xb   : > { %s1055_s25 = scalar_select %p150_p6, %s941_s16, %s152_s22  }
   0xc   : > { %249 = sbr.rel (%p246_p7) target bundleno = 308 (0x134), region = 36  ;;  %v364_v0 = vld [vmem:[%s1165_s1] sm:$0xff] (!%p246_p7)  ;;  %v365_v1 = vld [vmem:[%s1165_s1 + $0x8] sm:$0xff] (!%p246_p7)  ;;  %v366_v2 = vld [vmem:[%s1165_s1 + $0x10] sm:$0xff] (!%p246_p7)  ;;  %s1067_s6 = sshll.u32 (!%p246_p7), %s945_s17, 1  ;;  %v987_v3 = vmov (!%p246_p7), 0.0  }
   0xd   : > { %765 = vmatprep.subr.bf16.mxu0 (!%p246_p7), %v987_v3  ;;  %v372_v4 = vpack.c.bf16 (!%p246_p7), %v365_v1, %v364_v0  ;;  %v367_v5 = vld [vmem:[%s1165_s1 + $0x18] sm:$0xff] (!%p246_p7)  ;;  %vm988_vm0 = vmmov (!%p246_p7), 0   ;;  %p305_p8 = scmp.lt.s32.totalorder (!%p246_p7), %s1067_s6, 2  ;;  %s297_s9 = sand.u32 (!%p246_p7), 1, %s937_s15   ;;  %v368_v7 = vld [vmem:[%s1165_s1 + $0x20] sm:$0xff] (!%p246_p7)  ;;  %v369_v8 = vld [vmem:[%s1165_s1 + $0x28] sm:$0xff] (!%p246_p7) }
   0xe   : > { %773 = vmatprep.mubr.msk.bf16.mxu0 (!%p246_p7), %vm988_vm0, %v987_v3  ;;  %s733_s10 = sshll.u32 (!%p246_p7), %s297_s9, 4  ;;  %v373_v6 = vpack.c.bf16 (!%p246_p7), %v367_v5, %v366_v2  ;;  %vm356_vm1 = vcmask (!%p246_p7), 523264   ;;  %v374_v9 = vpack.c.bf16 (!%p246_p7), %v369_v8, %v368_v7  ;;  %v370_v10 = vld [vmem:[%s1165_s1 + $0x30] sm:$0xff] (!%p246_p7)  ;;  %v371_v11 = vld [vmem:[%s1165_s1 + $0x38] sm:$0xff] (!%p246_p7)  ;;  %v739_v24 = vld [vmem:[%s1166_s2] ss:$0 sm:$0xff] (!%p246_p7) }
   0xf   : > { %766 = vmatpush3.bf16.msra.mxu0 (!%p246_p7), %v372_v4  ;;  %s1084_s24 = scalar_lea.vmem (!%p246_p7), [#allocation2], %s733_s10   ;;  %v375_v12 = vpack.c.bf16 (!%p246_p7), %v371_v11, %v370_v10 }
  0x10   : > { %767 = vmatprep.subr.bf16.mxu0 (!%p246_p7), %v987_v3  ;;  %357 = vst.msk [vmem:[%s1084_s24] sm:$0xff] (!%p246_p7), %vm356_vm1, %v987_v3  ;;  %358 = vst.msk [vmem:[%s1084_s24 + $0x8] sm:$0xff] (!%p246_p7), %vm356_vm1, %v987_v3 }
  0x13   : > { %s1075_s11 = scalar_select %p305_p8, %s1067_s6, 2  ;;  %768 = vmatpush3.bf16.msra.mxu0 %v373_v6 }
  0x14   : > { %769 = vmatprep.subr.bf16.mxu0 %v987_v3  ;;  %s453_s12 = ssub.s32 (%p1046_p3), 3, %s1067_s6  ;;  %s757_s13 = sshll.u32 (%p1046_p3), %s945_s17, 4 }
  0x15   : > { %s735_s22 = sshll.u32 %s1075_s11, 3  ;;  %p454_p9 = scmp.lt.s32.totalorder (%p1046_p3), %s453_s12, 2 }
  0x16   : > { %s311_s5 = scalar_lea.vmem %s1164_s0, %s735_s22  ;;  %s340_s9 = scalar_lea.vmem %s1167_s3, %s735_s22 }
  0x17   : > { %770 = vmatpush3.bf16.msra.mxu0 %v374_v9  ;;  %v359_v13 = vld [vmem:[%s311_s5] sm:$0xff]  ;;  %v360_v14 = vld [vmem:[%s311_s5 + $0x8] sm:$0xff]  ;;  %s1125_s22 = scalar_lea.vmem (%p1046_p3), %s1168_s4, %s757_s13  }
  0x18   : > { %771 = vmatprep.subr.bf16.mxu0 %v987_v3  ;;  %v361_v15 = vpack.c.bf16 %v360_v14, %v359_v13  ;;  %v362_v16 = vld [vmem:[%s1084_s24] sm:$0xff]  ;;  %v363_v18 = vld [vmem:[%s1084_s24 + $0x8] sm:$0xff] }
  0x19   : > { %v439_v25 = vld [vmem:[%s340_s9] sm:$0xff]  ;;  %v440_v28 = vld [vmem:[%s340_s9 + $0x8] sm:$0xff] }
  0x1b   : > { %772 = vmatpush3.bf16.msra.mxu0 %v375_v12 }
  0x1e   : > { %774 = vmatmul.mubr.msk.bf16.vlgmr.msra.gmra.mrb[0].mxu0 %vm356_vm1, %v361_v15 }
  0xf1   : > { %v414_v17 = vpop.f32.mrb[0].mxu0 }
  0xf2   : > { %v421_v19 = vadd.f32 %v414_v17, %v362_v16  ;;  %v775_v20 = vpop.f32.mrb[1].mxu0 }
  0xf3   : > { %v417_v21 = vpop.f32.mrb[2].mxu0 }
  0xf4   : > { %423 = vst.msk [vmem:[%s1084_s24] sm:$0xff] %vm356_vm1, %v421_v19  ;;  %v422_v22 = vadd.f32 %v417_v21, %v363_v18  ;;  %v776_v23 = vpop.f32.mrb[3].mxu0 }
  0xf6   : > { %424 = vst.msk [vmem:[%s1084_s24 + $0x8] sm:$0xff] %vm356_vm1, %v422_v22 }
  0xfb   : > { %v428_v26 = vld [vmem:[%s1084_s24] sm:$0xff] }
  0xfc   : > { %v437_v27 = vadd.f32 %v739_v24, %v428_v26  ;;  %451 = sbr.rel (!%p1046_p3) target bundleno = 308 (0x134), region = 48 }
  0xfd   : > { %v429_v29 = vld [vmem:[%s1084_s24 + $0x8] sm:$0xff] }
  0xfe   : > { %v441_v30 = vadd.f32 %v439_v25, %v437_v27  ;;  %v438_v31 = vadd.f32 %v739_v24, %v429_v29 }
 0x100   : > { %443 = vst.msk [vmem:[%s1084_s24] sm:$0xff] %vm356_vm1, %v441_v30  ;;  %v442_v32 = vadd.f32 %v440_v28, %v438_v31 }
 0x102   : > { %444 = vst.msk [vmem:[%s1084_s24 + $0x8] sm:$0xff] %vm356_vm1, %v442_v32 }
 0x103   : > { %s1177_s12 = smov (!%p454_p9, %s453_s12), 2 }
 0x104   : > { %s742_s15 = sshll.u32 %s1177_s12, 7 }
 0x105   : > { %p745_p10 = scmp.eq.s32.totalorder %s742_s15, 0 }
 0x106   : > { %s1131_s26 = sshrl.u32 (!%p745_p10), %s1177_s12, 1 }
 0x107   : > { %463 = sbr.rel (%p745_p10) target bundleno = 308 (0x134), region = 52  ;;  %p746_p11 = scmp.le.s32.totalorder (!%p745_p10), %s1131_s26, 0 }
 0x10e   : > { %647 = sbr.rel (%p746_p11) target bundleno = 287 (0x11f), region = 137  ;;  %s955_s17 = smov (!%p746_p11), %s1125_s22  }
 0x10f   : > { %s959_s23 = smov (!%p746_p11), %s1084_s24   ;;  %s963_s6 = smov (!%p746_p11), 0  }
 0x110   : > { %s967_s27 = smov (!%p746_p11), 0  }
 0x115 LB: >> { %v527_v33 = vld [vmem:[%s961_s23] sm:$0xff]  ;;  %v529_v34 = vld [vmem:[%s961_s23 + $0x8] sm:$0xff]  ;;  %s531_s28 = sadd.s32 1, %s965_s6  ;;  %s521_s27 = sadd.s32 1, %s969_s27   ;;  %s969_s27 = sphi %s967_s27, %s521_s27   ;;  %s965_s6 = sphi %s963_s6, %s964_s6   ;;  %s961_s23 = sphi %s959_s23, %s536_s23   ;;  %s957_s17 = sphi %s955_s17, %s537_s17  }
 0x116   : >> { %528 = vst [vmem:[%s957_s17] sm:$0xff] %v527_v33  ;;  %530 = vst [vmem:[%s957_s17 + $0x8] sm:$0xff] %v529_v34  ;;  %p532_p12 = scmp.ge.s32.totalorder %s531_s28, %s1131_s26  ;;  %p520_p13 = scmp.ge.s32.totalorder %s521_s27, %s1131_s26 }
 0x118   : >> { %s1179_s28 = smov (%p532_p12, %s531_s28), 0  ;;  %523 = sbr.rel (!%p520_p13) target bundleno = 277 (0x115), region = 143 }
 0x119   : >> { %s747_s29 = sshll.u32 %s1179_s28, 4  ;;  %s964_s6 = smov %s1179_s28  }
 0x11a   : >> { %s536_s23 = scalar_lea.vmem %s1084_s24, %s747_s29 [#allocation2]   ;;  %s537_s17 = scalar_lea.vmem %s1125_s22, %s747_s29  }
 0x11f PF: > { %s1141_s30 = sand.u32 1, %s1177_s12   ;;  %s758_s5 = sshll.u32 %s1131_s26, 4 }
 0x120   : > { %s542_s7 = scalar_lea.vmem %s1084_s24, %s758_s5 [#allocation2]   ;;  %s544_s8 = scalar_lea.vmem %s1125_s22, %s758_s5  }
 0x121   : > { %p752_p0 = scmp.le.s32.totalorder %s1141_s30, 0 }
 0x122   : > { %s971_s9 = smov (!%p752_p0), %s544_s8   ;;  %s975_s10 = smov (!%p752_p0), %s542_s7  }
 0x123   : > { %661 = sbr.rel (%p752_p0) target bundleno = 308 (0x134), region = 148  ;;  %s979_s11 = smov (!%p752_p0), 0  }
 0x124   : > { %s983_s13 = smov (!%p752_p0), 0  }
 0x12a LB: >> { %v554_v35 = vld [vmem:[%s977_s10] sm:$0xff]  ;;  %s556_s12 = sadd.s32 1, %s981_s11  ;;  %s548_s13 = sadd.s32 1, %s985_s13   ;;  %s985_s13 = sphi %s983_s13, %s548_s13   ;;  %s981_s11 = sphi %s979_s11, %s980_s11   ;;  %s977_s10 = sphi %s975_s10, %s561_s10   ;;  %s973_s9 = sphi %s971_s9, %s562_s9  }
 0x12b   : >> { %555 = vst [vmem:[%s973_s9] sm:$0xff] %v554_v35  ;;  %p557_p1 = scmp.ge.s32.totalorder %s556_s12, %s1141_s30  ;;  %p547_p2 = scmp.ge.s32.totalorder %s548_s13, %s1141_s30 }
 0x12d   : >> { %s1181_s12 = smov (%p557_p1, %s556_s12), 0  ;;  %550 = sbr.rel (!%p547_p2) target bundleno = 298 (0x12a), region = 154 }
 0x12e   : >> { %s753_s24 = sshll.u32 %s1181_s12, 3  ;;  %s980_s11 = smov %s1181_s12  }
 0x12f   : >> { %s561_s10 = scalar_lea.vmem %s542_s7, %s753_s24 [#allocation2]   ;;  %s562_s9 = scalar_lea.vmem %s544_s8, %s753_s24  }
 0x134 PF: > { %s14_s19 = sadd.s32 1, %s953_s19   ;;  %s1170_s15 = smov %s941_s16 }
 0x135   : > { %p11_p3 = scmp.ge.s32.totalorder %s14_s19, 4   ;;  %s1171_s16 = smov %s1055_s25 }
 0x136   : > { %s1172_s17 = smov %s949_s18  ;;  %s1173_s18 = smov %s1175_s21 }
 0x137   :  { %13 = sbr.rel (!%p11_p3) target bundleno = 3 (0x3), region = 165 }

// kernel: multi_scale_encoder_forward.22
= control target key start
LH: loop header
LB: loop body
LE: loop exit
PB: predicated region body
PF: predicated region fallthrough
CT: control target
= control target key end

     0   :  { %s1099_s18 = smov 0   ;;  %s1101_s19 = smov 0   ;;  %s1253_s0 = inlined_call_operand.vmem [shape: f32[18,64], index: 0, kind: input, shape index: {}]   ;;  %s1254_s1 = inlined_call_operand.vmem [shape: f32[64,64], index: 1, kind: input, shape index: {}]   ;;  %s1255_s2 = inlined_call_operand.vmem [shape: f32[1,64], index: 2, kind: input, shape index: {}]   ;;  %s1256_s3 = inlined_call_operand.vmem [shape: f32[1,64], index: 3, kind: input, shape index: {}]   ;;  %s1257_s4 = inlined_call_operand.vmem [shape: f32[1,64], index: 4, kind: input, shape index: {}]   ;;  %s1258_s5 = inlined_call_operand.vmem [shape: f32[18,64], index: 5, kind: output, shape index: {}]  }
   0x1   :  { %s1103_s20 = smov 0   ;;  %s1105_s21 = smov 0  }
   0x2   :  { %s1107_s22 = smov 0  }
   0x3 LB: > { %s796_s23 = sadd.s32 4294967295, %s1033_s22   ;;  %s34_s24 = sadd.s32 1, %s1029_s21  ;;  %s1033_s22 = sphi %s1107_s22, %s15_s22   ;;  %s1029_s21 = sphi %s1105_s21, %s1263_s21   ;;  %s1025_s20 = sphi %s1103_s20, %s1262_s20   ;;  %s1021_s19 = sphi %s1101_s19, %s1261_s19   ;;  %s1017_s18 = sphi %s1099_s18, %s1260_s18  }
   0x4   : > { %p36_p0 = scmp.ge.s32.totalorder %s34_s24, 2  ;;  %s177_s25 = sadd.s32 1, %s1021_s19 }
   0x5   : > { %p187_p1 = scmp.ne.s32.totalorder %s1021_s19, %s1017_s18  ;;  %p188_p2 = scmp.eq.s32.totalorder %s796_s23, 1 }
   0x6   : > { %s1265_s24 = smov (%p36_p0, %s34_s24), 0  ;;  %p804_p4 = scmp.ge.s32.totalorder %s1033_s22, 1 }
   0x7   : > { %p1131_p3 = por %p188_p2, %p187_p1  ;;  %s172_s27 = ssub.s32 %s1029_s21, %s1265_s24 }
   0x8   : > { %p262_p5 = scmp.lt.s32.totalorder %s1033_s22, 3  ;;  %p175_p6 = scmp.eq.s32.totalorder %s172_s27, 0 }
   0xa   : > { %p263_p7 = pnand %p804_p4, %p262_p5 }
   0xb   : > { %s1140_s28 = scalar_select %p175_p6, %s1021_s19, %s177_s25  }
   0xc   : > { %266 = sbr.rel (%p263_p7) target bundleno = 644 (0x284), region = 40  ;;  %s1143_s29 = sshll.u32 (!%p263_p7), %s1025_s20, 1  ;;  %vm358_vm0 = vcmask (!%p263_p7), 523264   ;;  %v412_v14 = vld [vmem:[%s1254_s1] sm:$0xff] (!%p263_p7)  ;;  %v413_v15 = vld [vmem:[%s1254_s1 + $0x8] sm:$0xff] (!%p263_p7)  ;;  %v1067_v17 = vmov (!%p263_p7), 0.0  }
   0xd   : > { %p318_p8 = scmp.lt.s32.totalorder (!%p263_p7), %s1143_s29, 2  ;;  %v420_v16 = vpack.c.bf16 (!%p263_p7), %v413_v15, %v412_v14  ;;  %837 = vmatprep.subr.bf16.mxu0 (!%p263_p7), %v1067_v17  ;;  %v414_v18 = vld [vmem:[%s1254_s1 + $0x10] sm:$0xff] (!%p263_p7)  ;;  %v415_v19 = vld [vmem:[%s1254_s1 + $0x18] sm:$0xff] (!%p263_p7)  ;;  %v416_v21 = vld [vmem:[%s1254_s1 + $0x20] sm:$0xff] (!%p263_p7)  ;;  %vm1068_vm1 = vmmov (!%p263_p7), 0   ;;  %s310_s10 = sand.u32 (!%p263_p7), 1, %s1017_s18  }
   0xe   : > { %v421_v20 = vpack.c.bf16 (!%p263_p7), %v415_v19, %v414_v18  ;;  %v417_v22 = vld [vmem:[%s1254_s1 + $0x28] sm:$0xff] (!%p263_p7)  ;;  %v418_v24 = vld [vmem:[%s1254_s1 + $0x30] sm:$0xff] (!%p263_p7)  ;;  %v419_v25 = vld [vmem:[%s1254_s1 + $0x38] sm:$0xff] (!%p263_p7)  ;;  %845 = vmatprep.mubr.msk.bf16.mxu0 (!%p263_p7), %vm1068_vm1, %v1067_v17  ;;  %s805_s11 = sshll.u32 (!%p263_p7), %s310_s10, 4 }
   0xf   : > { %838 = vmatpush3.bf16.msra.mxu0 (!%p263_p7), %v420_v16  ;;  %v422_v23 = vpack.c.bf16 (!%p263_p7), %v417_v22, %v416_v21  ;;  %v423_v26 = vpack.c.bf16 (!%p263_p7), %v419_v25, %v418_v24  ;;  %s1179_s12 = scalar_lea.vmem (!%p263_p7), [#allocation2], %s805_s11   ;;  %v808_v35 = vld [vmem:[%s1256_s3] ss:$0 sm:$0xff] (!%p263_p7) }
  0x10   : > { %839 = vmatprep.subr.bf16.mxu0 (!%p263_p7), %v1067_v17  ;;  %359 = vst.msk [vmem:[%s1179_s12] sm:$0xff] (!%p263_p7), %vm358_vm0, %v1067_v17  ;;  %360 = vst.msk [vmem:[%s1179_s12 + $0x8] sm:$0xff] (!%p263_p7), %vm358_vm0, %v1067_v17  ;;  %v809_v39 = vld [vmem:[%s1257_s4] ss:$0 sm:$0xff] (!%p263_p7) }
  0x11   : > { %v811_v52 = vld [vmem:[%s1255_s2] ss:$0 sm:$0xff] (!%p263_p7) }
  0x13   : > { %s319_s30 = scalar_select %p318_p8, %s1143_s29, 2  ;;  %840 = vmatpush3.bf16.msra.mxu0 %v421_v20 }
  0x14   : > { %841 = vmatprep.subr.bf16.mxu0 %v1067_v17  ;;  %s514_s23 = ssub.s32 (%p1131_p3), 3, %s1143_s29  ;;  %s829_s25 = sshll.u32 (%p1131_p3), %s1025_s20, 4 }
  0x15   : > { %s807_s6 = sshll.u32 %s319_s30, 3  ;;  %p515_p9 = scmp.lt.s32.totalorder (%p1131_p3), %s514_s23, 2 }
  0x16   : > { %s324_s9 = scalar_lea.vmem %s1253_s0, %s807_s6  ;;  %s1214_s6 = scalar_lea.vmem (%p1131_p3), %s1258_s5, %s829_s25  }
  0x17   : > { %v361_v0 = vld [vmem:[%s324_s9] sm:$0xff]  ;;  %v362_v1 = vld [vmem:[%s324_s9 + $0x8] sm:$0xff]  ;;  %842 = vmatpush3.bf16.msra.mxu0 %v422_v23 }
  0x18   : > { %v366_v2 = vsel %vm358_vm0, %v361_v0, 0.0  ;;  %v369_v3 = vsel %vm358_vm0, %v362_v1, 0.0  ;;  %843 = vmatprep.subr.bf16.mxu0 %v1067_v17  ;;  %v410_v44 = vld [vmem:[%s1179_s12] sm:$0xff]  ;;  %v411_v46 = vld [vmem:[%s1179_s12 + $0x8] sm:$0xff] }
  0x19   : > { %367 = vadd.xlane.f32.xlu0 %v366_v2 }
  0x1b   : > { %844 = vmatpush3.bf16.msra.mxu0 %v423_v26 }
  0x1d   : > { %370 = vadd.xlane.f32.xlu0 %v369_v3 }
  0xa6   : > { %v368_v4 = vpop.xlane.xlu0 %367 }
  0xa7   : > { %v373_v5 = vmul.f32 0.015625, %v368_v4 }
  0xa9   : > { %v375_v6 = vsub.f32 %v361_v0, %v373_v5 }
  0xaa   : > { %v371_v7 = vpop.xlane.xlu0 %370 }
  0xab   : > { %v374_v8 = vmul.f32 0.015625, %v371_v7  ;;  %v377_v9 = vmul.f32 %v375_v6, %v375_v6 }
  0xad   : > { %v376_v10 = vsub.f32 %v362_v1, %v374_v8  ;;  %v379_v11 = vsel %vm358_vm0, %v377_v9, 0.0 }
  0xae   : > { %380 = vadd.xlane.f32.xlu1 %v379_v11 }
  0xaf   : > { %v378_v12 = vmul.f32 %v376_v10, %v376_v10 }
  0xb1   : > { %v382_v13 = vsel %vm358_vm0, %v378_v12, 0.0 }
  0xb2   : > { %383 = vadd.xlane.f32.xlu1 %v382_v13 }
 0x13b   : > { %v381_v27 = vpop.xlane.xlu1 %380 }
 0x13c   : > { %v385_v28 = vmul.f32 0.015625, %v381_v27 }
 0x13e   : > { %v387_v29 = vadd.f32 1e-05, %v385_v28 }
 0x13f   : > { %v384_v30 = vpop.xlane.xlu1 %383 }
 0x140   : > { %955 = vrsqrt.f32 %v387_v29  ;;  %v386_v31 = vmul.f32 0.015625, %v384_v30 }
 0x142   : > { %v388_v32 = vadd.f32 1e-05, %v386_v31 }
 0x144   : > { %957 = vrsqrt.f32 %v388_v32 }
 0x14a   : > { %v956_v33 = vpop.eup %955 }
 0x14b   : > { %v391_v34 = vmul.f32 %v956_v33, %v375_v6 }
 0x14d   : > { %v399_v38 = vmul.f32 %v808_v35, %v391_v34 }
 0x14e   : > { %v958_v36 = vpop.eup %957 }
 0x14f   : > { %v392_v37 = vmul.f32 %v958_v36, %v376_v10  ;;  %v407_v41 = vadd.f32 %v809_v39, %v399_v38 }
 0x151   : > { %v400_v40 = vmul.f32 %v808_v35, %v392_v37 }
 0x153   : > { %v408_v42 = vadd.f32 %v809_v39, %v400_v40 }
 0x155   : > { %v409_v43 = vpack.c.bf16 %v408_v42, %v407_v41 }
 0x157   : > { %846 = vmatmul.mubr.msk.bf16.vlgmr.msra.gmra.mrb[0].mxu0 %vm358_vm0, %v409_v43 }
 0x22a   : > { %v461_v45 = vpop.f32.mrb[0].mxu0 }
 0x22b   : > { %v468_v47 = vadd.f32 %v461_v45, %v410_v44  ;;  %v847_v48 = vpop.f32.mrb[1].mxu0 }
 0x22c   : > { %v464_v49 = vpop.f32.mrb[2].mxu0 }
 0x22d   : > { %470 = vst.msk [vmem:[%s1179_s12] sm:$0xff] %vm358_vm0, %v468_v47  ;;  %v469_v50 = vadd.f32 %v464_v49, %v411_v46  ;;  %v848_v51 = vpop.f32.mrb[3].mxu0 }
 0x22f   : > { %471 = vst.msk [vmem:[%s1179_s12 + $0x8] sm:$0xff] %vm358_vm0, %v469_v50 }
 0x234   : > { %v475_v53 = vld [vmem:[%s1179_s12] sm:$0xff] }
 0x235   : > { %v484_v54 = vadd.f32 %v811_v52, %v475_v53 }
 0x236   : > { %v476_v55 = vld [vmem:[%s1179_s12 + $0x8] sm:$0xff] }
 0x237   : > { %v488_v56 = vmul.f32 0.044715, %v484_v54  ;;  %v485_v57 = vadd.f32 %v811_v52, %v476_v55  ;;  %v486_v4 = vmul.f32 0.5, %v484_v54 }
 0x239   : > { %v490_v58 = vmul.f32 %v488_v56, %v484_v54  ;;  %v489_v59 = vmul.f32 0.044715, %v485_v57  ;;  %v487_v8 = vmul.f32 0.5, %v485_v57 }
 0x23b   : > { %v492_v60 = vmul.f32 %v490_v58, %v484_v54  ;;  %v491_v61 = vmul.f32 %v489_v59, %v485_v57 }
 0x23d   : > { %v494_v62 = vadd.f32 %v492_v60, %v484_v54  ;;  %v493_v63 = vmul.f32 %v491_v61, %v485_v57 }
 0x23f   : > { %v496_v0 = vmul.f32 0.7978846, %v494_v62  ;;  %v495_v1 = vadd.f32 %v493_v63, %v485_v57 }
 0x241   : > { %959 = vtanh.f32 %v496_v0  ;;  %v497_v2 = vmul.f32 0.7978846, %v495_v1 }
 0x243   : > { %961 = vtanh.f32 %v497_v2 }
 0x24b   : > { %v960_v3 = vpop.eup %959 }
 0x24c   : > { %v500_v5 = vadd.f32 1.0, %v960_v3  ;;  %512 = sbr.rel (!%p1131_p3) target bundleno = 644 (0x284), region = 52 }
 0x24d   : > { %v962_v6 = vpop.eup %961 }
 0x24e   : > { %v502_v7 = vmul.f32 %v500_v5, %v486_v4  ;;  %v501_v9 = vadd.f32 1.0, %v962_v6 }
 0x250   : > { %504 = vst.msk [vmem:[%s1179_s12] sm:$0xff] %vm358_vm0, %v502_v7  ;;  %v503_v10 = vmul.f32 %v501_v9, %v487_v8 }
 0x252   : > { %505 = vst.msk [vmem:[%s1179_s12 + $0x8] sm:$0xff] %vm358_vm0, %v503_v10 }
 0x253   : > { %s1267_s23 = smov (!%p515_p9, %s514_s23), 2 }
 0x254   : > { %s814_s7 = sshll.u32 %s1267_s23, 7 }
 0x255   : > { %p817_p10 = scmp.eq.s32.totalorder %s814_s7, 0 }
 0x256   : > { %s1220_s8 = sshrl.u32 (!%p817_p10), %s1267_s23, 1 }
 0x257   : > { %524 = sbr.rel (%p817_p10) target bundleno = 644 (0x284), region = 56  ;;  %p818_p11 = scmp.le.s32.totalorder (!%p817_p10), %s1220_s8, 0 }
 0x25e   : > { %705 = sbr.rel (%p818_p11) target bundleno = 623 (0x26f), region = 144  ;;  %s1035_s20 = smov (!%p818_p11), %s1214_s6  }
 0x25f   : > { %s1039_s26 = smov (!%p818_p11), %s1179_s12   ;;  %s1043_s29 = smov (!%p818_p11), 0  }
 0x260   : > { %s1047_s9 = smov (!%p818_p11), 0  }
 0x265 LB: >> { %v588_v11 = vld [vmem:[%s1041_s26] sm:$0xff]  ;;  %v590_v12 = vld [vmem:[%s1041_s26 + $0x8] sm:$0xff]  ;;  %s592_s10 = sadd.s32 1, %s1045_s29  ;;  %s582_s9 = sadd.s32 1, %s1049_s9   ;;  %s1049_s9 = sphi %s1047_s9, %s582_s9   ;;  %s1045_s29 = sphi %s1043_s29, %s1044_s29   ;;  %s1041_s26 = sphi %s1039_s26, %s597_s26   ;;  %s1037_s20 = sphi %s1035_s20, %s598_s20  }
 0x266   : >> { %589 = vst [vmem:[%s1037_s20] sm:$0xff] %v588_v11  ;;  %591 = vst [vmem:[%s1037_s20 + $0x8] sm:$0xff] %v590_v12  ;;  %p593_p12 = scmp.ge.s32.totalorder %s592_s10, %s1220_s8  ;;  %p581_p13 = scmp.ge.s32.totalorder %s582_s9, %s1220_s8 }
 0x268   : >> { %s1269_s10 = smov (%p593_p12, %s592_s10), 0  ;;  %584 = sbr.rel (!%p581_p13) target bundleno = 613 (0x265), region = 150 }
 0x269   : >> { %s819_s11 = sshll.u32 %s1269_s10, 4  ;;  %s1044_s29 = smov %s1269_s10  }
 0x26a   : >> { %s597_s26 = scalar_lea.vmem %s1179_s12, %s819_s11 [#allocation2]   ;;  %s598_s20 = scalar_lea.vmem %s1214_s6, %s819_s11  }
 0x26f PF: > { %s1230_s18 = sand.u32 1, %s1267_s23   ;;  %s830_s13 = sshll.u32 %s1220_s8, 4 }
 0x270   : > { %s603_s14 = scalar_lea.vmem %s1179_s12, %s830_s13 [#allocation2]   ;;  %s605_s15 = scalar_lea.vmem %s1214_s6, %s830_s13  }
 0x271   : > { %p824_p0 = scmp.le.s32.totalorder %s1230_s18, 0 }
 0x272   : > { %s1051_s16 = smov (!%p824_p0), %s605_s15   ;;  %s1055_s17 = smov (!%p824_p0), %s603_s14  }
 0x273   : > { %719 = sbr.rel (%p824_p0) target bundleno = 644 (0x284), region = 155  ;;  %s1059_s25 = smov (!%p824_p0), 0  }
 0x274   : > { %s1063_s27 = smov (!%p824_p0), 0  }
 0x27a LB: >> { %v615_v13 = vld [vmem:[%s1057_s17] sm:$0xff]  ;;  %s617_s23 = sadd.s32 1, %s1061_s25  ;;  %s609_s27 = sadd.s32 1, %s1065_s27   ;;  %s1065_s27 = sphi %s1063_s27, %s609_s27   ;;  %s1061_s25 = sphi %s1059_s25, %s1060_s25   ;;  %s1057_s17 = sphi %s1055_s17, %s622_s17   ;;  %s1053_s16 = sphi %s1051_s16, %s623_s16  }
 0x27b   : >> { %616 = vst [vmem:[%s1053_s16] sm:$0xff] %v615_v13  ;;  %p618_p1 = scmp.ge.s32.totalorder %s617_s23, %s1230_s18  ;;  %p608_p2 = scmp.ge.s32.totalorder %s609_s27, %s1230_s18 }
 0x27d   : >> { %s1271_s23 = smov (%p618_p1, %s617_s23), 0  ;;  %611 = sbr.rel (!%p608_p2) target bundleno = 634 (0x27a), region = 161 }
 0x27e   : >> { %s825_s12 = sshll.u32 %s1271_s23, 3  ;;  %s1060_s25 = smov %s1271_s23  }
 0x27f   : >> { %s622_s17 = scalar_lea.vmem %s603_s14, %s825_s12 [#allocation2]   ;;  %s623_s16 = scalar_lea.vmem %s605_s15, %s825_s12  }
 0x284 PF: > { %s15_s22 = sadd.s32 1, %s1033_s22   ;;  %s1260_s18 = smov %s1021_s19 }
 0x285   : > { %p12_p3 = scmp.ge.s32.totalorder %s15_s22, 4   ;;  %s1261_s19 = smov %s1140_s28 }
 0x286   : > { %s1262_s20 = smov %s1029_s21  ;;  %s1263_s21 = smov %s1265_s24 }
 0x287   :  { %14 = sbr.rel (!%p12_p3) target bundleno = 3 (0x3), region = 172 }

// kernel: multi_scale_encoder_forward.24
= control target key start
LH: loop header
LB: loop body
LE: loop exit
PB: predicated region body
PF: predicated region fallthrough
CT: control target
= control target key end

     0   :  { %s908_s12 = smov 0   ;;  %s910_s13 = smov 0   ;;  %s1052_s0 = inlined_call_operand.vmem [shape: f32[18,64], index: 0, kind: input, shape index: {}]   ;;  %s1053_s1 = inlined_call_operand.vmem [shape: f32[64,64], index: 1, kind: input, shape index: {}]   ;;  %s1054_s2 = inlined_call_operand.vmem [shape: f32[1,64], index: 2, kind: input, shape index: {}]   ;;  %s1055_s3 = inlined_call_operand.vmem [shape: f32[18,64], index: 3, kind: output, shape index: {}]  }
   0x1   :  { %s912_s14 = smov 0   ;;  %s914_s15 = smov 0  }
   0x2   :  { %s916_s16 = smov 0  }
   0x3 LB: > { %s627_s17 = sadd.s32 4294967295, %s852_s16   ;;  %s32_s18 = sadd.s32 1, %s848_s15  ;;  %s852_s16 = sphi %s916_s16, %s13_s16   ;;  %s848_s15 = sphi %s914_s15, %s1060_s15   ;;  %s844_s14 = sphi %s912_s14, %s1059_s14   ;;  %s840_s13 = sphi %s910_s13, %s1058_s13   ;;  %s836_s12 = sphi %s908_s12, %s1057_s12  }
   0x4   : > { %p34_p0 = scmp.ge.s32.totalorder %s32_s18, 2  ;;  %s123_s19 = sadd.s32 1, %s840_s13 }
   0x5   : > { %p133_p1 = scmp.ne.s32.totalorder %s840_s13, %s836_s12  ;;  %p134_p2 = scmp.eq.s32.totalorder %s627_s17, 1 }
   0x6   : > { %s1062_s18 = smov (%p34_p0, %s32_s18), 0  ;;  %p633_p4 = scmp.ge.s32.totalorder %s852_s16, 1 }
   0x7   : > { %p940_p3 = por %p134_p2, %p133_p1  ;;  %s118_s21 = ssub.s32 %s848_s15, %s1062_s18 }
   0x8   : > { %p196_p5 = scmp.lt.s32.totalorder %s852_s16, 3  ;;  %p121_p6 = scmp.eq.s32.totalorder %s118_s21, 0 }
   0xa   : > { %p197_p7 = pnand %p633_p4, %p196_p5 }
   0xb   : > { %s949_s22 = scalar_select %p121_p6, %s840_s13, %s123_s19  }
   0xc   : > { %200 = sbr.rel (%p197_p7) target bundleno = 306 (0x132), region = 32  ;;  %v284_v0 = vld [vmem:[%s1053_s1] sm:$0xff] (!%p197_p7)  ;;  %v285_v1 = vld [vmem:[%s1053_s1 + $0x8] sm:$0xff] (!%p197_p7)  ;;  %v286_v2 = vld [vmem:[%s1053_s1 + $0x10] sm:$0xff] (!%p197_p7)  ;;  %s961_s29 = sshll.u32 (!%p197_p7), %s844_s14, 1  ;;  %v886_v3 = vmov (!%p197_p7), 0.0  }
   0xd   : > { %664 = vmatprep.subr.bf16.mxu0 (!%p197_p7), %v886_v3  ;;  %v292_v4 = vpack.c.bf16 (!%p197_p7), %v285_v1, %v284_v0  ;;  %v287_v5 = vld [vmem:[%s1053_s1 + $0x18] sm:$0xff] (!%p197_p7)  ;;  %vm887_vm0 = vmmov (!%p197_p7), 0   ;;  %p242_p8 = scmp.lt.s32.totalorder (!%p197_p7), %s961_s29, 2  ;;  %s234_s5 = sand.u32 (!%p197_p7), 1, %s836_s12   ;;  %v288_v7 = vld [vmem:[%s1053_s1 + $0x20] sm:$0xff] (!%p197_p7)  ;;  %v289_v8 = vld [vmem:[%s1053_s1 + $0x28] sm:$0xff] (!%p197_p7) }
   0xe   : > { %672 = vmatprep.mubr.msk.bf16.mxu0 (!%p197_p7), %vm887_vm0, %v886_v3  ;;  %s634_s6 = sshll.u32 (!%p197_p7), %s234_s5, 4  ;;  %v293_v6 = vpack.c.bf16 (!%p197_p7), %v287_v5, %v286_v2  ;;  %vm276_vm1 = vcmask (!%p197_p7), 523264   ;;  %v294_v9 = vpack.c.bf16 (!%p197_p7), %v289_v8, %v288_v7  ;;  %v290_v10 = vld [vmem:[%s1053_s1 + $0x30] sm:$0xff] (!%p197_p7)  ;;  %v291_v11 = vld [vmem:[%s1053_s1 + $0x38] sm:$0xff] (!%p197_p7)  ;;  %v638_v24 = vld [vmem:[%s1054_s2] ss:$0 sm:$0xff] (!%p197_p7) }
   0xf   : > { %665 = vmatpush3.bf16.msra.mxu0 (!%p197_p7), %v292_v4  ;;  %s975_s19 = scalar_lea.vmem (!%p197_p7), [#allocation2], %s634_s6   ;;  %v295_v12 = vpack.c.bf16 (!%p197_p7), %v291_v11, %v290_v10 }
  0x10   : > { %666 = vmatprep.subr.bf16.mxu0 (!%p197_p7), %v886_v3  ;;  %277 = vst.msk [vmem:[%s975_s19] sm:$0xff] (!%p197_p7), %vm276_vm1, %v886_v3  ;;  %278 = vst.msk [vmem:[%s975_s19 + $0x8] sm:$0xff] (!%p197_p7), %vm276_vm1, %v886_v3 }
  0x13   : > { %s243_s7 = scalar_select %p242_p8, %s961_s29, 2  ;;  %667 = vmatpush3.bf16.msra.mxu0 %v293_v6 }
  0x14   : > { %668 = vmatprep.subr.bf16.mxu0 %v886_v3  ;;  %s369_s4 = ssub.s32 (%p940_p3), 3, %s961_s29  ;;  %s656_s5 = sshll.u32 (%p940_p3), %s844_s14, 4 }
  0x15   : > { %s636_s17 = sshll.u32 %s243_s7, 3  ;;  %p370_p9 = scmp.lt.s32.totalorder (%p940_p3), %s369_s4, 2 }
  0x16   : > { %s248_s27 = scalar_lea.vmem %s1052_s0, %s636_s17  ;;  %s1013_s8 = scalar_lea.vmem (%p940_p3), %s1055_s3, %s656_s5  }
  0x17   : > { %669 = vmatpush3.bf16.msra.mxu0 %v294_v9  ;;  %v279_v13 = vld [vmem:[%s248_s27] sm:$0xff]  ;;  %v280_v14 = vld [vmem:[%s248_s27 + $0x8] sm:$0xff] }
  0x18   : > { %670 = vmatprep.subr.bf16.mxu0 %v886_v3  ;;  %v281_v15 = vpack.c.bf16 %v280_v14, %v279_v13  ;;  %v282_v16 = vld [vmem:[%s975_s19] sm:$0xff]  ;;  %v283_v18 = vld [vmem:[%s975_s19 + $0x8] sm:$0xff] }
  0x1b   : > { %671 = vmatpush3.bf16.msra.mxu0 %v295_v12 }
  0x1e   : > { %673 = vmatmul.mubr.msk.bf16.vlgmr.msra.gmra.mrb[0].mxu0 %vm276_vm1, %v281_v15 }
  0xf1   : > { %v334_v17 = vpop.f32.mrb[0].mxu0 }
  0xf2   : > { %v341_v19 = vadd.f32 %v334_v17, %v282_v16  ;;  %v674_v20 = vpop.f32.mrb[1].mxu0 }
  0xf3   : > { %v337_v21 = vpop.f32.mrb[2].mxu0 }
  0xf4   : > { %343 = vst.msk [vmem:[%s975_s19] sm:$0xff] %vm276_vm1, %v341_v19  ;;  %v342_v22 = vadd.f32 %v337_v21, %v283_v18  ;;  %v675_v23 = vpop.f32.mrb[3].mxu0 }
  0xf6   : > { %344 = vst.msk [vmem:[%s975_s19 + $0x8] sm:$0xff] %vm276_vm1, %v342_v22 }
  0xfa   : > { %367 = sbr.rel (!%p940_p3) target bundleno = 306 (0x132), region = 44 }
  0xfb   : > { %v348_v25 = vld [vmem:[%s975_s19] sm:$0xff] }
  0xfc   : > { %v357_v26 = vadd.f32 %v638_v24, %v348_v25 }
  0xfd   : > { %v349_v27 = vld [vmem:[%s975_s19 + $0x8] sm:$0xff] }
  0xfe   : > { %359 = vst.msk [vmem:[%s975_s19] sm:$0xff] %vm276_vm1, %v357_v26  ;;  %v358_v28 = vadd.f32 %v638_v24, %v349_v27 }
 0x100   : > { %360 = vst.msk [vmem:[%s975_s19 + $0x8] sm:$0xff] %vm276_vm1, %v358_v28 }
 0x101   : > { %s1064_s4 = smov (!%p370_p9, %s369_s4), 2 }
 0x102   : > { %s641_s9 = sshll.u32 %s1064_s4, 7 }
 0x103   : > { %p644_p10 = scmp.eq.s32.totalorder %s641_s9, 0 }
 0x104   : > { %s1019_s10 = sshrl.u32 (!%p644_p10), %s1064_s4, 1 }
 0x105   : > { %379 = sbr.rel (%p644_p10) target bundleno = 306 (0x132), region = 48  ;;  %p645_p11 = scmp.le.s32.totalorder (!%p644_p10), %s1019_s10, 0 }
 0x10c   : > { %554 = sbr.rel (%p645_p11) target bundleno = 285 (0x11d), region = 130  ;;  %s854_s14 = smov (!%p645_p11), %s1013_s8  }
 0x10d   : > { %s858_s20 = smov (!%p645_p11), %s975_s19   ;;  %s862_s29 = smov (!%p645_p11), 0  }
 0x10e   : > { %s866_s11 = smov (!%p645_p11), 0  }
 0x113 LB: >> { %v443_v29 = vld [vmem:[%s860_s20] sm:$0xff]  ;;  %v445_v30 = vld [vmem:[%s860_s20 + $0x8] sm:$0xff]  ;;  %s447_s17 = sadd.s32 1, %s864_s29  ;;  %s437_s11 = sadd.s32 1, %s868_s11   ;;  %s868_s11 = sphi %s866_s11, %s437_s11   ;;  %s864_s29 = sphi %s862_s29, %s863_s29   ;;  %s860_s20 = sphi %s858_s20, %s452_s20   ;;  %s856_s14 = sphi %s854_s14, %s453_s14  }
 0x114   : >> { %444 = vst [vmem:[%s856_s14] sm:$0xff] %v443_v29  ;;  %446 = vst [vmem:[%s856_s14 + $0x8] sm:$0xff] %v445_v30  ;;  %p448_p12 = scmp.ge.s32.totalorder %s447_s17, %s1019_s10  ;;  %p436_p13 = scmp.ge.s32.totalorder %s437_s11, %s1019_s10 }
 0x116   : >> { %s1066_s17 = smov (%p448_p12, %s447_s17), 0  ;;  %439 = sbr.rel (!%p436_p13) target bundleno = 275 (0x113), region = 136 }
 0x117   : >> { %s646_s12 = sshll.u32 %s1066_s17, 4  ;;  %s863_s29 = smov %s1066_s17  }
 0x118   : >> { %s452_s20 = scalar_lea.vmem %s975_s19, %s646_s12 [#allocation2]   ;;  %s453_s14 = scalar_lea.vmem %s1013_s8, %s646_s12  }
 0x11d PF: > { %s1029_s21 = sand.u32 1, %s1064_s4   ;;  %s657_s23 = sshll.u32 %s1019_s10, 4 }
 0x11e   : > { %s458_s24 = scalar_lea.vmem %s975_s19, %s657_s23 [#allocation2]   ;;  %s460_s25 = scalar_lea.vmem %s1013_s8, %s657_s23  }
 0x11f   : > { %p651_p0 = scmp.le.s32.totalorder %s1029_s21, 0 }
 0x120   : > { %s870_s26 = smov (!%p651_p0), %s460_s25   ;;  %s874_s27 = smov (!%p651_p0), %s458_s24  }
 0x121   : > { %568 = sbr.rel (%p651_p0) target bundleno = 306 (0x132), region = 141  ;;  %s878_s28 = smov (!%p651_p0), 0  }
 0x122   : > { %s882_s30 = smov (!%p651_p0), 0  }
 0x128 LB: >> { %v470_v31 = vld [vmem:[%s876_s27] sm:$0xff]  ;;  %s472_s4 = sadd.s32 1, %s880_s28  ;;  %s464_s30 = sadd.s32 1, %s884_s30   ;;  %s884_s30 = sphi %s882_s30, %s464_s30   ;;  %s880_s28 = sphi %s878_s28, %s879_s28   ;;  %s876_s27 = sphi %s874_s27, %s477_s27   ;;  %s872_s26 = sphi %s870_s26, %s478_s26  }
 0x129   : >> { %471 = vst [vmem:[%s872_s26] sm:$0xff] %v470_v31  ;;  %p473_p1 = scmp.ge.s32.totalorder %s472_s4, %s1029_s21  ;;  %p463_p2 = scmp.ge.s32.totalorder %s464_s30, %s1029_s21 }
 0x12b   : >> { %s1068_s4 = smov (%p473_p1, %s472_s4), 0  ;;  %466 = sbr.rel (!%p463_p2) target bundleno = 296 (0x128), region = 147 }
 0x12c   : >> { %s652_s19 = sshll.u32 %s1068_s4, 3  ;;  %s879_s28 = smov %s1068_s4  }
 0x12d   : >> { %s477_s27 = scalar_lea.vmem %s458_s24, %s652_s19 [#allocation2]   ;;  %s478_s26 = scalar_lea.vmem %s460_s25, %s652_s19  }
 0x132 PF: > { %s13_s16 = sadd.s32 1, %s852_s16   ;;  %s1057_s12 = smov %s840_s13 }
 0x133   : > { %p10_p3 = scmp.ge.s32.totalorder %s13_s16, 4   ;;  %s1058_s13 = smov %s949_s22 }
 0x134   : > { %s1059_s14 = smov %s848_s15  ;;  %s1060_s15 = smov %s1062_s18 }
 0x135   :  { %12 = sbr.rel (!%p10_p3) target bundleno = 3 (0x3), region = 158 }

// kernel: multi_scale_encoder_forward.25
= control target key start
LH: loop header
LB: loop body
LE: loop exit
PB: predicated region body
PF: predicated region fallthrough
CT: control target
= control target key end

     0   :  { %s549_s9 = smov 0   ;;  %s589_s0 = inlined_call_operand.vmem [shape: f32[2,1,32], index: 0, kind: input, shape index: {}]   ;;  %s590_s1 = inlined_call_operand.vmem [shape: f32[2,9,64], index: 1, kind: input, shape index: {}]   ;;  %s591_s2 = inlined_call_operand.vmem [shape: f32[2,1,32], index: 2, kind: output, shape index: {}]  }
   0x1 LB: > { %s450_s10 = sadd.s32 4294967295, %s525_s9   ;;  %p454_p0 = scmp.ge.s32.totalorder %s525_s9, 1  ;;  %s525_s9 = sphi %s549_s9, %s12_s9  }
   0x2   : > { %p120_p1 = scmp.lt.s32.totalorder %s525_s9, 3 }
   0x4   : > { %p121_p2 = pnand %p454_p0, %p120_p1 }
   0x5   : > { %p143_p3 = scmp.lt.s32.totalorder (!%p121_p2), %s450_s10, 1  ;;  %v527_v0 = vmov (!%p121_p2), 0.0   ;;  %vm528_vm0 = vmmov (!%p121_p2), 0   ;;  %vm160_vm1 = vcmask (!%p121_p2), 130048   ;;  %vm208_vm2 = vcmask (!%p121_p2), 65536   ;;  %s529_s18 = smov (!%p121_p2), 96  }
   0x6   : > { %124 = sbr.rel (%p121_p2) target bundleno = 1424 (0x590), region = 28  ;;  %472 = vmatprep.subr.bf16.mxu0 (!%p121_p2), %v527_v0  ;;  %474 = vmatprep.mubr.msk.bf16.mxu0 (!%p121_p2), %vm528_vm0, %v527_v0  ;;  %s530_s19 = smov (!%p121_p2), 112   ;;  %vm228_vm3 = vcmask (!%p121_p2), 1043456   ;;  %vm229_vm4 = vcmask (!%p121_p2), 1044480   ;;  %v531_v19 = vmov (!%p121_p2), 65535   ;;  %vm224_vm5 = vcmask (!%p121_p2), 72704  }
   0x7   : > { %478 = vmatprep.subr.bf16.mxu1 (!%p121_p2), %v527_v0  ;;  %480 = vmatprep.mubr.msk.bf16.mxu1 (!%p121_p2), %vm528_vm0, %v527_v0  ;;  %v230_v20 = vsel (!%p121_p2), %vm228_vm3, 4294967295, %v531_v19  ;;  %s532_s20 = smov (!%p121_p2), 80   ;;  %s533_s21 = smov (!%p121_p2), 16   ;;  %vm392_vm6 = vcmask (!%p121_p2), 253952  }
   0x8   : > { %v231_v21 = vsel (!%p121_p2), %vm229_vm4, %v230_v20, 0 }
   0xd   : > { %s593_s10 = smov (!%p143_p3, %s450_s10), 1 }
   0xe   : > { %s463_s11 = sshll.u32 %s593_s10, 4  ;;  %s145_s17 = scalar_lea.vmem %s589_s0, %s593_s10 }
   0xf   : > { %s150_s14 = scalar_lea.vmem %s590_s1, %s463_s11  ;;  %v157_v5 = vld [vmem:[%s145_s17] sm:$0x1]  ;;  %s153_s24 = scalar_lea.vmem %s591_s2, %s593_s10 }
  0x10   : > { %v155_v1 = vld [vmem:[%s150_s14] sm:$0xff]  ;;  %v156_v2 = vld [vmem:[%s150_s14 + $0x8] sm:$0x1]  ;;  %v158_v6 = vpack.c.bf16 %v157_v5, %v157_v5 }
  0x11   : > { %v159_v3 = vpack.c.bf16 %v156_v2, %v155_v1 }
  0x13   : > { %v165_v4 = vsel %vm160_vm1, %v159_v3, 0  ;;  %222 = vrot.lane.b32.xlu1 %v159_v3, %s529_s18 }
  0x14   : > { %473 = vmatpush3.bf16.xpose.msra.mxu0 %v165_v4 }
  0x15   : > { %490 = vmatprep.subr.bf16.mxu0 %v527_v0 }
  0x17   : > { %278 = vrot.lane.b32.xlu1 %v159_v3, %s530_s19 }
  0x1b   : > { %475 = vmatmul.mubr.msk.bf16.vlgmr.msra.gmra.mrb[0].mxu0 %vm160_vm1, %v158_v6 }
  0x1c   : > { %492 = vmatprep.mubr.msk.bf16.mxu0 %vm528_vm0, %v527_v0 }
  0x85   : > { %v223_v18 = vpop.permute.xlu1 %222 }
  0x86   : > { %v233_v22 = vand.u32 %v231_v21, %v223_v18 }
  0x88   : > { %479 = vmatpush3.bf16.msra.mxu1 %v233_v22 }
  0x89   : > { %484 = vmatprep.subr.bf16.mxu1 %v527_v0  ;;  %v279_v25 = vpop.permute.xlu1 %278 }
  0x8a   : > { %v284_v27 = vsel %vm160_vm1, %v279_v25, 0 }
  0xee   : > { %v201_v7 = vpop.f32.mrb[0].mxu0 }
  0xef   : > { %v207_v8 = vmul.f32 0.25, %v201_v7  ;;  %v476_v9 = vpop.f32.mrb[1].mxu0 }
  0xf0   : > { %v204_v10 = vpop.f32.mrb[2].mxu0 }
  0xf1   : > { %v477_v11 = vpop.f32.mrb[3].mxu0  ;;  %v209_v12 = vsel %vm208_vm2, %v207_v8, -inf }
  0xf2   : > { %210 = vmax.xlane.f32.xlu0 %v209_v12 }
 0x17f   : > { %v211_v13 = vpop.xlane.xlu0 %210 }
 0x180   : > { %v212_v14 = vsub.f32 %v207_v8, %v211_v13 }
 0x182   : > { %v213_v15 = vmul.f32 1.442695, %v212_v14 }
 0x184   : > { %511 = vpow2.f32 %v213_v15 }
 0x18e   : > { %v512_v16 = vpop.eup %511 }
 0x18f   : > { %v215_v17 = vsel %vm208_vm2, %v512_v16, 0.0 }
 0x190   : > { %216 = vadd.xlane.f32.xlu0 %v215_v17 }
 0x1a6   : > { %276 = vrot.lane.b32.xlu0 %v158_v6, %s530_s19 }
 0x21d   : > { %v217_v23 = vpop.xlane.xlu0 %216 }
 0x21e   : > { %513 = vrcp.f32 %v217_v23 }
 0x221   : > { %v277_v29 = vpop.permute.xlu0 %276 }
 0x228   : > { %v514_v24 = vpop.eup %513 }
 0x229   : > { %v219_v26 = vmul.f32 %v514_v24, %v512_v16 }
 0x22b   : > { %v220_v28 = vpack.c.bf16 %v219_v26, %v219_v26 }
 0x22d   : > { %481 = vmatmul.mubr.msk.bf16.vlgmr.msra.gmra.mrb[0].mxu1 %vm224_vm5, %v220_v28 }
 0x22e   : > { %485 = vmatpush3.bf16.xpose.msra.mxu1 %v284_v27  ;;  %486 = vmatprep.mubr.msk.bf16.mxu1 %vm528_vm0, %v527_v0 }
 0x235   : > { %487 = vmatmul.mubr.msk.bf16.vlgmr.msra.gmra.mrb[4].mxu1 %vm160_vm1, %v277_v29 }
 0x300   : > { %v269_v30 = vpop.f32.mrb[0].mxu1 }
 0x301   : > { %v482_v31 = vpop.f32.mrb[1].mxu1 }
 0x302   : > { %v272_v32 = vpop.f32.mrb[2].mxu1 }
 0x303   : > { %v483_v33 = vpop.f32.mrb[3].mxu1 }
 0x308   : > { %v320_v34 = vpop.f32.mrb[4].mxu1 }
 0x309   : > { %v326_v35 = vmul.f32 0.25, %v320_v34  ;;  %v488_v36 = vpop.f32.mrb[5].mxu1 }
 0x30a   : > { %v323_v37 = vpop.f32.mrb[6].mxu1 }
 0x30b   : > { %v489_v38 = vpop.f32.mrb[7].mxu1  ;;  %v327_v39 = vsel %vm208_vm2, %v326_v35, -inf }
 0x30c   : > { %328 = vmax.xlane.f32.xlu1 %v327_v39 }
 0x31d   : > { %339 = vrot.lane.b32.xlu1 %v159_v3, %s532_s20 }
 0x399   : > { %v329_v40 = vpop.xlane.xlu1 %328 }
 0x39a   : > { %v330_v41 = vsub.f32 %v326_v35, %v329_v40 }
 0x39c   : > { %v331_v42 = vmul.f32 1.442695, %v330_v41 }
 0x39d   : > { %v340_v45 = vpop.permute.xlu1 %339 }
 0x39e   : > { %515 = vpow2.f32 %v331_v42  ;;  %v345_v46 = vand.u32 %v340_v45, %v231_v21 }
 0x3a0   : > { %491 = vmatpush3.bf16.msra.mxu0 %v345_v46 }
 0x3a8   : > { %v516_v43 = vpop.eup %515 }
 0x3a9   : > { %v333_v44 = vsel %vm208_vm2, %v516_v43, 0.0 }
 0x3aa   : > { %334 = vadd.xlane.f32.xlu0 %v333_v44 }
 0x437   : > { %v335_v47 = vpop.xlane.xlu0 %334 }
 0x438   : > { %517 = vrcp.f32 %v335_v47 }
 0x442   : > { %v518_v48 = vpop.eup %517 }
 0x443   : > { %v337_v49 = vmul.f32 %v518_v48, %v516_v43 }
 0x445   : > { %v338_v50 = vpack.c.bf16 %v337_v49, %v337_v49 }
 0x447   : > { %493 = vmatmul.mubr.msk.bf16.vlgmr.msra.gmra.mrb[4].mxu0 %vm224_vm5, %v338_v50 }
 0x51a   : > { %v381_v51 = vpop.f32.mrb[4].mxu0 }
 0x51b   : > { %388 = vrot.lane.b32.xlu0 %v381_v51, %s533_s21  ;;  %v494_v52 = vpop.f32.mrb[5].mxu0 }
 0x51c   : > { %v384_v53 = vpop.f32.mrb[6].mxu0 }
 0x51d   : > { %v495_v54 = vpop.f32.mrb[7].mxu0 }
 0x58d   : > { %v389_v55 = vpop.permute.xlu0 %388 }
 0x58e   : > { %v391_v56 = vsel %vm160_vm1, %v269_v30, %v389_v55 }
 0x58f   : > { %393 = vst.msk [vmem:[%s153_s24] sm:$0x1] %vm392_vm6, %v391_v56 }
 0x590 PF: > { %s12_s9 = sadd.s32 1, %s525_s9  }
 0x591   : > { %p9_p4 = scmp.ge.s32.totalorder %s12_s9, 4  }
 0x593   :  { %11 = sbr.rel (!%p9_p4) target bundleno = 1 (0x1), region = 61 }

// kernel: multi_scale_encoder_forward.26
= control target key start
LH: loop header
LB: loop body
LE: loop exit
PB: predicated region body
PF: predicated region fallthrough
CT: control target
= control target key end

     0   :  { %s919_s12 = smov 0   ;;  %s921_s13 = smov 0   ;;  %s1049_s0 = inlined_call_operand.vmem [shape: f32[34,32], index: 0, kind: input, shape index: {}]   ;;  %s1050_s1 = inlined_call_operand.vmem [shape: f32[32,64], index: 1, kind: input, shape index: {}]   ;;  %s1051_s2 = inlined_call_operand.vmem [shape: f32[1,64], index: 2, kind: input, shape index: {}]   ;;  %s1052_s3 = inlined_call_operand.vmem [shape: f32[34,64], index: 3, kind: output, shape index: {}]  }
   0x1   :  { %s923_s14 = smov 0   ;;  %s925_s15 = smov 0  }
   0x2   :  { %s927_s16 = smov 0  }
   0x3 LB: > { %s647_s17 = sadd.s32 4294967295, %s864_s16   ;;  %s32_s18 = sadd.s32 1, %s860_s15  ;;  %s864_s16 = sphi %s927_s16, %s13_s16   ;;  %s860_s15 = sphi %s925_s15, %s1057_s15   ;;  %s856_s14 = sphi %s923_s14, %s1056_s14   ;;  %s852_s13 = sphi %s921_s13, %s1055_s13   ;;  %s848_s12 = sphi %s919_s12, %s1054_s12  }
   0x4   : > { %p34_p0 = scmp.ge.s32.totalorder %s32_s18, 2  ;;  %s123_s19 = sadd.s32 1, %s852_s13 }
   0x5   : > { %p133_p1 = scmp.ne.s32.totalorder %s852_s13, %s848_s12  ;;  %p134_p2 = scmp.eq.s32.totalorder %s647_s17, 1 }
   0x6   : > { %s1059_s18 = smov (%p34_p0, %s32_s18), 0  ;;  %p653_p4 = scmp.ge.s32.totalorder %s864_s16, 1 }
   0x7   : > { %p948_p3 = por %p134_p2, %p133_p1  ;;  %s118_s21 = ssub.s32 %s860_s15, %s1059_s18 }
   0x8   : > { %p196_p5 = scmp.lt.s32.totalorder %s864_s16, 3  ;;  %p121_p6 = scmp.eq.s32.totalorder %s118_s21, 0 }
   0xa   : > { %p197_p7 = pnand %p653_p4, %p196_p5 }
   0xb   : > { %s957_s22 = scalar_select %p121_p6, %s852_s13, %s123_s19  }
   0xc   : > { %200 = sbr.rel (%p197_p7) target bundleno = 316 (0x13c), region = 32  ;;  %v288_v0 = vld [vmem:[%s1050_s1] sm:$0xff] (!%p197_p7)  ;;  %v289_v1 = vld [vmem:[%s1050_s1 + $0x8] sm:$0xff] (!%p197_p7)  ;;  %v290_v2 = vld [vmem:[%s1050_s1 + $0x10] sm:$0xff] (!%p197_p7)  ;;  %s234_s30 = sand.u32 (!%p197_p7), 1, %s848_s12   ;;  %vm276_vm0 = vcmask (!%p197_p7), 523264  }
   0xd   : > { %s969_s29 = smul.u32 (!%p197_p7), 3, %s856_s14  ;;  %v292_v3 = vpack.c.bf16 (!%p197_p7), %v289_v1, %v288_v0  ;;  %v291_v4 = vld [vmem:[%s1050_s1 + $0x18] sm:$0xff] (!%p197_p7)  ;;  %v898_v6 = vmov (!%p197_p7), 0.0   ;;  %vm294_vm1 = vcmask (!%p197_p7), 261120   ;;  %v657_v22 = vld [vmem:[%s1051_s2] ss:$0 sm:$0xff] (!%p197_p7) }
   0xe   : > { %s683_s6 = smul.u32 (!%p197_p7), 24, %s234_s30  ;;  %v293_v5 = vpack.c.bf16 (!%p197_p7), %v291_v4, %v290_v2 }
   0xf   : > { %p242_p8 = scmp.lt.s32.totalorder (!%p197_p7), %s969_s29, 4  ;;  %675 = vmatprep.subr.bf16.mxu0 (!%p197_p7), %v292_v3 }
  0x10   : > { %676 = vmatpush3.bf16.msra.mxu0 (!%p197_p7), %v292_v3  ;;  %s976_s8 = scalar_lea.vmem (!%p197_p7), [#allocation2], %s683_s6  }
  0x11   : > { %279 = vst.msk [vmem:[%s976_s8 + $0x10] sm:$0xff] (!%p197_p7), %vm276_vm0, %v898_v6  ;;  %277 = vst.msk [vmem:[%s976_s8] sm:$0xff] (!%p197_p7), %vm276_vm0, %v898_v6  ;;  %677 = vmatprep.subr.bf16.mxu0 (!%p197_p7), %v293_v5 }
  0x12   : > { %278 = vst.msk [vmem:[%s976_s8 + $0x8] sm:$0xff] (!%p197_p7), %vm276_vm0, %v898_v6 }
  0x13   : > { %s243_s7 = scalar_select %p242_p8, %s969_s29, 4 }
  0x14   : > { %678 = vmatpush3.bf16.msra.mxu0 %v293_v5  ;;  %s383_s21 = ssub.s32 (%p948_p3), 5, %s969_s29  ;;  %s670_s23 = smul.u32 (%p948_p3), 24, %s856_s14 }
  0x15   : > { %s654_s9 = sshll.u32 %s243_s7, 3  ;;  %p384_p9 = scmp.lt.s32.totalorder (%p948_p3), %s383_s21, 3 }
  0x16   : > { %s248_s12 = scalar_lea.vmem %s1049_s0, %s654_s9  ;;  %s1015_s26 = scalar_lea.vmem (%p948_p3), %s1052_s3, %s670_s23  }
  0x17   : > { %v280_v7 = vld [vmem:[%s248_s12] sm:$0xff]  ;;  %v281_v8 = vld [vmem:[%s248_s12 + $0x8] sm:$0xff]  ;;  %v282_v9 = vld [vmem:[%s248_s12 + $0x10] sm:$0xff] }
  0x18   : > { %v283_v10 = vpack.c.bf16 %v281_v8, %v280_v7  ;;  %v284_v11 = vpack.c.bf16 %v282_v9, %v282_v9  ;;  %v287_v12 = vld [vmem:[%s976_s8 + $0x10] sm:$0xff]  ;;  %v285_v13 = vld [vmem:[%s976_s8] sm:$0xff] }
  0x19   : > { %v286_v17 = vld [vmem:[%s976_s8 + $0x8] sm:$0xff] }
  0x1a   : > { %679 = vmatprep.mubr.msk.bf16.mxu0 %vm294_vm1, %v283_v10 }
  0x1b   : > { %680 = vmatmul.mubr.msk.bf16.vlgmr.msra.gmra.mrb[0].mxu0 %vm294_vm1, %v284_v11 }
  0xee   : > { %v681_v14 = vpop.f32.mrb[0].mxu0 }
  0xef   : > { %v351_v15 = vadd.f32 %v681_v14, %v287_v12  ;;  %v335_v16 = vpop.f32.mrb[1].mxu0 }
  0xf0   : > { %v349_v18 = vadd.f32 %v335_v16, %v285_v13  ;;  %v682_v19 = vpop.f32.mrb[2].mxu0 }
  0xf1   : > { %355 = vst.msk [vmem:[%s976_s8 + $0x10] sm:$0xff] %vm276_vm0, %v351_v15  ;;  %v338_v20 = vpop.f32.mrb[3].mxu0 }
  0xf2   : > { %353 = vst.msk [vmem:[%s976_s8] sm:$0xff] %vm276_vm0, %v349_v18  ;;  %v350_v21 = vadd.f32 %v338_v20, %v286_v17 }
  0xf4   : > { %354 = vst.msk [vmem:[%s976_s8 + $0x8] sm:$0xff] %vm276_vm0, %v350_v21 }
  0xf8   : > { %v361_v23 = vld [vmem:[%s976_s8 + $0x10] sm:$0xff]  ;;  %381 = sbr.rel (!%p948_p3) target bundleno = 316 (0x13c), region = 44 }
  0xf9   : > { %v371_v24 = vadd.f32 %v657_v22, %v361_v23  ;;  %v359_v25 = vld [vmem:[%s976_s8] sm:$0xff] }
  0xfa   : > { %v369_v26 = vadd.f32 %v657_v22, %v359_v25 }
  0xfb   : > { %374 = vst.msk [vmem:[%s976_s8 + $0x10] sm:$0xff] %vm276_vm0, %v371_v24  ;;  %v360_v27 = vld [vmem:[%s976_s8 + $0x8] sm:$0xff] }
  0xfc   : > { %372 = vst.msk [vmem:[%s976_s8] sm:$0xff] %vm276_vm0, %v369_v26  ;;  %v370_v28 = vadd.f32 %v657_v22, %v360_v27 }
  0xfe   : > { %373 = vst.msk [vmem:[%s976_s8 + $0x8] sm:$0xff] %vm276_vm0, %v370_v28 }
  0xff   : > { %s1061_s21 = smov (!%p384_p9, %s383_s21), 3 }
 0x100   : > { %s658_s27 = sshll.u32 %s1061_s21, 7 }
 0x101   : > { %p661_p10 = scmp.eq.s32.totalorder %s658_s27, 0 }
 0x102   : > { %790 = sdivrem.u32 (!%p661_p10), %s1061_s21, 3 }
 0x103   : > { %393 = sbr.rel (%p661_p10) target bundleno = 316 (0x13c), region = 48 }
 0x10b   : > { %s1021_s20 = spop.drf %790 }
 0x10c   : > { %p662_p11 = scmp.le.s32.totalorder %s1021_s20, 0 }
 0x10d   : > { %s866_s14 = smov (!%p662_p11), %s1015_s26   ;;  %s870_s28 = smov (!%p662_p11), %s976_s8  }
 0x10e   : > { %574 = sbr.rel (%p662_p11) target bundleno = 287 (0x11f), region = 130  ;;  %s874_s29 = smov (!%p662_p11), 0  }
 0x10f   : > { %s878_s30 = smov (!%p662_p11), 0  }
 0x115 LB: >> { %v461_v29 = vld [vmem:[%s872_s28] sm:$0xff]  ;;  %v463_v30 = vld [vmem:[%s872_s28 + $0x8] sm:$0xff]  ;;  %v465_v31 = vld [vmem:[%s872_s28 + $0x10] sm:$0xff]  ;;  %s467_s4 = sadd.s32 1, %s876_s29  ;;  %s455_s30 = sadd.s32 1, %s880_s30   ;;  %s880_s30 = sphi %s878_s30, %s455_s30   ;;  %s876_s29 = sphi %s874_s29, %s875_s29   ;;  %s872_s28 = sphi %s870_s28, %s472_s28   ;;  %s868_s14 = sphi %s866_s14, %s473_s14  }
 0x116   : >> { %462 = vst [vmem:[%s868_s14] sm:$0xff] %v461_v29  ;;  %464 = vst [vmem:[%s868_s14 + $0x8] sm:$0xff] %v463_v30  ;;  %p468_p12 = scmp.ge.s32.totalorder %s467_s4, %s1021_s20  ;;  %p454_p13 = scmp.ge.s32.totalorder %s455_s30, %s1021_s20 }
 0x117   : >> { %466 = vst [vmem:[%s868_s14 + $0x10] sm:$0xff] %v465_v31 }
 0x118   : >> { %s1063_s4 = smov (%p468_p12, %s467_s4), 0  ;;  %457 = sbr.rel (!%p454_p13) target bundleno = 277 (0x115), region = 136 }
 0x119   : >> { %s470_s5 = smul.u32 24, %s1063_s4  ;;  %s875_s29 = smov %s1063_s4  }
 0x11b   : >> { %s472_s28 = scalar_lea.vmem %s976_s8, %s470_s5 [#allocation2]   ;;  %s473_s14 = scalar_lea.vmem %s1015_s26, %s470_s5  }
 0x11f PF: > { %792 = sdivrem.u32 %s1061_s21, 3 }
 0x120   : > { %s663_s6 = smul.u32 24, %s1021_s20 }
 0x122   : > { %s478_s7 = scalar_lea.vmem %s976_s8, %s663_s6 [#allocation2]   ;;  %s480_s9 = scalar_lea.vmem %s1015_s26, %s663_s6  }
 0x128   : > { %s793_s10 = spop.drf %792 }
 0x129   : > { %p665_p0 = scmp.le.s32.totalorder %s793_s10, 0 }
 0x12a   : > { %s882_s11 = smov (!%p665_p0), %s480_s9   ;;  %s886_s12 = smov (!%p665_p0), %s478_s7  }
 0x12b   : > { %588 = sbr.rel (%p665_p0) target bundleno = 316 (0x13c), region = 141  ;;  %s890_s17 = smov (!%p665_p0), 0  }
 0x12c   : > { %s894_s19 = smov (!%p665_p0), 0  }
 0x132 LB: >> { %v490_v32 = vld [vmem:[%s888_s12] sm:$0xff]  ;;  %s492_s23 = sadd.s32 1, %s892_s17  ;;  %s484_s19 = sadd.s32 1, %s896_s19   ;;  %s896_s19 = sphi %s894_s19, %s484_s19   ;;  %s892_s17 = sphi %s890_s17, %s891_s17   ;;  %s888_s12 = sphi %s886_s12, %s497_s12   ;;  %s884_s11 = sphi %s882_s11, %s498_s11  }
 0x133   : >> { %491 = vst [vmem:[%s884_s11] sm:$0xff] %v490_v32  ;;  %p493_p1 = scmp.ge.s32.totalorder %s492_s23, %s793_s10  ;;  %p483_p2 = scmp.ge.s32.totalorder %s484_s19, %s793_s10 }
 0x135   : >> { %s1065_s23 = smov (%p493_p1, %s492_s23), 0  ;;  %486 = sbr.rel (!%p483_p2) target bundleno = 306 (0x132), region = 147 }
 0x136   : >> { %s666_s8 = sshll.u32 %s1065_s23, 3  ;;  %s891_s17 = smov %s1065_s23  }
 0x137   : >> { %s497_s12 = scalar_lea.vmem %s478_s7, %s666_s8 [#allocation2]   ;;  %s498_s11 = scalar_lea.vmem %s480_s9, %s666_s8  }
 0x13c PF: > { %s13_s16 = sadd.s32 1, %s864_s16   ;;  %s1054_s12 = smov %s852_s13 }
 0x13d   : > { %p10_p3 = scmp.ge.s32.totalorder %s13_s16, 4   ;;  %s1055_s13 = smov %s957_s22 }
 0x13e   : > { %s1056_s14 = smov %s860_s15  ;;  %s1057_s15 = smov %s1059_s18 }
 0x13f   :  { %12 = sbr.rel (!%p10_p3) target bundleno = 3 (0x3), region = 158 }

// kernel: multi_scale_encoder_forward.27
= control target key start
LH: loop header
LB: loop body
LE: loop exit
PB: predicated region body
PF: predicated region fallthrough
CT: control target
= control target key end

     0   :  { %s576_s9 = smov 0   ;;  %s642_s0 = inlined_call_operand.vmem [shape: f32[2,1,32], index: 0, kind: input, shape index: {}]   ;;  %s643_s1 = inlined_call_operand.vmem [shape: f32[2,17,64], index: 1, kind: input, shape index: {}]   ;;  %s644_s2 = inlined_call_operand.vmem [shape: f32[2,1,32], index: 2, kind: output, shape index: {}]  }
   0x1 LB: > { %s466_s10 = sadd.s32 4294967295, %s552_s9   ;;  %p470_p0 = scmp.ge.s32.totalorder %s552_s9, 1  ;;  %s552_s9 = sphi %s576_s9, %s12_s9  }
   0x2   : > { %p120_p1 = scmp.lt.s32.totalorder %s552_s9, 3 }
   0x4   : > { %p121_p2 = pnand %p470_p0, %p120_p1 }
   0x5   : > { %p143_p3 = scmp.lt.s32.totalorder (!%p121_p2), %s466_s10, 1  ;;  %v554_v0 = vmov (!%p121_p2), 0.0   ;;  %vm555_vm0 = vmmov (!%p121_p2), 0   ;;  %vm162_vm1 = vcmask (!%p121_p2), 130048   ;;  %vm213_vm2 = vcmask (!%p121_p2), 131072   ;;  %s556_s18 = smov (!%p121_p2), 96  }
   0x6   : > { %124 = sbr.rel (%p121_p2) target bundleno = 1441 (0x5a1), region = 28  ;;  %490 = vmatprep.subr.bf16.mxu0 (!%p121_p2), %v554_v0  ;;  %494 = vmatprep.mubr.msk.bf16.mxu0 (!%p121_p2), %vm555_vm0, %v554_v0  ;;  %s557_s19 = smov (!%p121_p2), 112   ;;  %vm237_vm3 = vcmask (!%p121_p2), 1040384   ;;  %v558_v23 = vmov (!%p121_p2), 0   ;;  %vm233_vm4 = vcmask (!%p121_p2), 138240   ;;  %vm408_vm5 = vcmask (!%p121_p2), 253952  }
   0x7   : > { %498 = vmatprep.subr.bf16.mxu1 (!%p121_p2), %v554_v0  ;;  %502 = vmatprep.mubr.msk.bf16.mxu1 (!%p121_p2), %vm555_vm0, %v554_v0  ;;  %v239_v24 = vsel (!%p121_p2), %vm237_vm3, 65535, %v558_v23  ;;  %s559_s20 = smov (!%p121_p2), 80   ;;  %s560_s21 = smov (!%p121_p2), 16  }
   0xd   : > { %s646_s10 = smov (!%p143_p3, %s466_s10), 1 }
   0xe   : > { %s522_s11 = smul.u32 24, %s646_s10  ;;  %s145_s17 = scalar_lea.vmem %s642_s0, %s646_s10 }
   0xf   : > { %v158_v8 = vld [vmem:[%s145_s17] sm:$0x1]  ;;  %s153_s24 = scalar_lea.vmem %s644_s2, %s646_s10 }
  0x10   : > { %s150_s14 = scalar_lea.vmem %s643_s1, %s522_s11  ;;  %v159_v9 = vpack.c.bf16 %v158_v8, %v158_v8 }
  0x11   : > { %v155_v1 = vld [vmem:[%s150_s14] sm:$0xff]  ;;  %v156_v2 = vld [vmem:[%s150_s14 + $0x8] sm:$0xff]  ;;  %v157_v4 = vld [vmem:[%s150_s14 + $0x10] sm:$0x1] }
  0x12   : > { %v596_v3 = vpack.c.bf16 %v156_v2, %v155_v1  ;;  %v601_v6 = vpack.c.bf16 %v157_v4, %v157_v4 }
  0x14   : > { %v167_v5 = vsel %vm162_vm1, %v596_v3, 0  ;;  %v170_v7 = vsel %vm162_vm1, %v601_v6, 0  ;;  %228 = vrot.lane.b32.xlu1 %v596_v3, %s556_s18 }
  0x15   : > { %491 = vmatpush3.bf16.xpose.msra.mxu0 %v167_v5 }
  0x16   : > { %492 = vmatprep.subr.bf16.mxu0 %v554_v0 }
  0x18   : > { %230 = vrot.lane.b32.xlu1 %v601_v6, %s556_s18 }
  0x1c   : > { %288 = vrot.lane.b32.xlu1 %v601_v6, %s557_s19 }
  0x1d   : > { %493 = vmatpush3.bf16.xpose.msra.mxu0 %v170_v7 }
  0x1e   : > { %514 = vmatprep.subr.bf16.mxu0 %v554_v0 }
  0x20   : > { %284 = vrot.lane.b32.xlu1 %v159_v9, %s557_s19 }
  0x24   : > { %495 = vmatmul.mubr.msk.bf16.vlgmr.msra.gmra.mrb[0].mxu0 %vm162_vm1, %v159_v9 }
  0x25   : > { %518 = vmatprep.mubr.msk.bf16.mxu0 %vm555_vm0, %v554_v0 }
  0x86   : > { %v229_v19 = vpop.permute.xlu1 %228 }
  0x87   : > { %499 = vmatpush3.bf16.msra.mxu1 %v229_v19 }
  0x88   : > { %500 = vmatprep.subr.bf16.mxu1 %v554_v0 }
  0x8a   : > { %v231_v22 = vpop.permute.xlu1 %230 }
  0x8b   : > { %v241_v25 = vand.u32 %v239_v24, %v231_v22 }
  0x8d   : > { %501 = vmatpush3.bf16.msra.mxu1 %v241_v25 }
  0x8e   : > { %506 = vmatprep.subr.bf16.mxu1 %v554_v0  ;;  %v289_v32 = vpop.permute.xlu1 %288 }
  0x8f   : > { %v297_v33 = vsel %vm162_vm1, %v289_v32, 0 }
  0x92   : > { %v285_v34 = vpop.permute.xlu1 %284 }
  0xf7   : > { %v206_v10 = vpop.f32.mrb[0].mxu0 }
  0xf8   : > { %v212_v11 = vmul.f32 0.25, %v206_v10  ;;  %v496_v12 = vpop.f32.mrb[1].mxu0 }
  0xf9   : > { %v209_v13 = vpop.f32.mrb[2].mxu0 }
  0xfa   : > { %v497_v14 = vpop.f32.mrb[3].mxu0  ;;  %v214_v15 = vsel %vm213_vm2, %v212_v11, -inf }
  0xfb   : > { %215 = vmax.xlane.f32.xlu0 %v214_v15 }
 0x188   : > { %v216_v16 = vpop.xlane.xlu0 %215 }
 0x189   : > { %v217_v17 = vsub.f32 %v212_v11, %v216_v16 }
 0x18b   : > { %v218_v18 = vmul.f32 1.442695, %v217_v17 }
 0x18d   : > { %538 = vpow2.f32 %v218_v18 }
 0x197   : > { %v539_v20 = vpop.eup %538 }
 0x198   : > { %v220_v21 = vsel %vm213_vm2, %v539_v20, 0.0 }
 0x199   : > { %221 = vadd.xlane.f32.xlu0 %v220_v21 }
 0x1af   : > { %286 = vrot.lane.b32.xlu0 %v596_v3, %s557_s19 }
 0x226   : > { %v222_v26 = vpop.xlane.xlu0 %221 }
 0x227   : > { %540 = vrcp.f32 %v222_v26 }
 0x22a   : > { %v287_v28 = vpop.permute.xlu0 %286 }
 0x22b   : > { %v294_v30 = vsel %vm162_vm1, %v287_v28, 0 }
 0x231   : > { %v541_v27 = vpop.eup %540 }
 0x232   : > { %v224_v29 = vmul.f32 %v541_v27, %v539_v20 }
 0x234   : > { %v225_v31 = vpack.c.bf16 %v224_v29, %v224_v29 }
 0x236   : > { %503 = vmatmul.mubr.msk.bf16.vlgmr.msra.gmra.mrb[0].mxu1 %vm233_vm4, %v225_v31 }
 0x237   : > { %507 = vmatpush3.bf16.xpose.msra.mxu1 %v294_v30  ;;  %510 = vmatprep.mubr.msk.bf16.mxu1 %vm555_vm0, %v554_v0 }
 0x238   : > { %508 = vmatprep.subr.bf16.mxu1 %v554_v0 }
 0x23f   : > { %509 = vmatpush3.bf16.xpose.msra.mxu1 %v297_v33 }
 0x246   : > { %511 = vmatmul.mubr.msk.bf16.vlgmr.msra.gmra.mrb[4].mxu1 %vm162_vm1, %v285_v34 }
 0x309   : > { %v277_v35 = vpop.f32.mrb[0].mxu1 }
 0x30a   : > { %v504_v36 = vpop.f32.mrb[1].mxu1 }
 0x30b   : > { %v280_v37 = vpop.f32.mrb[2].mxu1 }
 0x30c   : > { %v505_v38 = vpop.f32.mrb[3].mxu1 }
 0x319   : > { %v333_v39 = vpop.f32.mrb[4].mxu1 }
 0x31a   : > { %v339_v40 = vmul.f32 0.25, %v333_v39  ;;  %v512_v41 = vpop.f32.mrb[5].mxu1 }
 0x31b   : > { %v336_v42 = vpop.f32.mrb[6].mxu1 }
 0x31c   : > { %v513_v43 = vpop.f32.mrb[7].mxu1  ;;  %v340_v44 = vsel %vm213_vm2, %v339_v40, -inf }
 0x31d   : > { %341 = vmax.xlane.f32.xlu1 %v340_v44 }
 0x32e   : > { %352 = vrot.lane.b32.xlu1 %v596_v3, %s559_s20 }
 0x3aa   : > { %v342_v45 = vpop.xlane.xlu1 %341 }
 0x3ab   : > { %v343_v46 = vsub.f32 %v339_v40, %v342_v45 }
 0x3ad   : > { %v344_v47 = vmul.f32 1.442695, %v343_v46 }
 0x3ae   : > { %v353_v50 = vpop.permute.xlu1 %352 }
 0x3af   : > { %542 = vpow2.f32 %v344_v47  ;;  %515 = vmatpush3.bf16.msra.mxu0 %v353_v50 }
 0x3b0   : > { %516 = vmatprep.subr.bf16.mxu0 %v554_v0 }
 0x3b9   : > { %v543_v48 = vpop.eup %542 }
 0x3ba   : > { %v346_v49 = vsel %vm213_vm2, %v543_v48, 0.0 }
 0x3bb   : > { %347 = vadd.xlane.f32.xlu0 %v346_v49 }
 0x3d1   : > { %354 = vrot.lane.b32.xlu0 %v601_v6, %s559_s20 }
 0x448   : > { %v348_v51 = vpop.xlane.xlu0 %347 }
 0x449   : > { %544 = vrcp.f32 %v348_v51 }
 0x44c   : > { %v355_v52 = vpop.permute.xlu0 %354 }
 0x44d   : > { %v361_v53 = vand.u32 %v355_v52, %v239_v24 }
 0x44f   : > { %517 = vmatpush3.bf16.msra.mxu0 %v361_v53 }
 0x453   : > { %v545_v54 = vpop.eup %544 }
 0x454   : > { %v350_v55 = vmul.f32 %v545_v54, %v543_v48 }
 0x456   : > { %v351_v56 = vpack.c.bf16 %v350_v55, %v350_v55 }
 0x458   : > { %519 = vmatmul.mubr.msk.bf16.vlgmr.msra.gmra.mrb[4].mxu0 %vm233_vm4, %v351_v56 }
 0x52b   : > { %v397_v57 = vpop.f32.mrb[4].mxu0 }
 0x52c   : > { %404 = vrot.lane.b32.xlu1 %v397_v57, %s560_s21  ;;  %v520_v58 = vpop.f32.mrb[5].mxu0 }
 0x52d   : > { %v400_v59 = vpop.f32.mrb[6].mxu0 }
 0x52e   : > { %v521_v60 = vpop.f32.mrb[7].mxu0 }
 0x59e   : > { %v405_v61 = vpop.permute.xlu1 %404 }
 0x59f   : > { %v407_v62 = vsel %vm162_vm1, %v277_v35, %v405_v61 }
 0x5a0   : > { %409 = vst.msk [vmem:[%s153_s24] sm:$0x1] %vm408_vm5, %v407_v62 }
 0x5a1 PF: > { %s12_s9 = sadd.s32 1, %s552_s9  }
 0x5a2   : > { %p9_p4 = scmp.ge.s32.totalorder %s12_s9, 4  }
 0x5a4   :  { %11 = sbr.rel (!%p9_p4) target bundleno = 1 (0x1), region = 61 }

</bundles_post_ra>
